<compile_context>
chip_gen: v6e
topology: v6e:2x2x1
jax: 0.10.0
libtpu: 0.0.40
codegen_flags: <defaults>
</compile_context>

<pallas_src>
import functools

import jax
import jax.numpy as jnp
import numpy as np
from jax.experimental import pallas as pl
from jax.experimental.pallas import tpu as pltpu

LANE = 128  # lane-dense padding for all weight / output feature dims


def _round_up(x, m):
    return ((x + m - 1) // m) * m


# ----------------------------------------------------------------------------
# Pallas kernels
# ----------------------------------------------------------------------------
def _conv_pool_kernel(p_ref, w_ref, b_ref, o_ref):
    """Fused conv (as matmul) + bias + 2x2 maxpool + relu.

    p_ref: (4, TQ, K) bf16   -- im2col patches, pool-tap-major leading axis
    w_ref: (K, 128)   bf16   -- conv weights, Cout zero-padded to 128 lanes
    b_ref: (1, 128)   f32
    o_ref: (TQ, 128)  bf16   -- pooled + relu'd activations (lane-dense)
    """
    w = w_ref[...]
    t0 = jnp.dot(p_ref[0], w, preferred_element_type=jnp.float32)
    t1 = jnp.dot(p_ref[1], w, preferred_element_type=jnp.float32)
    t2 = jnp.dot(p_ref[2], w, preferred_element_type=jnp.float32)
    t3 = jnp.dot(p_ref[3], w, preferred_element_type=jnp.float32)
    m = jnp.maximum(jnp.maximum(t0, t1), jnp.maximum(t2, t3))
    o_ref[...] = jnp.maximum(m + b_ref[...], 0.0).astype(o_ref.dtype)


def _head_kernel(p_ref, w3_ref, b3_ref, w1_ref, b1_ref, w2_ref, b2_ref, o_ref):
    """Fused conv3 + relu + flatten + linear1 + relu + linear2.

    p_ref : (9, TB, K3)  bf16  -- conv3 im2col patches, spatial-position-major
    w3_ref: (K3, 128)    bf16  -- conv3 weights (120 -> padded 128)
    w1_ref: (9, 128, 128) bf16 -- linear1, NCHW-flatten permutation pre-folded
    w2_ref: (128, 128)   bf16  -- linear2 (84x10 -> padded 128x128)
    b*_ref: (1, 128)     f32
    o_ref : (TB, 128)    f32   -- logits (lane-dense; cols >= 10 are zero)
    """
    n_pos = p_ref.shape[0]                      # 9 spatial positions of conv3
    tb = p_ref.shape[1]
    acc = jnp.zeros((tb, w1_ref.shape[2]), jnp.float32)
    for p in range(n_pos):                      # unrolled: 9 * 2 small matmuls
        c3 = jnp.dot(p_ref[p], w3_ref[...], preferred_element_type=jnp.float32)
        c3 = jnp.maximum(c3 + b3_ref[...], 0.0).astype(jnp.bfloat16)
        acc = acc + jnp.dot(c3, w1_ref[p], preferred_element_type=jnp.float32)
    h1 = jnp.maximum(acc + b1_ref[...], 0.0).astype(jnp.bfloat16)
    out = jnp.dot(h1, w2_ref[...], preferred_element_type=jnp.float32)
    o_ref[...] = (out + b2_ref[...]).astype(o_ref.dtype)


# ----------------------------------------------------------------------------
# Wrappers (im2col glue + pallas_call plumbing)
# ----------------------------------------------------------------------------
def conv_relu_pool(a_nhwc, w_mat, b_vec, KH, KW):
    """Valid conv (stride 1) + relu + 2x2/2 maxpool, fused in one kernel.

    a_nhwc: (N, Hin, Win, Cin) bf16.  Returns (N*Hp*Wp, 128) bf16 (lane-dense).
    """
    N, Hin, Win, Cin = a_nhwc.shape
    Ho, Wo = Hin - KH + 1, Win - KW + 1
    assert Ho % 2 == 0 and Wo % 2 == 0
    Hp, Wp = Ho // 2, Wo // 2
    K = KH * KW * Cin
    assert w_mat.shape == (K, LANE)

    # im2col (XLA data rearrangement), with the 4 taps of the 2x2 pool window
    # pulled onto the leading axis so pooling is a plain elementwise max of 4
    # contiguous blocks inside the kernel.
    cols = [a_nhwc[:, kh:kh + Ho, kw:kw + Wo, :]
            for kh in range(KH) for kw in range(KW)]
    pat = jnp.concatenate(cols, axis=-1)                      # (N, Ho, Wo, K)
    pat = pat.reshape(N, Hp, 2, Wp, 2, K).transpose(2, 4, 0, 1, 3, 5)
    pat = pat.reshape(4, N * Hp * Wp, K)                      # (4, Q, K)

    Q = N * Hp * Wp
    TQ = 512 if Q >= 512 else _round_up(Q, 8)
    Qpad = _round_up(Q, TQ)
    if Qpad != Q:
        pat = jnp.pad(pat, ((0, 0), (0, Qpad - Q), (0, 0)))

    out = pl.pallas_call(
        _conv_pool_kernel,
        out_shape=jax.ShapeDtypeStruct((Qpad, LANE), jnp.bfloat16),
        grid=(Qpad // TQ,),
        in_specs=[
            pl.BlockSpec((4, TQ, K), lambda i: (0, i, 0)),
            pl.BlockSpec((K, LANE), lambda i: (0, 0)),    # weights: resident
            pl.BlockSpec((1, LANE), lambda i: (0, 0)),    # bias: resident
        ],
        out_specs=pl.BlockSpec((TQ, LANE), lambda i: (i, 0)),
        compiler_params=pltpu.CompilerParams(
            dimension_semantics=("parallel",)),
    )(pat, w_mat, b_vec)
    return out[:Q]


def head_forward(a_nhwc, params):
    """conv3 + relu + flatten + linear1 + relu + linear2, fused in one kernel.

    a_nhwc: (N, 5, 5, 16) bf16.  Returns (N, 128) f32 logits (lane-dense).
    """
    N, Hs, Ws, Cin = a_nhwc.shape
    KH = KW = 3
    Ho, Wo = Hs - KH + 1, Ws - KW + 1                         # 3 x 3
    K3 = KH * KW * Cin

    cols = [a_nhwc[:, kh:kh + Ho, kw:kw + Wo, :]
            for kh in range(KH) for kw in range(KW)]
    pat = jnp.concatenate(cols, axis=-1)                      # (N, 3, 3, K3)
    pat = pat.reshape(N, Ho * Wo, K3).transpose(1, 0, 2)      # (9, N, K3)

    TB = 128 if N >= 128 else _round_up(N, 8)
    Npad = _round_up(N, TB)
    if Npad != N:
        pat = jnp.pad(pat, ((0, 0), (0, Npad - N), (0, 0)))

    out = pl.pallas_call(
        _head_kernel,
        out_shape=jax.ShapeDtypeStruct((Npad, LANE), jnp.float32),
        grid=(Npad // TB,),
        in_specs=[
            pl.BlockSpec((Ho * Wo, TB, K3), lambda i: (0, i, 0)),
            pl.BlockSpec((K3, LANE), lambda i: (0, 0)),
            pl.BlockSpec((1, LANE), lambda i: (0, 0)),
            pl.BlockSpec((Ho * Wo, LANE, LANE), lambda i: (0, 0, 0)),
            pl.BlockSpec((1, LANE), lambda i: (0, 0)),
            pl.BlockSpec((LANE, LANE), lambda i: (0, 0)),
            pl.BlockSpec((1, LANE), lambda i: (0, 0)),
        ],
        out_specs=pl.BlockSpec((TB, LANE), lambda i: (i, 0)),
        compiler_params=pltpu.CompilerParams(
            dimension_semantics=("parallel",)),
    )(pat, params["conv3_w"], params["conv3_b"], params["lin1_w"],
      params["lin1_b"], params["lin2_w"], params["lin2_b"])
    return out[:N]


# ----------------------------------------------------------------------------
# Parameters
# ----------------------------------------------------------------------------
def init_params(key, in_channels, out_channels):
    """Self-initialized params, stored in the kernel-friendly padded layout.

    To load real PyTorch weights instead: conv W (Cout,Cin,KH,KW) must be
    transposed to (KH,KW,Cin,Cout) before the reshape below; linear W (out,in)
    must be transposed to (in,out); lin1 additionally gets the c*9+p row
    permutation folded in exactly as done here.
    """
    def uinit(k, shape, fan_in):
        bound = 1.0 / np.sqrt(fan_in)
        return jax.random.uniform(k, shape, jnp.float32, -bound, bound)

    def pad_cols(m, cols):
        return jnp.pad(m, ((0, 0), (0, cols - m.shape[1])))

    C1, C2, C3, H1 = 6, 16, 120, 84
    ks = jax.random.split(key, 10)
    p = {}

    w1 = uinit(ks[0], (5, 5, in_channels, C1), 5 * 5 * in_channels)
    p["conv1_w"] = pad_cols(w1.reshape(5 * 5 * in_channels, C1), LANE).astype(jnp.bfloat16)
    p["conv1_b"] = pad_cols(uinit(ks[1], (1, C1), 5 * 5 * in_channels), LANE)

    w2 = uinit(ks[2], (5, 5, C1, C2), 5 * 5 * C1)
    p["conv2_w"] = pad_cols(w2.reshape(5 * 5 * C1, C2), LANE).astype(jnp.bfloat16)
    p["conv2_b"] = pad_cols(uinit(ks[3], (1, C2), 5 * 5 * C1), LANE)

    w3 = uinit(ks[4], (3, 3, C2, C3), 3 * 3 * C2)
    p["conv3_w"] = pad_cols(w3.reshape(3 * 3 * C2, C3), LANE).astype(jnp.bfloat16)
    p["conv3_b"] = pad_cols(uinit(ks[5], (1, C3), 3 * 3 * C2), LANE)

    # linear1: torch does y = x @ W.T with x = NCHW flatten, index f = c*9 + p.
    # Store as (9, 128, 128) with [p, c, j] = W1[f=c*9+p, j]: the flatten
    # permutation is folded into the weight layout (no runtime transpose).
    l1 = uinit(ks[6], (C3 * 9, H1), C3 * 9)                  # (in=1080, out=84)
    l1 = l1.reshape(C3, 9, H1).transpose(1, 0, 2)            # (9, 120, 84)
    l1 = jnp.pad(l1, ((0, 0), (0, LANE - C3), (0, LANE - H1)))
    p["lin1_w"] = l1.astype(jnp.bfloat16)
    p["lin1_b"] = pad_cols(uinit(ks[7], (1, H1), C3 * 9), LANE)

    l2 = uinit(ks[8], (H1, out_channels), H1)
    l2 = jnp.pad(l2, ((0, LANE - H1), (0, LANE - out_channels)))
    p["lin2_w"] = l2.astype(jnp.bfloat16)
    p["lin2_b"] = pad_cols(uinit(ks[9], (1, out_channels), H1), LANE)
    return p


# ----------------------------------------------------------------------------
# Network (Pallas path) and a pure-JAX reference with identical math
# ----------------------------------------------------------------------------
@functools.partial(jax.jit, static_argnames=("num_classes",))
def net_forward(x_nchw, params, *, num_classes):
    N = x_nchw.shape[0]
    x = jnp.transpose(x_nchw, (0, 2, 3, 1)).astype(jnp.bfloat16)  # NHWC bf16

    p1 = conv_relu_pool(x, params["conv1_w"], params["conv1_b"], 5, 5)
    a1 = p1[:, :6].reshape(N, 14, 14, 6)
    p2 = conv_relu_pool(a1, params["conv2_w"], params["conv2_b"], 5, 5)
    a2 = p2[:, :16].reshape(N, 5, 5, 16)
    # Dropout(p=0.25) is identity at inference (eval mode).
    logits = head_forward(a2, params)[:, :num_classes]
    return logits


@functools.partial(jax.jit, static_argnames=("num_classes",))
def net_forward_reference(x_nchw, params, *, num_classes):
    """Pure-JAX (XLA) reference with the same bf16/f32 precision choices."""
    N = x_nchw.shape[0]
    a = jnp.transpose(x_nchw, (0, 2, 3, 1)).astype(jnp.bfloat16)

    def conv_pool_ref(a, w_mat, b_vec, KH, KW, cout):
        Nn, Hin, Win, Cin = a.shape
        Ho, Wo = Hin - KH + 1, Win - KW + 1
        Hp, Wp = Ho // 2, Wo // 2
        cols = [a[:, kh:kh + Ho, kw:kw + Wo, :]
                for kh in range(KH) for kw in range(KW)]
        pat = jnp.concatenate(cols, axis=-1)
        conv = jnp.einsum("nhwk,kc->nhwc", pat, w_mat,
                          preferred_element_type=jnp.float32)
        conv = conv.reshape(Nn, Hp, 2, Wp, 2, LANE)
        pooled = jnp.max(jnp.max(conv, axis=4), axis=2)
        act = jnp.maximum(pooled + b_vec.reshape(1, 1, 1, -1), 0.0)
        return act.astype(jnp.bfloat16)[..., :cout]

    a1 = conv_pool_ref(a, params["conv1_w"], params["conv1_b"], 5, 5, 6)
    a2 = conv_pool_ref(a1, params["conv2_w"], params["conv2_b"], 5, 5, 16)
    cols = [a2[:, kh:kh + 3, kw:kw + 3, :] for kh in range(3) for kw in range(3)]
    pat = jnp.concatenate(cols, axis=-1).reshape(N, 9, 9 * 16)
    c3 = jnp.einsum("npk,kc->npc", pat, params["conv3_w"],
                    preferred_element_type=jnp.float32)
    c3 = jnp.maximum(c3 + params["conv3_b"].reshape(1, 1, -1), 0.0)
    c3 = c3.astype(jnp.bfloat16)
    h1 = jnp.einsum("npc,pcj->nj", c3, params["lin1_w"],
                    preferred_element_type=jnp.float32) + params["lin1_b"]
    h1 = jnp.maximum(h1, 0.0).astype(jnp.bfloat16)
    out = jnp.dot(h1, params["lin2_w"],
                  preferred_element_type=jnp.float32) + params["lin2_b"]
    return out[:, :num_classes]


if __name__ == "__main__":
    IN_CHANNELS = 1
    OUT_CHANNELS = 10
    N, H, W = 2, 32, 32  # 32x32 input is implied by linear1's 1080 = 120*3*3

    key = jax.random.PRNGKey(0)
    k_x, k_p = jax.random.split(key)
    x = jax.random.normal(k_x, (N, IN_CHANNELS, H, W), dtype=jnp.float32)
    params = init_params(k_p, IN_CHANNELS, OUT_CHANNELS)

    out = jax.block_until_ready(net_forward(x, params, num_classes=OUT_CHANNELS))
    assert out.shape == (N, OUT_CHANNELS), out.shape
    assert bool(jnp.all(jnp.isfinite(out)))

    ref = jax.block_until_ready(
        net_forward_reference(x, params, num_classes=OUT_CHANNELS))
    max_err = float(jnp.max(jnp.abs(out - ref)))
    assert bool(jnp.allclose(out, ref, atol=5e-2, rtol=5e-2)), max_err

    print("KERNEL_OK")
</pallas_src>

<mosaic_0001>
module attributes {stable_mosaic.version = 11 : i64} {
  func.func @_conv_pool_kernel(%arg0: i32, %arg1: memref<4x392x25xbf16, #tpu.memory_space<vmem>>, %arg2: memref<25x128xbf16, #tpu.memory_space<vmem>>, %arg3: memref<1x128xf32, #tpu.memory_space<vmem>>, %arg4: memref<392x128xbf16, #tpu.memory_space<vmem>>) attributes {dimension_semantics = [#tpu.dimension_semantics<parallel>], iteration_bounds = array<i64: 1>, scalar_prefetch = 0 : i64, scratch_operands = 0 : i64, tpu.core_type = #tpu.core_type<tc>, window_params = [{transform_indices = @transform_0, window_bounds = array<i64: 4, 392, 25>}, {pipeline_mode = #tpu.pipeline_mode<synchronous>, transform_indices = @transform_1, window_bounds = array<i64: 25, 128>}, {pipeline_mode = #tpu.pipeline_mode<synchronous>, transform_indices = @transform_2, window_bounds = array<i64: 1, 128>}, {transform_indices = @transform_3, window_bounds = array<i64: 392, 128>}]} {
    %c0 = arith.constant 0 : index
    %c0_0 = arith.constant 0 : index
    %0 = vector.load %arg2[%c0, %c0_0] : memref<25x128xbf16, #tpu.memory_space<vmem>>, vector<25x128xbf16>
    %c0_1 = arith.constant 0 : index
    %c0_2 = arith.constant 0 : index
    %c0_3 = arith.constant 0 : index
    %1 = vector.load %arg1[%c0_1, %c0_2, %c0_3] : memref<4x392x25xbf16, #tpu.memory_space<vmem>>, vector<1x392x25xbf16>
    %2 = vector.shape_cast %1 : vector<1x392x25xbf16> to vector<392x25xbf16>
    %cst = arith.constant dense<0.000000e+00> : vector<392x128xf32>
    %3 = tpu.matmul %2, %0, %cst {dimension_numbers = #tpu.dot_dimension_numbers<[1], [0], [0], [1], [0, 0, 1, 1], [], []>} : vector<392x25xbf16>, vector<25x128xbf16>, vector<392x128xf32> -> vector<392x128xf32>
    %c1 = arith.constant 1 : index
    %c0_4 = arith.constant 0 : index
    %c0_5 = arith.constant 0 : index
    %4 = vector.load %arg1[%c1, %c0_4, %c0_5] : memref<4x392x25xbf16, #tpu.memory_space<vmem>>, vector<1x392x25xbf16>
    %5 = vector.shape_cast %4 : vector<1x392x25xbf16> to vector<392x25xbf16>
    %cst_6 = arith.constant dense<0.000000e+00> : vector<392x128xf32>
    %6 = tpu.matmul %5, %0, %cst_6 {dimension_numbers = #tpu.dot_dimension_numbers<[1], [0], [0], [1], [0, 0, 1, 1], [], []>} : vector<392x25xbf16>, vector<25x128xbf16>, vector<392x128xf32> -> vector<392x128xf32>
    %c2 = arith.constant 2 : index
    %c0_7 = arith.constant 0 : index
    %c0_8 = arith.constant 0 : index
    %7 = vector.load %arg1[%c2, %c0_7, %c0_8] : memref<4x392x25xbf16, #tpu.memory_space<vmem>>, vector<1x392x25xbf16>
    %8 = vector.shape_cast %7 : vector<1x392x25xbf16> to vector<392x25xbf16>
    %cst_9 = arith.constant dense<0.000000e+00> : vector<392x128xf32>
    %9 = tpu.matmul %8, %0, %cst_9 {dimension_numbers = #tpu.dot_dimension_numbers<[1], [0], [0], [1], [0, 0, 1, 1], [], []>} : vector<392x25xbf16>, vector<25x128xbf16>, vector<392x128xf32> -> vector<392x128xf32>
    %c3 = arith.constant 3 : index
    %c0_10 = arith.constant 0 : index
    %c0_11 = arith.constant 0 : index
    %10 = vector.load %arg1[%c3, %c0_10, %c0_11] : memref<4x392x25xbf16, #tpu.memory_space<vmem>>, vector<1x392x25xbf16>
    %11 = vector.shape_cast %10 : vector<1x392x25xbf16> to vector<392x25xbf16>
    %cst_12 = arith.constant dense<0.000000e+00> : vector<392x128xf32>
    %12 = tpu.matmul %11, %0, %cst_12 {dimension_numbers = #tpu.dot_dimension_numbers<[1], [0], [0], [1], [0, 0, 1, 1], [], []>} : vector<392x25xbf16>, vector<25x128xbf16>, vector<392x128xf32> -> vector<392x128xf32>
    %13 = arith.maximumf %3, %6 : vector<392x128xf32>
    %14 = arith.maximumf %9, %12 : vector<392x128xf32>
    %15 = arith.maximumf %13, %14 : vector<392x128xf32>
    %c0_13 = arith.constant 0 : index
    %c0_14 = arith.constant 0 : index
    %16 = vector.load %arg3[%c0_13, %c0_14] : memref<1x128xf32, #tpu.memory_space<vmem>>, vector<1x128xf32>
    %17 = vector.broadcast %16 : vector<1x128xf32> to vector<392x128xf32>
    %18 = arith.addf %15, %17 : vector<392x128xf32>
    %cst_15 = arith.constant 0.000000e+00 : f32
    %19 = vector.broadcast %cst_15 : f32 to vector<392x128xf32>
    %20 = arith.maximumf %18, %19 : vector<392x128xf32>
    %21 = arith.truncf %20 : vector<392x128xf32> to vector<392x128xbf16>
    %c0_16 = arith.constant 0 : index
    %c0_17 = arith.constant 0 : index
    %22 = vector.load %arg4[%c0_16, %c0_17] : memref<392x128xbf16, #tpu.memory_space<vmem>>, vector<392x128xbf16>
    tpu.vector_store %arg4[%c0_16, %c0_17], %21 {strides = array<i32>} : memref<392x128xbf16, #tpu.memory_space<vmem>>, vector<392x128xbf16>,
    return
  }
  func.func @transform_0(%arg0: i32) -> (i32, i32, i32) {
    %c0_i32 = arith.constant 0 : i32
    %c0_i32_0 = arith.constant 0 : i32
    %c0_i32_1 = arith.constant 0 : i32
    return %c0_i32, %arg0, %c0_i32_0 : i32, i32, i32
  }
  func.func @transform_1(%arg0: i32) -> (i32, i32) {
    %c0_i32 = arith.constant 0 : i32
    %c0_i32_0 = arith.constant 0 : i32
    %c0_i32_1 = arith.constant 0 : i32
    return %c0_i32, %c0_i32_0 : i32, i32
  }
  func.func @transform_2(%arg0: i32) -> (i32, i32) {
    %c0_i32 = arith.constant 0 : i32
    %c0_i32_0 = arith.constant 0 : i32
    %c0_i32_1 = arith.constant 0 : i32
    return %c0_i32, %c0_i32_0 : i32, i32
  }
  func.func @transform_3(%arg0: i32) -> (i32, i32) {
    %c0_i32 = arith.constant 0 : i32
    %c0_i32_0 = arith.constant 0 : i32
    return %arg0, %c0_i32 : i32, i32
  }
}

module attributes {stable_mosaic.version = 11 : i64} {
  func.func @_conv_pool_kernel(%arg0: i32, %arg1: memref<4x56x150xbf16, #tpu.memory_space<vmem>>, %arg2: memref<150x128xbf16, #tpu.memory_space<vmem>>, %arg3: memref<1x128xf32, #tpu.memory_space<vmem>>, %arg4: memref<56x128xbf16, #tpu.memory_space<vmem>>) attributes {dimension_semantics = [#tpu.dimension_semantics<parallel>], iteration_bounds = array<i64: 1>, scalar_prefetch = 0 : i64, scratch_operands = 0 : i64, tpu.core_type = #tpu.core_type<tc>, window_params = [{transform_indices = @transform_0, window_bounds = array<i64: 4, 56, 150>}, {pipeline_mode = #tpu.pipeline_mode<synchronous>, transform_indices = @transform_1, window_bounds = array<i64: 150, 128>}, {pipeline_mode = #tpu.pipeline_mode<synchronous>, transform_indices = @transform_2, window_bounds = array<i64: 1, 128>}, {transform_indices = @transform_3, window_bounds = array<i64: 56, 128>}]} {
    %c0 = arith.constant 0 : index
    %c0_0 = arith.constant 0 : index
    %0 = vector.load %arg2[%c0, %c0_0] : memref<150x128xbf16, #tpu.memory_space<vmem>>, vector<150x128xbf16>
    %c0_1 = arith.constant 0 : index
    %c0_2 = arith.constant 0 : index
    %c0_3 = arith.constant 0 : index
    %1 = vector.load %arg1[%c0_1, %c0_2, %c0_3] : memref<4x56x150xbf16, #tpu.memory_space<vmem>>, vector<1x56x150xbf16>
    %2 = vector.shape_cast %1 : vector<1x56x150xbf16> to vector<56x150xbf16>
    %cst = arith.constant dense<0.000000e+00> : vector<56x128xf32>
    %3 = tpu.matmul %2, %0, %cst {dimension_numbers = #tpu.dot_dimension_numbers<[1], [0], [0], [1], [0, 0, 1, 1], [], []>} : vector<56x150xbf16>, vector<150x128xbf16>, vector<56x128xf32> -> vector<56x128xf32>
    %c1 = arith.constant 1 : index
    %c0_4 = arith.constant 0 : index
    %c0_5 = arith.constant 0 : index
    %4 = vector.load %arg1[%c1, %c0_4, %c0_5] : memref<4x56x150xbf16, #tpu.memory_space<vmem>>, vector<1x56x150xbf16>
    %5 = vector.shape_cast %4 : vector<1x56x150xbf16> to vector<56x150xbf16>
    %cst_6 = arith.constant dense<0.000000e+00> : vector<56x128xf32>
    %6 = tpu.matmul %5, %0, %cst_6 {dimension_numbers = #tpu.dot_dimension_numbers<[1], [0], [0], [1], [0, 0, 1, 1], [], []>} : vector<56x150xbf16>, vector<150x128xbf16>, vector<56x128xf32> -> vector<56x128xf32>
    %c2 = arith.constant 2 : index
    %c0_7 = arith.constant 0 : index
    %c0_8 = arith.constant 0 : index
    %7 = vector.load %arg1[%c2, %c0_7, %c0_8] : memref<4x56x150xbf16, #tpu.memory_space<vmem>>, vector<1x56x150xbf16>
    %8 = vector.shape_cast %7 : vector<1x56x150xbf16> to vector<56x150xbf16>
    %cst_9 = arith.constant dense<0.000000e+00> : vector<56x128xf32>
    %9 = tpu.matmul %8, %0, %cst_9 {dimension_numbers = #tpu.dot_dimension_numbers<[1], [0], [0], [1], [0, 0, 1, 1], [], []>} : vector<56x150xbf16>, vector<150x128xbf16>, vector<56x128xf32> -> vector<56x128xf32>
    %c3 = arith.constant 3 : index
    %c0_10 = arith.constant 0 : index
    %c0_11 = arith.constant 0 : index
    %10 = vector.load %arg1[%c3, %c0_10, %c0_11] : memref<4x56x150xbf16, #tpu.memory_space<vmem>>, vector<1x56x150xbf16>
    %11 = vector.shape_cast %10 : vector<1x56x150xbf16> to vector<56x150xbf16>
    %cst_12 = arith.constant dense<0.000000e+00> : vector<56x128xf32>
    %12 = tpu.matmul %11, %0, %cst_12 {dimension_numbers = #tpu.dot_dimension_numbers<[1], [0], [0], [1], [0, 0, 1, 1], [], []>} : vector<56x150xbf16>, vector<150x128xbf16>, vector<56x128xf32> -> vector<56x128xf32>
    %13 = arith.maximumf %3, %6 : vector<56x128xf32>
    %14 = arith.maximumf %9, %12 : vector<56x128xf32>
    %15 = arith.maximumf %13, %14 : vector<56x128xf32>
    %c0_13 = arith.constant 0 : index
    %c0_14 = arith.constant 0 : index
    %16 = vector.load %arg3[%c0_13, %c0_14] : memref<1x128xf32, #tpu.memory_space<vmem>>, vector<1x128xf32>
    %17 = vector.broadcast %16 : vector<1x128xf32> to vector<56x128xf32>
    %18 = arith.addf %15, %17 : vector<56x128xf32>
    %cst_15 = arith.constant 0.000000e+00 : f32
    %19 = vector.broadcast %cst_15 : f32 to vector<56x128xf32>
    %20 = arith.maximumf %18, %19 : vector<56x128xf32>
    %21 = arith.truncf %20 : vector<56x128xf32> to vector<56x128xbf16>
    %c0_16 = arith.constant 0 : index
    %c0_17 = arith.constant 0 : index
    %22 = vector.load %arg4[%c0_16, %c0_17] : memref<56x128xbf16, #tpu.memory_space<vmem>>, vector<56x128xbf16>
    tpu.vector_store %arg4[%c0_16, %c0_17], %21 {strides = array<i32>} : memref<56x128xbf16, #tpu.memory_space<vmem>>, vector<56x128xbf16>,
    return
  }
  func.func @transform_0(%arg0: i32) -> (i32, i32, i32) {
    %c0_i32 = arith.constant 0 : i32
    %c0_i32_0 = arith.constant 0 : i32
    %c0_i32_1 = arith.constant 0 : i32
    return %c0_i32, %arg0, %c0_i32_0 : i32, i32, i32
  }
  func.func @transform_1(%arg0: i32) -> (i32, i32) {
    %c0_i32 = arith.constant 0 : i32
    %c0_i32_0 = arith.constant 0 : i32
    %c0_i32_1 = arith.constant 0 : i32
    return %c0_i32, %c0_i32_0 : i32, i32
  }
  func.func @transform_2(%arg0: i32) -> (i32, i32) {
    %c0_i32 = arith.constant 0 : i32
    %c0_i32_0 = arith.constant 0 : i32
    %c0_i32_1 = arith.constant 0 : i32
    return %c0_i32, %c0_i32_0 : i32, i32
  }
  func.func @transform_3(%arg0: i32) -> (i32, i32) {
    %c0_i32 = arith.constant 0 : i32
    %c0_i32_0 = arith.constant 0 : i32
    return %arg0, %c0_i32 : i32, i32
  }
}

module attributes {stable_mosaic.version = 11 : i64} {
  func.func @_head_kernel(%arg0: i32, %arg1: memref<9x8x144xbf16, #tpu.memory_space<vmem>>, %arg2: memref<144x128xbf16, #tpu.memory_space<vmem>>, %arg3: memref<1x128xf32, #tpu.memory_space<vmem>>, %arg4: memref<9x128x128xbf16, #tpu.memory_space<vmem>>, %arg5: memref<1x128xf32, #tpu.memory_space<vmem>>, %arg6: memref<128x128xbf16, #tpu.memory_space<vmem>>, %arg7: memref<1x128xf32, #tpu.memory_space<vmem>>, %arg8: memref<8x128xf32, #tpu.memory_space<vmem>>) attributes {dimension_semantics = [#tpu.dimension_semantics<parallel>], iteration_bounds = array<i64: 1>, scalar_prefetch = 0 : i64, scratch_operands = 0 : i64, tpu.core_type = #tpu.core_type<tc>, window_params = [{transform_indices = @transform_0, window_bounds = array<i64: 9, 8, 144>}, {pipeline_mode = #tpu.pipeline_mode<synchronous>, transform_indices = @transform_1, window_bounds = array<i64: 144, 128>}, {pipeline_mode = #tpu.pipeline_mode<synchronous>, transform_indices = @transform_2, window_bounds = array<i64: 1, 128>}, {pipeline_mode = #tpu.pipeline_mode<synchronous>, transform_indices = @transform_3, window_bounds = array<i64: 9, 128, 128>}, {pipeline_mode = #tpu.pipeline_mode<synchronous>, transform_indices = @transform_4, window_bounds = array<i64: 1, 128>}, {pipeline_mode = #tpu.pipeline_mode<synchronous>, transform_indices = @transform_5, window_bounds = array<i64: 128, 128>}, {pipeline_mode = #tpu.pipeline_mode<synchronous>, transform_indices = @transform_6, window_bounds = array<i64: 1, 128>}, {transform_indices = @transform_7, window_bounds = array<i64: 8, 128>}]} {
    %cst = arith.constant 0.000000e+00 : f32
    %0 = vector.broadcast %cst : f32 to vector<8x128xf32>
    %c0 = arith.constant 0 : index
    %c0_0 = arith.constant 0 : index
    %c0_1 = arith.constant 0 : index
    %1 = vector.load %arg1[%c0, %c0_0, %c0_1] : memref<9x8x144xbf16, #tpu.memory_space<vmem>>, vector<1x8x144xbf16>
    %2 = vector.shape_cast %1 : vector<1x8x144xbf16> to vector<8x144xbf16>
    %c0_2 = arith.constant 0 : index
    %c0_3 = arith.constant 0 : index
    %3 = vector.load %arg2[%c0_2, %c0_3] : memref<144x128xbf16, #tpu.memory_space<vmem>>, vector<144x128xbf16>
    %cst_4 = arith.constant dense<0.000000e+00> : vector<8x128xf32>
    %4 = tpu.matmul %2, %3, %cst_4 {dimension_numbers = #tpu.dot_dimension_numbers<[1], [0], [0], [1], [0, 0, 1, 1], [], []>} : vector<8x144xbf16>, vector<144x128xbf16>, vector<8x128xf32> -> vector<8x128xf32>
    %c0_5 = arith.constant 0 : index
    %c0_6 = arith.constant 0 : index
    %5 = vector.load %arg3[%c0_5, %c0_6] : memref<1x128xf32, #tpu.memory_space<vmem>>, vector<1x128xf32>
    %6 = vector.broadcast %5 : vector<1x128xf32> to vector<8x128xf32>
    %7 = arith.addf %4, %6 : vector<8x128xf32>
    %cst_7 = arith.constant 0.000000e+00 : f32
    %8 = vector.broadcast %cst_7 : f32 to vector<8x128xf32>
    %9 = arith.maximumf %7, %8 : vector<8x128xf32>
    %10 = arith.truncf %9 : vector<8x128xf32> to vector<8x128xbf16>
    %c0_8 = arith.constant 0 : index
    %c0_9 = arith.constant 0 : index
    %c0_10 = arith.constant 0 : index
    %11 = vector.load %arg4[%c0_8, %c0_9, %c0_10] : memref<9x128x128xbf16, #tpu.memory_space<vmem>>, vector<1x128x128xbf16>
    %12 = vector.shape_cast %11 : vector<1x128x128xbf16> to vector<128x128xbf16>
    %cst_11 = arith.constant dense<0.000000e+00> : vector<8x128xf32>
    %13 = tpu.matmul %10, %12, %cst_11 {dimension_numbers = #tpu.dot_dimension_numbers<[1], [0], [0], [1], [0, 0, 1, 1], [], []>} : vector<8x128xbf16>, vector<128x128xbf16>, vector<8x128xf32> -> vector<8x128xf32>
    %14 = arith.addf %0, %13 : vector<8x128xf32>
    %c1 = arith.constant 1 : index
    %c0_12 = arith.constant 0 : index
    %c0_13 = arith.constant 0 : index
    %15 = vector.load %arg1[%c1, %c0_12, %c0_13] : memref<9x8x144xbf16, #tpu.memory_space<vmem>>, vector<1x8x144xbf16>
    %16 = vector.shape_cast %15 : vector<1x8x144xbf16> to vector<8x144xbf16>
    %c0_14 = arith.constant 0 : index
    %c0_15 = arith.constant 0 : index
    %17 = vector.load %arg2[%c0_14, %c0_15] : memref<144x128xbf16, #tpu.memory_space<vmem>>, vector<144x128xbf16>
    %cst_16 = arith.constant dense<0.000000e+00> : vector<8x128xf32>
    %18 = tpu.matmul %16, %17, %cst_16 {dimension_numbers = #tpu.dot_dimension_numbers<[1], [0], [0], [1], [0, 0, 1, 1], [], []>} : vector<8x144xbf16>, vector<144x128xbf16>, vector<8x128xf32> -> vector<8x128xf32>
    %c0_17 = arith.constant 0 : index
    %c0_18 = arith.constant 0 : index
    %19 = vector.load %arg3[%c0_17, %c0_18] : memref<1x128xf32, #tpu.memory_space<vmem>>, vector<1x128xf32>
    %20 = vector.broadcast %19 : vector<1x128xf32> to vector<8x128xf32>
    %21 = arith.addf %18, %20 : vector<8x128xf32>
    %cst_19 = arith.constant 0.000000e+00 : f32
    %22 = vector.broadcast %cst_19 : f32 to vector<8x128xf32>
    %23 = arith.maximumf %21, %22 : vector<8x128xf32>
    %24 = arith.truncf %23 : vector<8x128xf32> to vector<8x128xbf16>
    %c1_20 = arith.constant 1 : index
    %c0_21 = arith.constant 0 : index
    %c0_22 = arith.constant 0 : index
    %25 = vector.load %arg4[%c1_20, %c0_21, %c0_22] : memref<9x128x128xbf16, #tpu.memory_space<vmem>>, vector<1x128x128xbf16>
    %26 = vector.shape_cast %25 : vector<1x128x128xbf16> to vector<128x128xbf16>
    %cst_23 = arith.constant dense<0.000000e+00> : vector<8x128xf32>
    %27 = tpu.matmul %24, %26, %cst_23 {dimension_numbers = #tpu.dot_dimension_numbers<[1], [0], [0], [1], [0, 0, 1, 1], [], []>} : vector<8x128xbf16>, vector<128x128xbf16>, vector<8x128xf32> -> vector<8x128xf32>
    %28 = arith.addf %14, %27 : vector<8x128xf32>
    %c2 = arith.constant 2 : index
    %c0_24 = arith.constant 0 : index
    %c0_25 = arith.constant 0 : index
    %29 = vector.load %arg1[%c2, %c0_24, %c0_25] : memref<9x8x144xbf16, #tpu.memory_space<vmem>>, vector<1x8x144xbf16>
    %30 = vector.shape_cast %29 : vector<1x8x144xbf16> to vector<8x144xbf16>
    %c0_26 = arith.constant 0 : index
    %c0_27 = arith.constant 0 : index
    %31 = vector.load %arg2[%c0_26, %c0_27] : memref<144x128xbf16, #tpu.memory_space<vmem>>, vector<144x128xbf16>
    %cst_28 = arith.constant dense<0.000000e+00> : vector<8x128xf32>
    %32 = tpu.matmul %30, %31, %cst_28 {dimension_numbers = #tpu.dot_dimension_numbers<[1], [0], [0], [1], [0, 0, 1, 1], [], []>} : vector<8x144xbf16>, vector<144x128xbf16>, vector<8x128xf32> -> vector<8x128xf32>
    %c0_29 = arith.constant 0 : index
    %c0_30 = arith.constant 0 : index
    %33 = vector.load %arg3[%c0_29, %c0_30] : memref<1x128xf32, #tpu.memory_space<vmem>>, vector<1x128xf32>
    %34 = vector.broadcast %33 : vector<1x128xf32> to vector<8x128xf32>
    %35 = arith.addf %32, %34 : vector<8x128xf32>
    %cst_31 = arith.constant 0.000000e+00 : f32
    %36 = vector.broadcast %cst_31 : f32 to vector<8x128xf32>
    %37 = arith.maximumf %35, %36 : vector<8x128xf32>
    %38 = arith.truncf %37 : vector<8x128xf32> to vector<8x128xbf16>
    %c2_32 = arith.constant 2 : index
    %c0_33 = arith.constant 0 : index
    %c0_34 = arith.constant 0 : index
    %39 = vector.load %arg4[%c2_32, %c0_33, %c0_34] : memref<9x128x128xbf16, #tpu.memory_space<vmem>>, vector<1x128x128xbf16>
    %40 = vector.shape_cast %39 : vector<1x128x128xbf16> to vector<128x128xbf16>
    %cst_35 = arith.constant dense<0.000000e+00> : vector<8x128xf32>
    %41 = tpu.matmul %38, %40, %cst_35 {dimension_numbers = #tpu.dot_dimension_numbers<[1], [0], [0], [1], [0, 0, 1, 1], [], []>} : vector<8x128xbf16>, vector<128x128xbf16>, vector<8x128xf32> -> vector<8x128xf32>
    %42 = arith.addf %28, %41 : vector<8x128xf32>
    %c3 = arith.constant 3 : index
    %c0_36 = arith.constant 0 : index
    %c0_37 = arith.constant 0 : index
    %43 = vector.load %arg1[%c3, %c0_36, %c0_37] : memref<9x8x144xbf16, #tpu.memory_space<vmem>>, vector<1x8x144xbf16>
    %44 = vector.shape_cast %43 : vector<1x8x144xbf16> to vector<8x144xbf16>
    %c0_38 = arith.constant 0 : index
    %c0_39 = arith.constant 0 : index
    %45 = vector.load %arg2[%c0_38, %c0_39] : memref<144x128xbf16, #tpu.memory_space<vmem>>, vector<144x128xbf16>
    %cst_40 = arith.constant dense<0.000000e+00> : vector<8x128xf32>
    %46 = tpu.matmul %44, %45, %cst_40 {dimension_numbers = #tpu.dot_dimension_numbers<[1], [0], [0], [1], [0, 0, 1, 1], [], []>} : vector<8x144xbf16>, vector<144x128xbf16>, vector<8x128xf32> -> vector<8x128xf32>
    %c0_41 = arith.constant 0 : index
    %c0_42 = arith.constant 0 : index
    %47 = vector.load %arg3[%c0_41, %c0_42] : memref<1x128xf32, #tpu.memory_space<vmem>>, vector<1x128xf32>
    %48 = vector.broadcast %47 : vector<1x128xf32> to vector<8x128xf32>
    %49 = arith.addf %46, %48 : vector<8x128xf32>
    %cst_43 = arith.constant 0.000000e+00 : f32
    %50 = vector.broadcast %cst_43 : f32 to vector<8x128xf32>
    %51 = arith.maximumf %49, %50 : vector<8x128xf32>
    %52 = arith.truncf %51 : vector<8x128xf32> to vector<8x128xbf16>
    %c3_44 = arith.constant 3 : index
    %c0_45 = arith.constant 0 : index
    %c0_46 = arith.constant 0 : index
    %53 = vector.load %arg4[%c3_44, %c0_45, %c0_46] : memref<9x128x128xbf16, #tpu.memory_space<vmem>>, vector<1x128x128xbf16>
    %54 = vector.shape_cast %53 : vector<1x128x128xbf16> to vector<128x128xbf16>
    %cst_47 = arith.constant dense<0.000000e+00> : vector<8x128xf32>
    %55 = tpu.matmul %52, %54, %cst_47 {dimension_numbers = #tpu.dot_dimension_numbers<[1], [0], [0], [1], [0, 0, 1, 1], [], []>} : vector<8x128xbf16>, vector<128x128xbf16>, vector<8x128xf32> -> vector<8x128xf32>
    %56 = arith.addf %42, %55 : vector<8x128xf32>
    %c4 = arith.constant 4 : index
    %c0_48 = arith.constant 0 : index
    %c0_49 = arith.constant 0 : index
    %57 = vector.load %arg1[%c4, %c0_48, %c0_49] : memref<9x8x144xbf16, #tpu.memory_space<vmem>>, vector<1x8x144xbf16>
    %58 = vector.shape_cast %57 : vector<1x8x144xbf16> to vector<8x144xbf16>
    %c0_50 = arith.constant 0 : index
    %c0_51 = arith.constant 0 : index
    %59 = vector.load %arg2[%c0_50, %c0_51] : memref<144x128xbf16, #tpu.memory_space<vmem>>, vector<144x128xbf16>
    %cst_52 = arith.constant dense<0.000000e+00> : vector<8x128xf32>
    %60 = tpu.matmul %58, %59, %cst_52 {dimension_numbers = #tpu.dot_dimension_numbers<[1], [0], [0], [1], [0, 0, 1, 1], [], []>} : vector<8x144xbf16>, vector<144x128xbf16>, vector<8x128xf32> -> vector<8x128xf32>
    %c0_53 = arith.constant 0 : index
    %c0_54 = arith.constant 0 : index
    %61 = vector.load %arg3[%c0_53, %c0_54] : memref<1x128xf32, #tpu.memory_space<vmem>>, vector<1x128xf32>
    %62 = vector.broadcast %61 : vector<1x128xf32> to vector<8x128xf32>
    %63 = arith.addf %60, %62 : vector<8x128xf32>
    %cst_55 = arith.constant 0.000000e+00 : f32
    %64 = vector.broadcast %cst_55 : f32 to vector<8x128xf32>
    %65 = arith.maximumf %63, %64 : vector<8x128xf32>
    %66 = arith.truncf %65 : vector<8x128xf32> to vector<8x128xbf16>
    %c4_56 = arith.constant 4 : index
    %c0_57 = arith.constant 0 : index
    %c0_58 = arith.constant 0 : index
    %67 = vector.load %arg4[%c4_56, %c0_57, %c0_58] : memref<9x128x128xbf16, #tpu.memory_space<vmem>>, vector<1x128x128xbf16>
    %68 = vector.shape_cast %67 : vector<1x128x128xbf16> to vector<128x128xbf16>
    %cst_59 = arith.constant dense<0.000000e+00> : vector<8x128xf32>
    %69 = tpu.matmul %66, %68, %cst_59 {dimension_numbers = #tpu.dot_dimension_numbers<[1], [0], [0], [1], [0, 0, 1, 1], [], []>} : vector<8x128xbf16>, vector<128x128xbf16>, vector<8x128xf32> -> vector<8x128xf32>
    %70 = arith.addf %56, %69 : vector<8x128xf32>
    %c5 = arith.constant 5 : index
    %c0_60 = arith.constant 0 : index
    %c0_61 = arith.constant 0 : index
    %71 = vector.load %arg1[%c5, %c0_60, %c0_61] : memref<9x8x144xbf16, #tpu.memory_space<vmem>>, vector<1x8x144xbf16>
    %72 = vector.shape_cast %71 : vector<1x8x144xbf16> to vector<8x144xbf16>
    %c0_62 = arith.constant 0 : index
    %c0_63 = arith.constant 0 : index
    %73 = vector.load %arg2[%c0_62, %c0_63] : memref<144x128xbf16, #tpu.memory_space<vmem>>, vector<144x128xbf16>
    %cst_64 = arith.constant dense<0.000000e+00> : vector<8x128xf32>
    %74 = tpu.matmul %72, %73, %cst_64 {dimension_numbers = #tpu.dot_dimension_numbers<[1], [0], [0], [1], [0, 0, 1, 1], [], []>} : vector<8x144xbf16>, vector<144x128xbf16>, vector<8x128xf32> -> vector<8x128xf32>
    %c0_65 = arith.constant 0 : index
    %c0_66 = arith.constant 0 : index
    %75 = vector.load %arg3[%c0_65, %c0_66] : memref<1x128xf32, #tpu.memory_space<vmem>>, vector<1x128xf32>
    %76 = vector.broadcast %75 : vector<1x128xf32> to vector<8x128xf32>
    %77 = arith.addf %74, %76 : vector<8x128xf32>
    %cst_67 = arith.constant 0.000000e+00 : f32
    %78 = vector.broadcast %cst_67 : f32 to vector<8x128xf32>
    %79 = arith.maximumf %77, %78 : vector<8x128xf32>
    %80 = arith.truncf %79 : vector<8x128xf32> to vector<8x128xbf16>
    %c5_68 = arith.constant 5 : index
    %c0_69 = arith.constant 0 : index
    %c0_70 = arith.constant 0 : index
    %81 = vector.load %arg4[%c5_68, %c0_69, %c0_70] : memref<9x128x128xbf16, #tpu.memory_space<vmem>>, vector<1x128x128xbf16>
    %82 = vector.shape_cast %81 : vector<1x128x128xbf16> to vector<128x128xbf16>
    %cst_71 = arith.constant dense<0.000000e+00> : vector<8x128xf32>
    %83 = tpu.matmul %80, %82, %cst_71 {dimension_numbers = #tpu.dot_dimension_numbers<[1], [0], [0], [1], [0, 0, 1, 1], [], []>} : vector<8x128xbf16>, vector<128x128xbf16>, vector<8x128xf32> -> vector<8x128xf32>
    %84 = arith.addf %70, %83 : vector<8x128xf32>
    %c6 = arith.constant 6 : index
    %c0_72 = arith.constant 0 : index
    %c0_73 = arith.constant 0 : index
    %85 = vector.load %arg1[%c6, %c0_72, %c0_73] : memref<9x8x144xbf16, #tpu.memory_space<vmem>>, vector<1x8x144xbf16>
    %86 = vector.shape_cast %85 : vector<1x8x144xbf16> to vector<8x144xbf16>
    %c0_74 = arith.constant 0 : index
    %c0_75 = arith.constant 0 : index
    %87 = vector.load %arg2[%c0_74, %c0_75] : memref<144x128xbf16, #tpu.memory_space<vmem>>, vector<144x128xbf16>
    %cst_76 = arith.constant dense<0.000000e+00> : vector<8x128xf32>
    %88 = tpu.matmul %86, %87, %cst_76 {dimension_numbers = #tpu.dot_dimension_numbers<[1], [0], [0], [1], [0, 0, 1, 1], [], []>} : vector<8x144xbf16>, vector<144x128xbf16>, vector<8x128xf32> -> vector<8x128xf32>
    %c0_77 = arith.constant 0 : index
    %c0_78 = arith.constant 0 : index
    %89 = vector.load %arg3[%c0_77, %c0_78] : memref<1x128xf32, #tpu.memory_space<vmem>>, vector<1x128xf32>
    %90 = vector.broadcast %89 : vector<1x128xf32> to vector<8x128xf32>
    %91 = arith.addf %88, %90 : vector<8x128xf32>
    %cst_79 = arith.constant 0.000000e+00 : f32
    %92 = vector.broadcast %cst_79 : f32 to vector<8x128xf32>
    %93 = arith.maximumf %91, %92 : vector<8x128xf32>
    %94 = arith.truncf %93 : vector<8x128xf32> to vector<8x128xbf16>
    %c6_80 = arith.constant 6 : index
    %c0_81 = arith.constant 0 : index
    %c0_82 = arith.constant 0 : index
    %95 = vector.load %arg4[%c6_80, %c0_81, %c0_82] : memref<9x128x128xbf16, #tpu.memory_space<vmem>>, vector<1x128x128xbf16>
    %96 = vector.shape_cast %95 : vector<1x128x128xbf16> to vector<128x128xbf16>
    %cst_83 = arith.constant dense<0.000000e+00> : vector<8x128xf32>
    %97 = tpu.matmul %94, %96, %cst_83 {dimension_numbers = #tpu.dot_dimension_numbers<[1], [0], [0], [1], [0, 0, 1, 1], [], []>} : vector<8x128xbf16>, vector<128x128xbf16>, vector<8x128xf32> -> vector<8x128xf32>
    %98 = arith.addf %84, %97 : vector<8x128xf32>
    %c7 = arith.constant 7 : index
    %c0_84 = arith.constant 0 : index
    %c0_85 = arith.constant 0 : index
    %99 = vector.load %arg1[%c7, %c0_84, %c0_85] : memref<9x8x144xbf16, #tpu.memory_space<vmem>>, vector<1x8x144xbf16>
    %100 = vector.shape_cast %99 : vector<1x8x144xbf16> to vector<8x144xbf16>
    %c0_86 = arith.constant 0 : index
    %c0_87 = arith.constant 0 : index
    %101 = vector.load %arg2[%c0_86, %c0_87] : memref<144x128xbf16, #tpu.memory_space<vmem>>, vector<144x128xbf16>
    %cst_88 = arith.constant dense<0.000000e+00> : vector<8x128xf32>
    %102 = tpu.matmul %100, %101, %cst_88 {dimension_numbers = #tpu.dot_dimension_numbers<[1], [0], [0], [1], [0, 0, 1, 1], [], []>} : vector<8x144xbf16>, vector<144x128xbf16>, vector<8x128xf32> -> vector<8x128xf32>
    %c0_89 = arith.constant 0 : index
    %c0_90 = arith.constant 0 : index
    %103 = vector.load %arg3[%c0_89, %c0_90] : memref<1x128xf32, #tpu.memory_space<vmem>>, vector<1x128xf32>
    %104 = vector.broadcast %103 : vector<1x128xf32> to vector<8x128xf32>
    %105 = arith.addf %102, %104 : vector<8x128xf32>
    %cst_91 = arith.constant 0.000000e+00 : f32
    %106 = vector.broadcast %cst_91 : f32 to vector<8x128xf32>
    %107 = arith.maximumf %105, %106 : vector<8x128xf32>
    %108 = arith.truncf %107 : vector<8x128xf32> to vector<8x128xbf16>
    %c7_92 = arith.constant 7 : index
    %c0_93 = arith.constant 0 : index
    %c0_94 = arith.constant 0 : index
    %109 = vector.load %arg4[%c7_92, %c0_93, %c0_94] : memref<9x128x128xbf16, #tpu.memory_space<vmem>>, vector<1x128x128xbf16>
    %110 = vector.shape_cast %109 : vector<1x128x128xbf16> to vector<128x128xbf16>
    %cst_95 = arith.constant dense<0.000000e+00> : vector<8x128xf32>
    %111 = tpu.matmul %108, %110, %cst_95 {dimension_numbers = #tpu.dot_dimension_numbers<[1], [0], [0], [1], [0, 0, 1, 1], [], []>} : vector<8x128xbf16>, vector<128x128xbf16>, vector<8x128xf32> -> vector<8x128xf32>
    %112 = arith.addf %98, %111 : vector<8x128xf32>
    %c8 = arith.constant 8 : index
    %c0_96 = arith.constant 0 : index
    %c0_97 = arith.constant 0 : index
    %113 = vector.load %arg1[%c8, %c0_96, %c0_97] : memref<9x8x144xbf16, #tpu.memory_space<vmem>>, vector<1x8x144xbf16>
    %114 = vector.shape_cast %113 : vector<1x8x144xbf16> to vector<8x144xbf16>
    %c0_98 = arith.constant 0 : index
    %c0_99 = arith.constant 0 : index
    %115 = vector.load %arg2[%c0_98, %c0_99] : memref<144x128xbf16, #tpu.memory_space<vmem>>, vector<144x128xbf16>
    %cst_100 = arith.constant dense<0.000000e+00> : vector<8x128xf32>
    %116 = tpu.matmul %114, %115, %cst_100 {dimension_numbers = #tpu.dot_dimension_numbers<[1], [0], [0], [1], [0, 0, 1, 1], [], []>} : vector<8x144xbf16>, vector<144x128xbf16>, vector<8x128xf32> -> vector<8x128xf32>
    %c0_101 = arith.constant 0 : index
    %c0_102 = arith.constant 0 : index
    %117 = vector.load %arg3[%c0_101, %c0_102] : memref<1x128xf32, #tpu.memory_space<vmem>>, vector<1x128xf32>
    %118 = vector.broadcast %117 : vector<1x128xf32> to vector<8x128xf32>
    %119 = arith.addf %116, %118 : vector<8x128xf32>
    %cst_103 = arith.constant 0.000000e+00 : f32
    %120 = vector.broadcast %cst_103 : f32 to vector<8x128xf32>
    %121 = arith.maximumf %119, %120 : vector<8x128xf32>
    %122 = arith.truncf %121 : vector<8x128xf32> to vector<8x128xbf16>
    %c8_104 = arith.constant 8 : index
    %c0_105 = arith.constant 0 : index
    %c0_106 = arith.constant 0 : index
    %123 = vector.load %arg4[%c8_104, %c0_105, %c0_106] : memref<9x128x128xbf16, #tpu.memory_space<vmem>>, vector<1x128x128xbf16>
    %124 = vector.shape_cast %123 : vector<1x128x128xbf16> to vector<128x128xbf16>
    %cst_107 = arith.constant dense<0.000000e+00> : vector<8x128xf32>
    %125 = tpu.matmul %122, %124, %cst_107 {dimension_numbers = #tpu.dot_dimension_numbers<[1], [0], [0], [1], [0, 0, 1, 1], [], []>} : vector<8x128xbf16>, vector<128x128xbf16>, vector<8x128xf32> -> vector<8x128xf32>
    %126 = arith.addf %112, %125 : vector<8x128xf32>
    %c0_108 = arith.constant 0 : index
    %c0_109 = arith.constant 0 : index
    %127 = vector.load %arg5[%c0_108, %c0_109] : memref<1x128xf32, #tpu.memory_space<vmem>>, vector<1x128xf32>
    %128 = vector.broadcast %127 : vector<1x128xf32> to vector<8x128xf32>
    %129 = arith.addf %126, %128 : vector<8x128xf32>
    %cst_110 = arith.constant 0.000000e+00 : f32
    %130 = vector.broadcast %cst_110 : f32 to vector<8x128xf32>
    %131 = arith.maximumf %129, %130 : vector<8x128xf32>
    %132 = arith.truncf %131 : vector<8x128xf32> to vector<8x128xbf16>
    %c0_111 = arith.constant 0 : index
    %c0_112 = arith.constant 0 : index
    %133 = vector.load %arg6[%c0_111, %c0_112] : memref<128x128xbf16, #tpu.memory_space<vmem>>, vector<128x128xbf16>
    %cst_113 = arith.constant dense<0.000000e+00> : vector<8x128xf32>
    %134 = tpu.matmul %132, %133, %cst_113 {dimension_numbers = #tpu.dot_dimension_numbers<[1], [0], [0], [1], [0, 0, 1, 1], [], []>} : vector<8x128xbf16>, vector<128x128xbf16>, vector<8x128xf32> -> vector<8x128xf32>
    %c0_114 = arith.constant 0 : index
    %c0_115 = arith.constant 0 : index
    %135 = vector.load %arg7[%c0_114, %c0_115] : memref<1x128xf32, #tpu.memory_space<vmem>>, vector<1x128xf32>
    %136 = vector.broadcast %135 : vector<1x128xf32> to vector<8x128xf32>
    %137 = arith.addf %134, %136 : vector<8x128xf32>
    %c0_116 = arith.constant 0 : index
    %c0_117 = arith.constant 0 : index
    %138 = vector.load %arg8[%c0_116, %c0_117] : memref<8x128xf32, #tpu.memory_space<vmem>>, vector<8x128xf32>
    tpu.vector_store %arg8[%c0_116, %c0_117], %137 {strides = array<i32>} : memref<8x128xf32, #tpu.memory_space<vmem>>, vector<8x128xf32>,
    return
  }
  func.func @transform_0(%arg0: i32) -> (i32, i32, i32) {
    %c0_i32 = arith.constant 0 : i32
    %c0_i32_0 = arith.constant 0 : i32
    %c0_i32_1 = arith.constant 0 : i32
    return %c0_i32, %arg0, %c0_i32_0 : i32, i32, i32
  }
  func.func @transform_1(%arg0: i32) -> (i32, i32) {
    %c0_i32 = arith.constant 0 : i32
    %c0_i32_0 = arith.constant 0 : i32
    %c0_i32_1 = arith.constant 0 : i32
    return %c0_i32, %c0_i32_0 : i32, i32
  }
  func.func @transform_2(%arg0: i32) -> (i32, i32) {
    %c0_i32 = arith.constant 0 : i32
    %c0_i32_0 = arith.constant 0 : i32
    %c0_i32_1 = arith.constant 0 : i32
    return %c0_i32, %c0_i32_0 : i32, i32
  }
  func.func @transform_3(%arg0: i32) -> (i32, i32, i32) {
    %c0_i32 = arith.constant 0 : i32
    %c0_i32_0 = arith.constant 0 : i32
    %c0_i32_1 = arith.constant 0 : i32
    %c0_i32_2 = arith.constant 0 : i32
    return %c0_i32, %c0_i32_0, %c0_i32_1 : i32, i32, i32
  }
  func.func @transform_4(%arg0: i32) -> (i32, i32) {
    %c0_i32 = arith.constant 0 : i32
    %c0_i32_0 = arith.constant 0 : i32
    %c0_i32_1 = arith.constant 0 : i32
    return %c0_i32, %c0_i32_0 : i32, i32
  }
  func.func @transform_5(%arg0: i32) -> (i32, i32) {
    %c0_i32 = arith.constant 0 : i32
    %c0_i32_0 = arith.constant 0 : i32
    %c0_i32_1 = arith.constant 0 : i32
    return %c0_i32, %c0_i32_0 : i32, i32
  }
  func.func @transform_6(%arg0: i32) -> (i32, i32) {
    %c0_i32 = arith.constant 0 : i32
    %c0_i32_0 = arith.constant 0 : i32
    %c0_i32_1 = arith.constant 0 : i32
    return %c0_i32, %c0_i32_0 : i32, i32
  }
  func.func @transform_7(%arg0: i32) -> (i32, i32) {
    %c0_i32 = arith.constant 0 : i32
    %c0_i32_0 = arith.constant 0 : i32
    return %arg0, %c0_i32 : i32, i32
  }
}

</mosaic_0001>

<bundles_post_ra>
// kernel: net_forward.3
= control target key start
LH: loop header
LB: loop body
LE: loop exit
PB: predicated region body
PF: predicated region fallthrough
CT: control target
= control target key end

     0   :  { %vm278_vm0 = vcmask 1043456   ;;  %vm279_vm1 = vcmask 1044480   ;;  %v4890_v0 = vmov 0.0   ;;  %v3680_v2 = vmov 65535   ;;  %s4886_s1 = inlined_call_operand.vmem [shape: bf16[25,128], index: 1, kind: input, shape index: {}]   ;;  %s4887_s0 = inlined_call_operand.vmem [shape: bf16[4,392,25], index: 0, kind: input, shape index: {}]   ;;  %s4888_s2 = inlined_call_operand.vmem [shape: f32[1,128], index: 2, kind: input, shape index: {}]   ;;  %s4889_s3 = inlined_call_operand.vmem [shape: bf16[392,128], index: 3, kind: output, shape index: {}]  }
   0x1   :  { %3158 = vmatprep.subr.bf16.mxu0 %v4890_v0  ;;  %3262 = vmatprep.subr.bf16.mxu1 %v4890_v0  ;;  %v3577_v1 = vld [vmem:[%s4886_s1 + $0x8] sm:$0x1f]   ;;  %v280_v3 = vsel %vm278_vm0, 4294967295, %v3680_v2  ;;  %vm3681_vm2 = vmmov 0   ;;  %v3578_v6 = vld [vmem:[%s4886_s1] sm:$0xff]   ;;  %vm202_vm3 = vcmask 203776  }
   0x2   :  { %v281_v4 = vsel %vm279_vm1, %v280_v3, 0  ;;  %3162 = vmatprep.mubr.msk.bf16.mxu0 %vm3681_vm2, %v4890_v0  ;;  %3266 = vmatprep.mubr.msk.bf16.mxu1 %vm3681_vm2, %v4890_v0  ;;  %v3579_v7 = vld [vmem:[%s4887_s0] sm:$0xff]   ;;  %v3581_v9 = vld [vmem:[%s4887_s0 + $0x8] sm:$0xff]   ;;  %v3583_v11 = vld [vmem:[%s4887_s0 + $0x10] sm:$0xff]  }
   0x3   :  { %v283_v5 = vand.u32 %v3577_v1, %v281_v4  ;;  %v3580_v8 = vld [vmem:[%s4887_s0 + $0xc4] sm:$0xff]   ;;  %v3582_v10 = vld [vmem:[%s4887_s0 + $0xcc] sm:$0xff]   ;;  %v3584_v12 = vld [vmem:[%s4887_s0 + $0xd4] sm:$0xff]  }
   0x4   :  { %v3585_v13 = vld [vmem:[%s4887_s0 + $0x18] sm:$0xff]   ;;  %v3587_v15 = vld [vmem:[%s4887_s0 + $0x20] sm:$0xff]   ;;  %v3589_v17 = vld [vmem:[%s4887_s0 + $0x28] sm:$0xff]  }
   0x5   :  { %3159 = vmatpush3.bf16.msra.mxu0 %v283_v5  ;;  %3263 = vmatpush3.bf16.msra.mxu1 %v283_v5  ;;  %v3586_v14 = vld [vmem:[%s4887_s0 + $0xdc] sm:$0xff]   ;;  %v3588_v16 = vld [vmem:[%s4887_s0 + $0xe4] sm:$0xff]   ;;  %v3590_v18 = vld [vmem:[%s4887_s0 + $0xec] sm:$0xff]  }
   0x6   :  { %3160 = vmatprep.subr.bf16.mxu0 %v4890_v0  ;;  %3264 = vmatprep.subr.bf16.mxu1 %v4890_v0  ;;  %v3591_v19 = vld [vmem:[%s4887_s0 + $0x30] sm:$0xff]   ;;  %v3593_v21 = vld [vmem:[%s4887_s0 + $0x38] sm:$0xff]   ;;  %v3595_v23 = vld [vmem:[%s4887_s0 + $0x40] sm:$0xff]  }
   0x7   :  { %v3592_v20 = vld [vmem:[%s4887_s0 + $0xf4] sm:$0xff]   ;;  %v3594_v22 = vld [vmem:[%s4887_s0 + $0xfc] sm:$0xff]   ;;  %v3596_v24 = vld [vmem:[%s4887_s0 + $0x104] sm:$0xff]  }
   0x8   :  { %v3597_v25 = vld [vmem:[%s4887_s0 + $0x48] sm:$0xff]   ;;  %v3599_v27 = vld [vmem:[%s4887_s0 + $0x50] sm:$0xff]   ;;  %v3601_v29 = vld [vmem:[%s4887_s0 + $0x58] sm:$0xff]  }
   0x9   :  { %3161 = vmatpush3.bf16.msra.mxu0 %v3578_v6  ;;  %3265 = vmatpush3.bf16.msra.mxu1 %v3578_v6  ;;  %v3598_v26 = vld [vmem:[%s4887_s0 + $0x10c] sm:$0xff]   ;;  %v3600_v28 = vld [vmem:[%s4887_s0 + $0x114] sm:$0xff]   ;;  %v3602_v30 = vld [vmem:[%s4887_s0 + $0x11c] sm:$0xff]  }
   0xa   :  { %3366 = vmatprep.subr.bf16.mxu0 %v4890_v0  ;;  %3470 = vmatprep.subr.bf16.mxu1 %v4890_v0  ;;  %v3603_v31 = vld [vmem:[%s4887_s0 + $0x60] sm:$0xff]   ;;  %v3605_v33 = vld [vmem:[%s4887_s0 + $0x68] sm:$0xff]   ;;  %v3607_v35 = vld [vmem:[%s4887_s0 + $0x70] sm:$0xff]  }
   0xb   :  { %v3604_v32 = vld [vmem:[%s4887_s0 + $0x124] sm:$0xff]   ;;  %v3606_v34 = vld [vmem:[%s4887_s0 + $0x12c] sm:$0xff]   ;;  %v3608_v36 = vld [vmem:[%s4887_s0 + $0x134] sm:$0xff]  }
   0xc   :  { %3163 = vmatmul.mubr.msk.bf16.vlgmr.msra.gmra.mxu0 %vm202_vm3, %v3579_v7  ;;  %3267 = vmatmul.mubr.msk.bf16.vlgmr.msra.gmra.mxu1 %vm202_vm3, %v3580_v8  ;;  %v3609_v37 = vld [vmem:[%s4887_s0 + $0x78] sm:$0xff]   ;;  %v3611_v39 = vld [vmem:[%s4887_s0 + $0x80] sm:$0xff]   ;;  %v3613_v41 = vld [vmem:[%s4887_s0 + $0x88] sm:$0xff]  }
   0xd   :  { %3367 = vmatpush3.bf16.msra.mxu0 %v283_v5  ;;  %3471 = vmatpush3.bf16.msra.mxu1 %v283_v5  ;;  %v3610_v38 = vld [vmem:[%s4887_s0 + $0x13c] sm:$0xff]   ;;  %v3612_v40 = vld [vmem:[%s4887_s0 + $0x144] sm:$0xff]   ;;  %v3614_v42 = vld [vmem:[%s4887_s0 + $0x14c] sm:$0xff]  }
   0xe   :  { %3166 = vmatprep.mubr.msk.bf16.mxu0 %vm3681_vm2, %v4890_v0  ;;  %3270 = vmatprep.mubr.msk.bf16.mxu1 %vm3681_vm2, %v4890_v0  ;;  %v3615_v43 = vld [vmem:[%s4887_s0 + $0x90] sm:$0xff]   ;;  %v3617_v45 = vld [vmem:[%s4887_s0 + $0x98] sm:$0xff]   ;;  %v3619_v47 = vld [vmem:[%s4887_s0 + $0xa0] sm:$0xff]  }
   0xf   :  { %3368 = vmatprep.subr.bf16.mxu0 %v4890_v0  ;;  %3472 = vmatprep.subr.bf16.mxu1 %v4890_v0  ;;  %v3616_v44 = vld [vmem:[%s4887_s0 + $0x154] sm:$0xff]   ;;  %v3618_v46 = vld [vmem:[%s4887_s0 + $0x15c] sm:$0xff]   ;;  %v3620_v48 = vld [vmem:[%s4887_s0 + $0x164] sm:$0xff]  }
  0x10   :  { %v3621_v49 = vld [vmem:[%s4887_s0 + $0xa8] sm:$0xff]   ;;  %v3623_v51 = vld [vmem:[%s4887_s0 + $0xb0] sm:$0xff]   ;;  %v3625_v53 = vld [vmem:[%s4887_s0 + $0xb8] sm:$0xff]  }
  0x11   :  { %3369 = vmatpush3.bf16.msra.mxu0 %v3578_v6  ;;  %3473 = vmatpush3.bf16.msra.mxu1 %v3578_v6  ;;  %v3622_v50 = vld [vmem:[%s4887_s0 + $0x16c] sm:$0xff]   ;;  %v3624_v52 = vld [vmem:[%s4887_s0 + $0x174] sm:$0xff]   ;;  %v3626_v54 = vld [vmem:[%s4887_s0 + $0x17c] sm:$0xff]  }
  0x12   :  { %v3627_v55 = vld [vmem:[%s4887_s0 + $0xc0] ss:$0 sps:$4 sm:$0xff]   ;;  %v3628_v56 = vld [vmem:[%s4887_s0 + $0x184] ss:$0 sps:$4 sm:$0xff]   ;;  %v3629_v1 = vld [vmem:[%s4887_s0 + $0x188] sm:$0xff]  }
  0x13   :  { %v3630_v2 = vld [vmem:[%s4887_s0 + $0x24c] sm:$0xff]  }
  0x14   :  { %3167 = vmatmul.mubr.msk.bf16.gmra.mxu0 %vm202_vm3, %v3581_v9  ;;  %3271 = vmatmul.mubr.msk.bf16.gmra.mxu1 %vm202_vm3, %v3582_v10 }
  0x15   :  { %3170 = vmatprep.mubr.msk.bf16.mxu0 %vm3681_vm2, %v4890_v0  ;;  %3274 = vmatprep.mubr.msk.bf16.mxu1 %vm3681_vm2, %v4890_v0 }
  0x1c   :  { %3171 = vmatmul.mubr.msk.bf16.gmra.mxu0 %vm202_vm3, %v3583_v11  ;;  %3275 = vmatmul.mubr.msk.bf16.gmra.mxu1 %vm202_vm3, %v3584_v12 }
  0x1d   :  { %3174 = vmatprep.mubr.msk.bf16.mxu0 %vm3681_vm2, %v4890_v0  ;;  %3278 = vmatprep.mubr.msk.bf16.mxu1 %vm3681_vm2, %v4890_v0 }
  0x24   :  { %3175 = vmatmul.mubr.msk.bf16.gmra.mxu0 %vm202_vm3, %v3585_v13  ;;  %3279 = vmatmul.mubr.msk.bf16.gmra.mxu1 %vm202_vm3, %v3586_v14  ;;  %v3631_v13 = vld [vmem:[%s4887_s0 + $0x190] sm:$0xff]  }
  0x25   :  { %3178 = vmatprep.mubr.msk.bf16.mxu0 %vm3681_vm2, %v4890_v0  ;;  %3282 = vmatprep.mubr.msk.bf16.mxu1 %vm3681_vm2, %v4890_v0  ;;  %v3632_v14 = vld [vmem:[%s4887_s0 + $0x254] sm:$0xff]  }
  0x2c   :  { %3179 = vmatmul.mubr.msk.bf16.gmra.mxu0 %vm202_vm3, %v3587_v15  ;;  %3283 = vmatmul.mubr.msk.bf16.gmra.mxu1 %vm202_vm3, %v3588_v16 }
  0x2d   :  { %3182 = vmatprep.mubr.msk.bf16.mxu0 %vm3681_vm2, %v4890_v0  ;;  %3286 = vmatprep.mubr.msk.bf16.mxu1 %vm3681_vm2, %v4890_v0 }
  0x34   :  { %3183 = vmatmul.mubr.msk.bf16.gmra.mxu0 %vm202_vm3, %v3589_v17  ;;  %3287 = vmatmul.mubr.msk.bf16.gmra.mxu1 %vm202_vm3, %v3590_v18 }
  0x35   :  { %3186 = vmatprep.mubr.msk.bf16.mxu0 %vm3681_vm2, %v4890_v0  ;;  %3290 = vmatprep.mubr.msk.bf16.mxu1 %vm3681_vm2, %v4890_v0 }
  0x3c   :  { %3187 = vmatmul.mubr.msk.bf16.gmra.mxu0 %vm202_vm3, %v3591_v19  ;;  %3291 = vmatmul.mubr.msk.bf16.gmra.mxu1 %vm202_vm3, %v3592_v20 }
  0x3d   :  { %3190 = vmatprep.mubr.msk.bf16.mxu0 %vm3681_vm2, %v4890_v0  ;;  %3294 = vmatprep.mubr.msk.bf16.mxu1 %vm3681_vm2, %v4890_v0 }
  0x44   :  { %3191 = vmatmul.mubr.msk.bf16.gmra.mxu0 %vm202_vm3, %v3593_v21  ;;  %3295 = vmatmul.mubr.msk.bf16.gmra.mxu1 %vm202_vm3, %v3594_v22 }
  0x45   :  { %3194 = vmatprep.mubr.msk.bf16.mxu0 %vm3681_vm2, %v4890_v0  ;;  %3298 = vmatprep.mubr.msk.bf16.mxu1 %vm3681_vm2, %v4890_v0 }
  0x4c   :  { %3195 = vmatmul.mubr.msk.bf16.gmra.mxu0 %vm202_vm3, %v3595_v23  ;;  %3299 = vmatmul.mubr.msk.bf16.gmra.mxu1 %vm202_vm3, %v3596_v24 }
  0x4d   :  { %3198 = vmatprep.mubr.msk.bf16.mxu0 %vm3681_vm2, %v4890_v0  ;;  %3302 = vmatprep.mubr.msk.bf16.mxu1 %vm3681_vm2, %v4890_v0 }
  0x54   :  { %3199 = vmatmul.mubr.msk.bf16.gmra.mxu0 %vm202_vm3, %v3597_v25  ;;  %3303 = vmatmul.mubr.msk.bf16.gmra.mxu1 %vm202_vm3, %v3598_v26  ;;  %v3633_v25 = vld [vmem:[%s4887_s0 + $0x198] sm:$0xff]  }
  0x55   :  { %3202 = vmatprep.mubr.msk.bf16.mxu0 %vm3681_vm2, %v4890_v0  ;;  %3306 = vmatprep.mubr.msk.bf16.mxu1 %vm3681_vm2, %v4890_v0  ;;  %v3634_v26 = vld [vmem:[%s4887_s0 + $0x25c] sm:$0xff]  }
  0x5c   :  { %3203 = vmatmul.mubr.msk.bf16.gmra.mxu0 %vm202_vm3, %v3599_v27  ;;  %3307 = vmatmul.mubr.msk.bf16.gmra.mxu1 %vm202_vm3, %v3600_v28 }
  0x5d   :  { %3206 = vmatprep.mubr.msk.bf16.mxu0 %vm3681_vm2, %v4890_v0  ;;  %3310 = vmatprep.mubr.msk.bf16.mxu1 %vm3681_vm2, %v4890_v0 }
  0x64   :  { %3207 = vmatmul.mubr.msk.bf16.gmra.mxu0 %vm202_vm3, %v3601_v29  ;;  %3311 = vmatmul.mubr.msk.bf16.gmra.mxu1 %vm202_vm3, %v3602_v30 }
  0x65   :  { %3210 = vmatprep.mubr.msk.bf16.mxu0 %vm3681_vm2, %v4890_v0  ;;  %3314 = vmatprep.mubr.msk.bf16.mxu1 %vm3681_vm2, %v4890_v0 }
  0x6c   :  { %3211 = vmatmul.mubr.msk.bf16.gmra.mxu0 %vm202_vm3, %v3603_v31  ;;  %3315 = vmatmul.mubr.msk.bf16.gmra.mxu1 %vm202_vm3, %v3604_v32 }
  0x6d   :  { %3214 = vmatprep.mubr.msk.bf16.mxu0 %vm3681_vm2, %v4890_v0  ;;  %3318 = vmatprep.mubr.msk.bf16.mxu1 %vm3681_vm2, %v4890_v0 }
  0x74   :  { %3215 = vmatmul.mubr.msk.bf16.gmra.mxu0 %vm202_vm3, %v3605_v33  ;;  %3319 = vmatmul.mubr.msk.bf16.gmra.mxu1 %vm202_vm3, %v3606_v34 }
  0x75   :  { %3218 = vmatprep.mubr.msk.bf16.mxu0 %vm3681_vm2, %v4890_v0  ;;  %3322 = vmatprep.mubr.msk.bf16.mxu1 %vm3681_vm2, %v4890_v0 }
  0x7c   :  { %3219 = vmatmul.mubr.msk.bf16.gmra.mxu0 %vm202_vm3, %v3607_v35  ;;  %3323 = vmatmul.mubr.msk.bf16.gmra.mxu1 %vm202_vm3, %v3608_v36 }
  0x7d   :  { %3222 = vmatprep.mubr.msk.bf16.mxu0 %vm3681_vm2, %v4890_v0  ;;  %3326 = vmatprep.mubr.msk.bf16.mxu1 %vm3681_vm2, %v4890_v0 }
  0x84   :  { %3223 = vmatmul.mubr.msk.bf16.gmra.mxu0 %vm202_vm3, %v3609_v37  ;;  %3327 = vmatmul.mubr.msk.bf16.gmra.mxu1 %vm202_vm3, %v3610_v38  ;;  %v3635_v37 = vld [vmem:[%s4887_s0 + $0x1a0] sm:$0xff]  }
  0x85   :  { %3226 = vmatprep.mubr.msk.bf16.mxu0 %vm3681_vm2, %v4890_v0  ;;  %3330 = vmatprep.mubr.msk.bf16.mxu1 %vm3681_vm2, %v4890_v0  ;;  %v3636_v38 = vld [vmem:[%s4887_s0 + $0x264] sm:$0xff]  }
  0x8c   :  { %3227 = vmatmul.mubr.msk.bf16.gmra.mxu0 %vm202_vm3, %v3611_v39  ;;  %3331 = vmatmul.mubr.msk.bf16.gmra.mxu1 %vm202_vm3, %v3612_v40 }
  0x8d   :  { %3230 = vmatprep.mubr.msk.bf16.mxu0 %vm3681_vm2, %v4890_v0  ;;  %3334 = vmatprep.mubr.msk.bf16.mxu1 %vm3681_vm2, %v4890_v0 }
  0x94   :  { %3231 = vmatmul.mubr.msk.bf16.gmra.mxu0 %vm202_vm3, %v3613_v41  ;;  %3335 = vmatmul.mubr.msk.bf16.gmra.mxu1 %vm202_vm3, %v3614_v42 }
  0x95   :  { %3234 = vmatprep.mubr.msk.bf16.mxu0 %vm3681_vm2, %v4890_v0  ;;  %3338 = vmatprep.mubr.msk.bf16.mxu1 %vm3681_vm2, %v4890_v0 }
  0x9c   :  { %3235 = vmatmul.mubr.msk.bf16.gmra.mxu0 %vm202_vm3, %v3615_v43  ;;  %3339 = vmatmul.mubr.msk.bf16.gmra.mxu1 %vm202_vm3, %v3616_v44 }
  0x9d   :  { %3238 = vmatprep.mubr.msk.bf16.mxu0 %vm3681_vm2, %v4890_v0  ;;  %3342 = vmatprep.mubr.msk.bf16.mxu1 %vm3681_vm2, %v4890_v0 }
  0xa4   :  { %3239 = vmatmul.mubr.msk.bf16.gmra.mxu0 %vm202_vm3, %v3617_v45  ;;  %3343 = vmatmul.mubr.msk.bf16.gmra.mxu1 %vm202_vm3, %v3618_v46 }
  0xa5   :  { %3242 = vmatprep.mubr.msk.bf16.mxu0 %vm3681_vm2, %v4890_v0  ;;  %3346 = vmatprep.mubr.msk.bf16.mxu1 %vm3681_vm2, %v4890_v0 }
  0xac   :  { %3243 = vmatmul.mubr.msk.bf16.gmra.mxu0 %vm202_vm3, %v3619_v47  ;;  %3347 = vmatmul.mubr.msk.bf16.gmra.mxu1 %vm202_vm3, %v3620_v48 }
  0xad   :  { %3246 = vmatprep.mubr.msk.bf16.mxu0 %vm3681_vm2, %v4890_v0  ;;  %3350 = vmatprep.mubr.msk.bf16.mxu1 %vm3681_vm2, %v4890_v0 }
  0xb4   :  { %3247 = vmatmul.mubr.msk.bf16.gmra.mxu0 %vm202_vm3, %v3621_v49  ;;  %3351 = vmatmul.mubr.msk.bf16.gmra.mxu1 %vm202_vm3, %v3622_v50  ;;  %v3637_v49 = vld [vmem:[%s4887_s0 + $0x1a8] sm:$0xff]  }
  0xb5   :  { %3250 = vmatprep.mubr.msk.bf16.mxu0 %vm3681_vm2, %v4890_v0  ;;  %3354 = vmatprep.mubr.msk.bf16.mxu1 %vm3681_vm2, %v4890_v0  ;;  %v3638_v50 = vld [vmem:[%s4887_s0 + $0x26c] sm:$0xff]  }
  0xbc   :  { %3251 = vmatmul.mubr.msk.bf16.gmra.mxu0 %vm202_vm3, %v3623_v51  ;;  %3355 = vmatmul.mubr.msk.bf16.gmra.mxu1 %vm202_vm3, %v3624_v52 }
  0xbd   :  { %3254 = vmatprep.mubr.msk.bf16.mxu0 %vm3681_vm2, %v4890_v0  ;;  %3358 = vmatprep.mubr.msk.bf16.mxu1 %vm3681_vm2, %v4890_v0 }
  0xc4   :  { %3255 = vmatmul.mubr.msk.bf16.gmra.mxu0 %vm202_vm3, %v3625_v53  ;;  %3359 = vmatmul.mubr.msk.bf16.gmra.mxu1 %vm202_vm3, %v3626_v54 }
  0xc5   :  { %3258 = vmatprep.mubr.msk.bf16.mxu0 %vm3681_vm2, %v4890_v0  ;;  %3362 = vmatprep.mubr.msk.bf16.mxu1 %vm3681_vm2, %v4890_v0 }
  0xcc   :  { %v4014_v57 = vpop.f32.mrf.mxu0  ;;  %3259 = vmatmul.mubr.msk.bf16.gmra.mxu0 %vm202_vm3, %v3627_v55  ;;  %v4017_v58 = vpop.f32.mrf.mxu1  ;;  %3363 = vmatmul.mubr.msk.bf16.gmra.mxu1 %vm202_vm3, %v3628_v56 }
  0xcd   :  { %3370 = vmatprep.mubr.msk.bf16.mxu0 %vm3681_vm2, %v4890_v0  ;;  %3474 = vmatprep.mubr.msk.bf16.mxu1 %vm3681_vm2, %v4890_v0 }
  0xce   :  { %v3164_v60 = vpop.f32.mrf.mxu0  ;;  %v3268_v61 = vpop.f32.mrf.mxu1 }
  0xd0   :  { %v4026_v62 = vpop.f32.mrf.mxu0  ;;  %v4028_v63 = vpop.f32.mrf.mxu1 }
  0xd2   :  { %v3165_v4 = vpop.f32.mrf.mxu0  ;;  %v3269_v5 = vpop.f32.mrf.mxu1 }
  0xd3   :  { %v3639_v4 = vld [vmem:[%s4887_s0 + $0x1b0] sm:$0xff]  }
  0xd4   :  { %v4038_v6 = vpop.f32.mrf.mxu0  ;;  %v4040_v7 = vpop.f32.mrf.mxu1  ;;  %3371 = vmatmul.mubr.msk.bf16.vlgmr.msra.gmra.mxu0 %vm202_vm3, %v3629_v1  ;;  %3475 = vmatmul.mubr.msk.bf16.vlgmr.msra.gmra.mxu1 %vm202_vm3, %v3630_v2  ;;  %v3640_v5 = vld [vmem:[%s4887_s0 + $0x274] sm:$0xff]  }
  0xd5   :  { %3374 = vmatprep.mubr.msk.bf16.mxu0 %vm3681_vm2, %v4890_v0  ;;  %3478 = vmatprep.mubr.msk.bf16.mxu1 %vm3681_vm2, %v4890_v0 }
  0xd6   :  { %v3168_v9 = vpop.f32.mrf.mxu0  ;;  %v3272_v10 = vpop.f32.mrf.mxu1 }
  0xd8   :  { %v4050_v11 = vpop.f32.mrf.mxu0  ;;  %v4052_v12 = vpop.f32.mrf.mxu1 }
  0xda   :  { %v3169_v16 = vpop.f32.mrf.mxu0  ;;  %v3273_v17 = vpop.f32.mrf.mxu1 }
  0xdc   :  { %v4062_v18 = vpop.f32.mrf.mxu0  ;;  %v4064_v19 = vpop.f32.mrf.mxu1  ;;  %3375 = vmatmul.mubr.msk.bf16.gmra.mxu0 %vm202_vm3, %v3631_v13  ;;  %3479 = vmatmul.mubr.msk.bf16.gmra.mxu1 %vm202_vm3, %v3632_v14 }
  0xdd   :  { %3378 = vmatprep.mubr.msk.bf16.mxu0 %vm3681_vm2, %v4890_v0  ;;  %3482 = vmatprep.mubr.msk.bf16.mxu1 %vm3681_vm2, %v4890_v0 }
  0xde   :  { %v3172_v21 = vpop.f32.mrf.mxu0  ;;  %v3276_v22 = vpop.f32.mrf.mxu1 }
  0xe0   :  { %v4074_v23 = vpop.f32.mrf.mxu0  ;;  %v4076_v24 = vpop.f32.mrf.mxu1 }
  0xe2   :  { %v3173_v28 = vpop.f32.mrf.mxu0  ;;  %v3277_v29 = vpop.f32.mrf.mxu1 }
  0xe3   :  { %v3641_v28 = vld [vmem:[%s4887_s0 + $0x1b8] sm:$0xff]  }
  0xe4   :  { %v4086_v30 = vpop.f32.mrf.mxu0  ;;  %v4088_v31 = vpop.f32.mrf.mxu1  ;;  %3379 = vmatmul.mubr.msk.bf16.gmra.mxu0 %vm202_vm3, %v3633_v25  ;;  %3483 = vmatmul.mubr.msk.bf16.gmra.mxu1 %vm202_vm3, %v3634_v26  ;;  %v3642_v29 = vld [vmem:[%s4887_s0 + $0x27c] sm:$0xff]  }
  0xe5   :  { %3382 = vmatprep.mubr.msk.bf16.mxu0 %vm3681_vm2, %v4890_v0  ;;  %3486 = vmatprep.mubr.msk.bf16.mxu1 %vm3681_vm2, %v4890_v0 }
  0xe6   :  { %v3176_v33 = vpop.f32.mrf.mxu0  ;;  %v3280_v34 = vpop.f32.mrf.mxu1 }
  0xe8   :  { %v4098_v35 = vpop.f32.mrf.mxu0  ;;  %v4100_v36 = vpop.f32.mrf.mxu1 }
  0xea   :  { %v3177_v40 = vpop.f32.mrf.mxu0  ;;  %v3281_v41 = vpop.f32.mrf.mxu1 }
  0xec   :  { %v4110_v42 = vpop.f32.mrf.mxu0  ;;  %v4112_v43 = vpop.f32.mrf.mxu1  ;;  %3383 = vmatmul.mubr.msk.bf16.gmra.mxu0 %vm202_vm3, %v3635_v37  ;;  %3487 = vmatmul.mubr.msk.bf16.gmra.mxu1 %vm202_vm3, %v3636_v38 }
  0xed   :  { %3386 = vmatprep.mubr.msk.bf16.mxu0 %vm3681_vm2, %v4890_v0  ;;  %3490 = vmatprep.mubr.msk.bf16.mxu1 %vm3681_vm2, %v4890_v0 }
  0xee   :  { %v3180_v45 = vpop.f32.mrf.mxu0  ;;  %v3284_v46 = vpop.f32.mrf.mxu1 }
  0xf0   :  { %v4122_v47 = vpop.f32.mrf.mxu0  ;;  %v4124_v48 = vpop.f32.mrf.mxu1 }
  0xf2   :  { %v3181_v52 = vpop.f32.mrf.mxu0  ;;  %v3285_v53 = vpop.f32.mrf.mxu1 }
  0xf3   :  { %v3643_v52 = vld [vmem:[%s4887_s0 + $0x1c0] sm:$0xff]  }
  0xf4   :  { %v4134_v54 = vpop.f32.mrf.mxu0  ;;  %v4136_v55 = vpop.f32.mrf.mxu1  ;;  %3387 = vmatmul.mubr.msk.bf16.gmra.mxu0 %vm202_vm3, %v3637_v49  ;;  %3491 = vmatmul.mubr.msk.bf16.gmra.mxu1 %vm202_vm3, %v3638_v50  ;;  %v3644_v53 = vld [vmem:[%s4887_s0 + $0x284] sm:$0xff]  }
  0xf5   :  { %3390 = vmatprep.mubr.msk.bf16.mxu0 %vm3681_vm2, %v4890_v0  ;;  %3494 = vmatprep.mubr.msk.bf16.mxu1 %vm3681_vm2, %v4890_v0 }
  0xf6   :  { %v3184_v60 = vpop.f32.mrf.mxu0  ;;  %v3288_v61 = vpop.f32.mrf.mxu1 }
  0xf8   :  { %v4146_v1 = vpop.f32.mrf.mxu0  ;;  %v4148_v2 = vpop.f32.mrf.mxu1 }
  0xfa   :  { %v3185_v10 = vpop.f32.mrf.mxu0  ;;  %v3289_v13 = vpop.f32.mrf.mxu1 }
  0xfc   :  { %v4158_v14 = vpop.f32.mrf.mxu0  ;;  %v4160_v16 = vpop.f32.mrf.mxu1  ;;  %3391 = vmatmul.mubr.msk.bf16.gmra.mxu0 %vm202_vm3, %v3639_v4  ;;  %3495 = vmatmul.mubr.msk.bf16.gmra.mxu1 %vm202_vm3, %v3640_v5 }
  0xfd   :  { %3394 = vmatprep.mubr.msk.bf16.mxu0 %vm3681_vm2, %v4890_v0  ;;  %3498 = vmatprep.mubr.msk.bf16.mxu1 %vm3681_vm2, %v4890_v0 }
  0xfe   :  { %v3188_v21 = vpop.f32.mrf.mxu0  ;;  %v3292_v22 = vpop.f32.mrf.mxu1 }
 0x100   :  { %v4170_v25 = vpop.f32.mrf.mxu0  ;;  %v4172_v26 = vpop.f32.mrf.mxu1 }
 0x102   :  { %v3189_v34 = vpop.f32.mrf.mxu0  ;;  %v3293_v37 = vpop.f32.mrf.mxu1 }
 0x103   :  { %v3645_v34 = vld [vmem:[%s4887_s0 + $0x1c8] sm:$0xff]  }
 0x104   :  { %v4182_v38 = vpop.f32.mrf.mxu0  ;;  %v4184_v40 = vpop.f32.mrf.mxu1  ;;  %3395 = vmatmul.mubr.msk.bf16.gmra.mxu0 %vm202_vm3, %v3641_v28  ;;  %3499 = vmatmul.mubr.msk.bf16.gmra.mxu1 %vm202_vm3, %v3642_v29  ;;  %v3646_v37 = vld [vmem:[%s4887_s0 + $0x28c] sm:$0xff]  }
 0x105   :  { %3398 = vmatprep.mubr.msk.bf16.mxu0 %vm3681_vm2, %v4890_v0  ;;  %3502 = vmatprep.mubr.msk.bf16.mxu1 %vm3681_vm2, %v4890_v0 }
 0x106   :  { %v3192_v45 = vpop.f32.mrf.mxu0  ;;  %v3296_v46 = vpop.f32.mrf.mxu1 }
 0x108   :  { %v4194_v49 = vpop.f32.mrf.mxu0  ;;  %v4196_v50 = vpop.f32.mrf.mxu1 }
 0x10a   :  { %v3193_v61 = vpop.f32.mrf.mxu0  ;;  %v3297_v4 = vpop.f32.mrf.mxu1 }
 0x10c   :  { %v4206_v5 = vpop.f32.mrf.mxu0  ;;  %v4208_v10 = vpop.f32.mrf.mxu1  ;;  %3399 = vmatmul.mubr.msk.bf16.gmra.mxu0 %vm202_vm3, %v3643_v52  ;;  %3503 = vmatmul.mubr.msk.bf16.gmra.mxu1 %vm202_vm3, %v3644_v53 }
 0x10d   :  { %3402 = vmatprep.mubr.msk.bf16.mxu0 %vm3681_vm2, %v4890_v0  ;;  %3506 = vmatprep.mubr.msk.bf16.mxu1 %vm3681_vm2, %v4890_v0 }
 0x10e   :  { %v3196_v21 = vpop.f32.mrf.mxu0  ;;  %v3300_v22 = vpop.f32.mrf.mxu1 }
 0x110   :  { %v4218_v28 = vpop.f32.mrf.mxu0  ;;  %v4220_v29 = vpop.f32.mrf.mxu1 }
 0x112   :  { %v3197_v46 = vpop.f32.mrf.mxu0  ;;  %v3301_v52 = vpop.f32.mrf.mxu1 }
 0x114   :  { %v4230_v53 = vpop.f32.mrf.mxu0  ;;  %v4232_v61 = vpop.f32.mrf.mxu1  ;;  %3403 = vmatmul.mubr.msk.bf16.gmra.mxu0 %vm202_vm3, %v3645_v34  ;;  %3507 = vmatmul.mubr.msk.bf16.gmra.mxu1 %vm202_vm3, %v3646_v37  ;;  %v3647_v34 = vld [vmem:[%s4887_s0 + $0x1d0] sm:$0xff]  }
 0x115   :  { %3406 = vmatprep.mubr.msk.bf16.mxu0 %vm3681_vm2, %v4890_v0  ;;  %3510 = vmatprep.mubr.msk.bf16.mxu1 %vm3681_vm2, %v4890_v0  ;;  %v3648_v37 = vld [vmem:[%s4887_s0 + $0x294] sm:$0xff]  }
 0x116   :  { %v3200_v21 = vpop.f32.mrf.mxu0  ;;  %v3304_v22 = vpop.f32.mrf.mxu1 }
 0x118   :  { %v4242_v46 = vpop.f32.mrf.mxu0  ;;  %v4244_v52 = vpop.f32.mrf.mxu1 }
 0x11a   :  { %v3201_v45 = vpop.f32.mrf.mxu0  ;;  %v3305_v13 = vpop.f32.mrf.mxu1 }
 0x11c   :  { %v4254_v60 = vpop.f32.mrf.mxu0  ;;  %v4256_v21 = vpop.f32.mrf.mxu1  ;;  %3407 = vmatmul.mubr.msk.bf16.gmra.mxu0 %vm202_vm3, %v3647_v34  ;;  %3511 = vmatmul.mubr.msk.bf16.gmra.mxu1 %vm202_vm3, %v3648_v37  ;;  %v3649_v34 = vld [vmem:[%s4887_s0 + $0x1d8] sm:$0xff]  }
 0x11d   :  { %3410 = vmatprep.mubr.msk.bf16.mxu0 %vm3681_vm2, %v4890_v0  ;;  %3514 = vmatprep.mubr.msk.bf16.mxu1 %vm3681_vm2, %v4890_v0  ;;  %v3650_v37 = vld [vmem:[%s4887_s0 + $0x29c] sm:$0xff]  }
 0x11e   :  { %v3204_v4 = vpop.f32.mrf.mxu0  ;;  %v3308_v45 = vpop.f32.mrf.mxu1 }
 0x120   :  { %v4266_v13 = vpop.f32.mrf.mxu0  ;;  %v4268_v41 = vpop.f32.mrf.mxu1 }
 0x122   :  { %v3205_v33 = vpop.f32.mrf.mxu0  ;;  %v3309_v17 = vpop.f32.mrf.mxu1 }
 0x124   :  { %v4278_v9 = vpop.f32.mrf.mxu0  ;;  %v4280_v4 = vpop.f32.mrf.mxu1  ;;  %3411 = vmatmul.mubr.msk.bf16.gmra.mxu0 %vm202_vm3, %v3649_v34  ;;  %3515 = vmatmul.mubr.msk.bf16.gmra.mxu1 %vm202_vm3, %v3650_v37  ;;  %v3651_v34 = vld [vmem:[%s4887_s0 + $0x1e0] sm:$0xff]  }
 0x125   :  { %3414 = vmatprep.mubr.msk.bf16.mxu0 %vm3681_vm2, %v4890_v0  ;;  %3518 = vmatprep.mubr.msk.bf16.mxu1 %vm3681_vm2, %v4890_v0  ;;  %v3652_v37 = vld [vmem:[%s4887_s0 + $0x2a4] sm:$0xff]  }
 0x126   :  { %v3208_v22 = vpop.f32.mrf.mxu0  ;;  %v3312_v33 = vpop.f32.mrf.mxu1 }
 0x128   :  { %v4290_v17 = vpop.f32.mrf.mxu0  ;;  %v4292_v56 = vpop.f32.mrf.mxu1 }
 0x129   :  { %4944 = vst [vmem:[#allocation2_spill] sm:$0xff] %v4290_v17  ;;  %4945 = vst [vmem:[#allocation3_spill] sm:$0xff] %v4292_v56 }
 0x12a   :  { %v3209_v51 = vpop.f32.mrf.mxu0  ;;  %v3313_v44 = vpop.f32.mrf.mxu1 }
 0x12c   :  { %v4302_v39 = vpop.f32.mrf.mxu0  ;;  %v4304_v22 = vpop.f32.mrf.mxu1  ;;  %3415 = vmatmul.mubr.msk.bf16.gmra.mxu0 %vm202_vm3, %v3651_v34  ;;  %3519 = vmatmul.mubr.msk.bf16.gmra.mxu1 %vm202_vm3, %v3652_v37  ;;  %v3653_v34 = vld [vmem:[%s4887_s0 + $0x1e8] sm:$0xff]  }
 0x12d   :  { %4946 = vst [vmem:[#allocation4_spill] sm:$0xff] %v4302_v39  ;;  %4947 = vst [vmem:[#allocation5_spill] sm:$0xff] %v4304_v22  ;;  %3418 = vmatprep.mubr.msk.bf16.mxu0 %vm3681_vm2, %v4890_v0  ;;  %3522 = vmatprep.mubr.msk.bf16.mxu1 %vm3681_vm2, %v4890_v0  ;;  %v3654_v37 = vld [vmem:[%s4887_s0 + $0x2ac] sm:$0xff]  }
 0x12e   :  { %v3212_v45 = vpop.f32.mrf.mxu0  ;;  %v3316_v51 = vpop.f32.mrf.mxu1 }
 0x130   :  { %v4314_v44 = vpop.f32.mrf.mxu0  ;;  %v4316_v32 = vpop.f32.mrf.mxu1 }
 0x131   :  { %4948 = vst [vmem:[#allocation6_spill] sm:$0xff] %v4314_v44  ;;  %4949 = vst [vmem:[#allocation7_spill] sm:$0xff] %v4316_v32 }
 0x132   :  { %v3213_v27 = vpop.f32.mrf.mxu0  ;;  %v3317_v20 = vpop.f32.mrf.mxu1 }
 0x134   :  { %v4326_v15 = vpop.f32.mrf.mxu0  ;;  %v4328_v45 = vpop.f32.mrf.mxu1  ;;  %3419 = vmatmul.mubr.msk.bf16.gmra.mxu0 %vm202_vm3, %v3653_v34  ;;  %3523 = vmatmul.mubr.msk.bf16.gmra.mxu1 %vm202_vm3, %v3654_v37  ;;  %v3655_v34 = vld [vmem:[%s4887_s0 + $0x1f0] sm:$0xff]  }
 0x135   :  { %4950 = vst [vmem:[#allocation8_spill] sm:$0xff] %v4326_v15  ;;  %4951 = vst [vmem:[#allocation9_spill] sm:$0xff] %v4328_v45  ;;  %3422 = vmatprep.mubr.msk.bf16.mxu0 %vm3681_vm2, %v4890_v0  ;;  %3526 = vmatprep.mubr.msk.bf16.mxu1 %vm3681_vm2, %v4890_v0  ;;  %v3656_v37 = vld [vmem:[%s4887_s0 + $0x2b4] sm:$0xff]   ;;  %v4956_v45 = vmov 0.0   ;;  %v4616_v15 = vld [vmem:[%s4888_s2] ss:$0 sm:$0xff] }
 0x136   :  { %v3216_v33 = vpop.f32.mrf.mxu0  ;;  %v3320_v27 = vpop.f32.mrf.mxu1 }
 0x138   :  { %v4338_v20 = vpop.f32.mrf.mxu0  ;;  %v4340_v8 = vpop.f32.mrf.mxu1 }
 0x139   :  { %4952 = vst [vmem:[#allocation10_spill] sm:$0xff] %v4338_v20  ;;  %4953 = vst [vmem:[#allocation11_spill] sm:$0xff] %v4340_v8 }
 0x13a   :  { %v3217_v3 = vpop.f32.mrf.mxu0  ;;  %v3321_v59 = vpop.f32.mrf.mxu1 }
 0x13c   :  { %v4350_v0 = vpop.f32.mrf.mxu0  ;;  %v4352_v33 = vpop.f32.mrf.mxu1  ;;  %3423 = vmatmul.mubr.msk.bf16.gmra.mxu0 %vm202_vm3, %v3655_v34  ;;  %3527 = vmatmul.mubr.msk.bf16.gmra.mxu1 %vm202_vm3, %v3656_v37  ;;  %v3657_v34 = vld [vmem:[%s4887_s0 + $0x1f8] sm:$0xff]  }
 0x13d   :  { %4954 = vst [vmem:[#allocation12_spill] sm:$0xff] %v4350_v0  ;;  %4955 = vst [vmem:[#allocation13_spill] sm:$0xff] %v4352_v33  ;;  %3426 = vmatprep.mubr.msk.bf16.mxu0 %vm3681_vm2, %v4956_v45  ;;  %3530 = vmatprep.mubr.msk.bf16.mxu1 %vm3681_vm2, %v4956_v45  ;;  %v3658_v37 = vld [vmem:[%s4887_s0 + $0x2bc] sm:$0xff]  }
 0x13e   :  { %v3220_v51 = vpop.f32.mrf.mxu0  ;;  %v3324_v3 = vpop.f32.mrf.mxu1 }
 0x140   :  { %v4362_v59 = vpop.f32.mrf.mxu0  ;;  %v4364_v8 = vpop.f32.mrf.mxu1 }
 0x141   :  { %4957 = vst [vmem:[#allocation14_spill] sm:$0xff] %v4362_v59  ;;  %4958 = vst [vmem:[#allocation15_spill] sm:$0xff] %v4364_v8 }
 0x142   :  { %v3221_v33 = vpop.f32.mrf.mxu0  ;;  %v3325_v0 = vpop.f32.mrf.mxu1 }
 0x144   :  { %v4374_v20 = vpop.f32.mrf.mxu0  ;;  %v4376_v51 = vpop.f32.mrf.mxu1  ;;  %3427 = vmatmul.mubr.msk.bf16.gmra.mxu0 %vm202_vm3, %v3657_v34  ;;  %3531 = vmatmul.mubr.msk.bf16.gmra.mxu1 %vm202_vm3, %v3658_v37  ;;  %v3659_v34 = vld [vmem:[%s4887_s0 + $0x200] sm:$0xff]  }
 0x145   :  { %4959 = vst [vmem:[#allocation16_spill] sm:$0xff] %v4374_v20  ;;  %4960 = vst [vmem:[#allocation17_spill] sm:$0xff] %v4376_v51  ;;  %3430 = vmatprep.mubr.msk.bf16.mxu0 %vm3681_vm2, %v4956_v45  ;;  %3534 = vmatprep.mubr.msk.bf16.mxu1 %vm3681_vm2, %v4956_v45  ;;  %v3660_v37 = vld [vmem:[%s4887_s0 + $0x2c4] sm:$0xff]  }
 0x146   :  { %v3224_v27 = vpop.f32.mrf.mxu0  ;;  %v3328_v33 = vpop.f32.mrf.mxu1 }
 0x148   :  { %v4386_v0 = vpop.f32.mrf.mxu0  ;;  %v4388_v8 = vpop.f32.mrf.mxu1 }
 0x149   :  { %4961 = vst [vmem:[#allocation18_spill] sm:$0xff] %v4386_v0  ;;  %4962 = vst [vmem:[#allocation19_spill] sm:$0xff] %v4388_v8 }
 0x14a   :  { %v3225_v51 = vpop.f32.mrf.mxu0  ;;  %v3329_v20 = vpop.f32.mrf.mxu1 }
 0x14c   :  { %v4398_v59 = vpop.f32.mrf.mxu0  ;;  %v4400_v27 = vpop.f32.mrf.mxu1  ;;  %3431 = vmatmul.mubr.msk.bf16.gmra.mxu0 %vm202_vm3, %v3659_v34  ;;  %3535 = vmatmul.mubr.msk.bf16.gmra.mxu1 %vm202_vm3, %v3660_v37  ;;  %v3661_v34 = vld [vmem:[%s4887_s0 + $0x208] sm:$0xff]  }
 0x14d   :  { %4963 = vst [vmem:[#allocation20_spill] sm:$0xff] %v4398_v59  ;;  %4964 = vst [vmem:[#allocation21_spill] sm:$0xff] %v4400_v27  ;;  %3434 = vmatprep.mubr.msk.bf16.mxu0 %vm3681_vm2, %v4956_v45  ;;  %3538 = vmatprep.mubr.msk.bf16.mxu1 %vm3681_vm2, %v4956_v45  ;;  %v3662_v37 = vld [vmem:[%s4887_s0 + $0x2cc] sm:$0xff]  }
 0x14e   :  { %v3228_v3 = vpop.f32.mrf.mxu0  ;;  %v3332_v51 = vpop.f32.mrf.mxu1 }
 0x150   :  { %v4410_v20 = vpop.f32.mrf.mxu0  ;;  %v4412_v8 = vpop.f32.mrf.mxu1 }
 0x151   :  { %4965 = vst [vmem:[#allocation22_spill] sm:$0xff] %v4410_v20  ;;  %4966 = vst [vmem:[#allocation23_spill] sm:$0xff] %v4412_v8 }
 0x152   :  { %v3229_v27 = vpop.f32.mrf.mxu0  ;;  %v3333_v59 = vpop.f32.mrf.mxu1 }
 0x154   :  { %v4422_v0 = vpop.f32.mrf.mxu0  ;;  %v4424_v3 = vpop.f32.mrf.mxu1  ;;  %3435 = vmatmul.mubr.msk.bf16.gmra.mxu0 %vm202_vm3, %v3661_v34  ;;  %3539 = vmatmul.mubr.msk.bf16.gmra.mxu1 %vm202_vm3, %v3662_v37  ;;  %v3663_v34 = vld [vmem:[%s4887_s0 + $0x210] sm:$0xff]  }
 0x155   :  { %4967 = vst [vmem:[#allocation24_spill] sm:$0xff] %v4422_v0  ;;  %4968 = vst [vmem:[#allocation25_spill] sm:$0xff] %v4424_v3  ;;  %3438 = vmatprep.mubr.msk.bf16.mxu0 %vm3681_vm2, %v4956_v45  ;;  %3542 = vmatprep.mubr.msk.bf16.mxu1 %vm3681_vm2, %v4956_v45  ;;  %v3664_v37 = vld [vmem:[%s4887_s0 + $0x2d4] sm:$0xff]  }
 0x156   :  { %v3232_v33 = vpop.f32.mrf.mxu0  ;;  %v3336_v27 = vpop.f32.mrf.mxu1 }
 0x158   :  { %v4434_v59 = vpop.f32.mrf.mxu0  ;;  %v4436_v8 = vpop.f32.mrf.mxu1 }
 0x159   :  { %4969 = vst [vmem:[#allocation26_spill] sm:$0xff] %v4434_v59  ;;  %4970 = vst [vmem:[#allocation27_spill] sm:$0xff] %v4436_v8 }
 0x15a   :  { %v3233_v3 = vpop.f32.mrf.mxu0  ;;  %v3337_v0 = vpop.f32.mrf.mxu1 }
 0x15c   :  { %v4446_v20 = vpop.f32.mrf.mxu0  ;;  %v4448_v33 = vpop.f32.mrf.mxu1  ;;  %3439 = vmatmul.mubr.msk.bf16.gmra.mxu0 %vm202_vm3, %v3663_v34  ;;  %3543 = vmatmul.mubr.msk.bf16.gmra.mxu1 %vm202_vm3, %v3664_v37  ;;  %v3665_v34 = vld [vmem:[%s4887_s0 + $0x218] sm:$0xff]  }
 0x15d   :  { %4971 = vst [vmem:[#allocation28_spill] sm:$0xff] %v4446_v20  ;;  %4972 = vst [vmem:[#allocation29_spill] sm:$0xff] %v4448_v33  ;;  %3442 = vmatprep.mubr.msk.bf16.mxu0 %vm3681_vm2, %v4956_v45  ;;  %3546 = vmatprep.mubr.msk.bf16.mxu1 %vm3681_vm2, %v4956_v45  ;;  %v3666_v37 = vld [vmem:[%s4887_s0 + $0x2dc] sm:$0xff]  }
 0x15e   :  { %v3236_v51 = vpop.f32.mrf.mxu0  ;;  %v3340_v3 = vpop.f32.mrf.mxu1 }
 0x160   :  { %v4458_v0 = vpop.f32.mrf.mxu0  ;;  %v4460_v8 = vpop.f32.mrf.mxu1 }
 0x161   :  { %4973 = vst [vmem:[#allocation30_spill] sm:$0xff] %v4458_v0  ;;  %4974 = vst [vmem:[#allocation31_spill] sm:$0xff] %v4460_v8 }
 0x162   :  { %v3237_v33 = vpop.f32.mrf.mxu0  ;;  %v3341_v20 = vpop.f32.mrf.mxu1 }
 0x164   :  { %v4470_v59 = vpop.f32.mrf.mxu0  ;;  %v4472_v51 = vpop.f32.mrf.mxu1  ;;  %3443 = vmatmul.mubr.msk.bf16.gmra.mxu0 %vm202_vm3, %v3665_v34  ;;  %3547 = vmatmul.mubr.msk.bf16.gmra.mxu1 %vm202_vm3, %v3666_v37  ;;  %v3667_v34 = vld [vmem:[%s4887_s0 + $0x220] sm:$0xff]  }
 0x165   :  { %4975 = vst [vmem:[#allocation32_spill] sm:$0xff] %v4470_v59  ;;  %4976 = vst [vmem:[#allocation33_spill] sm:$0xff] %v4472_v51  ;;  %3446 = vmatprep.mubr.msk.bf16.mxu0 %vm3681_vm2, %v4956_v45  ;;  %3550 = vmatprep.mubr.msk.bf16.mxu1 %vm3681_vm2, %v4956_v45  ;;  %v3668_v37 = vld [vmem:[%s4887_s0 + $0x2e4] sm:$0xff]  }
 0x166   :  { %v3240_v27 = vpop.f32.mrf.mxu0  ;;  %v3344_v33 = vpop.f32.mrf.mxu1 }
 0x168   :  { %v4482_v20 = vpop.f32.mrf.mxu0  ;;  %v4484_v8 = vpop.f32.mrf.mxu1 }
 0x169   :  { %4977 = vst [vmem:[#allocation34_spill] sm:$0xff] %v4482_v20  ;;  %4978 = vst [vmem:[#allocation35_spill] sm:$0xff] %v4484_v8 }
 0x16a   :  { %v3241_v51 = vpop.f32.mrf.mxu0  ;;  %v3345_v59 = vpop.f32.mrf.mxu1 }
 0x16c   :  { %v4494_v0 = vpop.f32.mrf.mxu0  ;;  %v4496_v27 = vpop.f32.mrf.mxu1  ;;  %3447 = vmatmul.mubr.msk.bf16.gmra.mxu0 %vm202_vm3, %v3667_v34  ;;  %3551 = vmatmul.mubr.msk.bf16.gmra.mxu1 %vm202_vm3, %v3668_v37  ;;  %v3669_v34 = vld [vmem:[%s4887_s0 + $0x228] sm:$0xff]  }
 0x16d   :  { %4979 = vst [vmem:[#allocation36_spill] sm:$0xff] %v4494_v0  ;;  %4980 = vst [vmem:[#allocation37_spill] sm:$0xff] %v4496_v27  ;;  %3450 = vmatprep.mubr.msk.bf16.mxu0 %vm3681_vm2, %v4956_v45  ;;  %3554 = vmatprep.mubr.msk.bf16.mxu1 %vm3681_vm2, %v4956_v45  ;;  %v3670_v37 = vld [vmem:[%s4887_s0 + $0x2ec] sm:$0xff]  }
 0x16e   :  { %v3244_v3 = vpop.f32.mrf.mxu0  ;;  %v3348_v51 = vpop.f32.mrf.mxu1 }
 0x170   :  { %v4506_v59 = vpop.f32.mrf.mxu0  ;;  %v4508_v8 = vpop.f32.mrf.mxu1 }
 0x171   :  { %4981 = vst [vmem:[#allocation38_spill] sm:$0xff] %v4506_v59  ;;  %4982 = vst [vmem:[#allocation39_spill] sm:$0xff] %v4508_v8 }
 0x172   :  { %v3245_v27 = vpop.f32.mrf.mxu0  ;;  %v3349_v0 = vpop.f32.mrf.mxu1 }
 0x174   :  { %v4518_v20 = vpop.f32.mrf.mxu0  ;;  %v4520_v3 = vpop.f32.mrf.mxu1  ;;  %3451 = vmatmul.mubr.msk.bf16.gmra.mxu0 %vm202_vm3, %v3669_v34  ;;  %3555 = vmatmul.mubr.msk.bf16.gmra.mxu1 %vm202_vm3, %v3670_v37  ;;  %v3671_v34 = vld [vmem:[%s4887_s0 + $0x230] sm:$0xff]  }
 0x175   :  { %4983 = vst [vmem:[#allocation40_spill] sm:$0xff] %v4518_v20  ;;  %4984 = vst [vmem:[#allocation41_spill] sm:$0xff] %v4520_v3  ;;  %3454 = vmatprep.mubr.msk.bf16.mxu0 %vm3681_vm2, %v4956_v45  ;;  %3558 = vmatprep.mubr.msk.bf16.mxu1 %vm3681_vm2, %v4956_v45  ;;  %v3672_v37 = vld [vmem:[%s4887_s0 + $0x2f4] sm:$0xff]  }
 0x176   :  { %v3248_v33 = vpop.f32.mrf.mxu0  ;;  %v3352_v27 = vpop.f32.mrf.mxu1 }
 0x178   :  { %v4530_v0 = vpop.f32.mrf.mxu0  ;;  %v4532_v8 = vpop.f32.mrf.mxu1 }
 0x179   :  { %4985 = vst [vmem:[#allocation42_spill] sm:$0xff] %v4530_v0  ;;  %4986 = vst [vmem:[#allocation43_spill] sm:$0xff] %v4532_v8 }
 0x17a   :  { %v3249_v3 = vpop.f32.mrf.mxu0  ;;  %v3353_v20 = vpop.f32.mrf.mxu1 }
 0x17c   :  { %v4542_v59 = vpop.f32.mrf.mxu0  ;;  %v4544_v33 = vpop.f32.mrf.mxu1  ;;  %3455 = vmatmul.mubr.msk.bf16.gmra.mxu0 %vm202_vm3, %v3671_v34  ;;  %3559 = vmatmul.mubr.msk.bf16.gmra.mxu1 %vm202_vm3, %v3672_v37  ;;  %v3673_v34 = vld [vmem:[%s4887_s0 + $0x238] sm:$0xff]  }
 0x17d   :  { %4987 = vst [vmem:[#allocation44_spill] sm:$0xff] %v4542_v59  ;;  %4988 = vst [vmem:[#allocation45_spill] sm:$0xff] %v4544_v33  ;;  %3458 = vmatprep.mubr.msk.bf16.mxu0 %vm3681_vm2, %v4956_v45  ;;  %3562 = vmatprep.mubr.msk.bf16.mxu1 %vm3681_vm2, %v4956_v45  ;;  %v3674_v37 = vld [vmem:[%s4887_s0 + $0x2fc] sm:$0xff]  }
 0x17e   :  { %v3252_v51 = vpop.f32.mrf.mxu0  ;;  %v3356_v3 = vpop.f32.mrf.mxu1 }
 0x180   :  { %v4554_v20 = vpop.f32.mrf.mxu0  ;;  %v4556_v8 = vpop.f32.mrf.mxu1 }
 0x181   :  { %4989 = vst [vmem:[#allocation46_spill] sm:$0xff] %v4554_v20  ;;  %4990 = vst [vmem:[#allocation47_spill] sm:$0xff] %v4556_v8 }
 0x182   :  { %v3253_v33 = vpop.f32.mrf.mxu0  ;;  %v3357_v59 = vpop.f32.mrf.mxu1 }
 0x184   :  { %v4566_v0 = vpop.f32.mrf.mxu0  ;;  %v4568_v51 = vpop.f32.mrf.mxu1  ;;  %3459 = vmatmul.mubr.msk.bf16.gmra.mxu0 %vm202_vm3, %v3673_v34  ;;  %3563 = vmatmul.mubr.msk.bf16.gmra.mxu1 %vm202_vm3, %v3674_v37  ;;  %v3675_v34 = vld [vmem:[%s4887_s0 + $0x240] sm:$0xff]  }
 0x185   :  { %4991 = vst [vmem:[#allocation48_spill] sm:$0xff] %v4566_v0  ;;  %4992 = vst [vmem:[#allocation49_spill] sm:$0xff] %v4568_v51  ;;  %3462 = vmatprep.mubr.msk.bf16.mxu0 %vm3681_vm2, %v4956_v45  ;;  %3566 = vmatprep.mubr.msk.bf16.mxu1 %vm3681_vm2, %v4956_v45  ;;  %v3676_v37 = vld [vmem:[%s4887_s0 + $0x304] sm:$0xff]  }
 0x186   :  { %v3256_v27 = vpop.f32.mrf.mxu0  ;;  %v3360_v33 = vpop.f32.mrf.mxu1 }
 0x188   :  { %v4578_v59 = vpop.f32.mrf.mxu0  ;;  %v4580_v8 = vpop.f32.mrf.mxu1 }
 0x189   :  { %4993 = vst [vmem:[#allocation50_spill] sm:$0xff] %v4578_v59  ;;  %4994 = vst [vmem:[#allocation51_spill] sm:$0xff] %v4580_v8  ;;  %v3677_v59 = vld [vmem:[%s4887_s0 + $0x248] ss:$0 sps:$4 sm:$0xff]  }
 0x18a   :  { %v3257_v51 = vpop.f32.mrf.mxu0  ;;  %v3361_v0 = vpop.f32.mrf.mxu1 }
 0x18c   :  { %v4590_v20 = vpop.f32.mrf.mxu0  ;;  %v4592_v27 = vpop.f32.mrf.mxu1  ;;  %3463 = vmatmul.mubr.msk.bf16.gmra.mxu0 %vm202_vm3, %v3675_v34  ;;  %3567 = vmatmul.mubr.msk.bf16.gmra.mxu1 %vm202_vm3, %v3676_v37  ;;  %v3678_v34 = vld [vmem:[%s4887_s0 + $0x30c] ss:$0 sps:$4 sm:$0xff]  }
 0x18d   :  { %4995 = vst [vmem:[#allocation52_spill] sm:$0xff] %v4590_v20  ;;  %4996 = vst [vmem:[#allocation53_spill] sm:$0xff] %v4592_v27  ;;  %3466 = vmatprep.mubr.msk.bf16.mxu0 %vm3681_vm2, %v4956_v45  ;;  %3570 = vmatprep.mubr.msk.bf16.mxu1 %vm3681_vm2, %v4956_v45 }
 0x18e   :  { %v3260_v3 = vpop.f32.mrf.mxu0  ;;  %v3364_v51 = vpop.f32.mrf.mxu1 }
 0x190   :  { %v514_v0 = vpop.f32.mrf.mxu0  ;;  %v994_v8 = vpop.f32.mrf.mxu1 }
 0x191   :  { %v4997_v8 = vmax.f32 %v4014_v57, %v4017_v58 }
 0x192   :  { %v3261_v37 = vpop.f32.mrf.mxu0  ;;  %v3365_v33 = vpop.f32.mrf.mxu1 }
 0x194   :  { %v1279_v27 = vpop.f32.mrf.mxu0  ;;  %3467 = vmatmul.mubr.msk.bf16.gmra.mxu0 %vm202_vm3, %v3677_v59  ;;  %v1759_v20 = vpop.f32.mrf.mxu1  ;;  %3571 = vmatmul.mubr.msk.bf16.gmra.mxu1 %vm202_vm3, %v3678_v34 }
 0x195   :  { %v2006_v45 = vmax.f32 %v1279_v27, %v1759_v20  ;;  %v4998_v20 = vmax.f32 %v4026_v62, %v4028_v63 }
 0x196   :  { %v3372_v3 = vpop.f32.mrf.mxu0  ;;  %v3476_v51 = vpop.f32.mrf.mxu1 }
 0x197   :  { %v2055_v0 = vmax.f32 %v4997_v8, %v2006_v45 }
 0x198   :  { %v1282_v37 = vpop.f32.mrf.mxu0  ;;  %v1762_v33 = vpop.f32.mrf.mxu1 }
 0x199   :  { %v2007_v32 = vmax.f32 %v1282_v37, %v1762_v33  ;;  %v2111_v22 = vadd.f32 %v4616_v15, %v2055_v0  ;;  %v4999_v37 = vmax.f32 %v4038_v6, %v4040_v7 }
 0x19a   :  { %v3373_v44 = vpop.f32.mrf.mxu0  ;;  %v3477_v59 = vpop.f32.mrf.mxu1 }
 0x19b   :  { %v2056_v27 = vmax.f32 %v4998_v20, %v2007_v32  ;;  %v2160_v8 = vmax.f32 %v2111_v22, 0.0  ;;  %v5000_v32 = vmax.f32 %v4050_v11, %v4052_v12 }
 0x19c   :  { %v1287_v34 = vpop.f32.mrf.mxu0  ;;  %v1767_v3 = vpop.f32.mrf.mxu1 }
 0x19d   :  { %v2112_v57 = vadd.f32 %v4616_v15, %v2056_v27  ;;  %v2008_v58 = vmax.f32 %v1287_v34, %v1767_v3 }
 0x19e   :  { %v3376_v45 = vpop.f32.mrf.mxu0  ;;  %v3480_v51 = vpop.f32.mrf.mxu1 }
 0x19f   :  { %v2161_v39 = vmax.f32 %v2112_v57, 0.0  ;;  %v2057_v44 = vmax.f32 %v4999_v37, %v2008_v58  ;;  %v5001_v57 = vmax.f32 %v4062_v18, %v4064_v19 }
 0x1a0   :  { %v1290_v33 = vpop.f32.mrf.mxu0  ;;  %v1770_v59 = vpop.f32.mrf.mxu1 }
 0x1a1   :  { %v2910_v0 = vpack.c.bf16 %v2161_v39, %v2160_v8  ;;  %v2009_v56 = vmax.f32 %v1290_v33, %v1770_v59  ;;  %v2113_v63 = vadd.f32 %v4616_v15, %v2057_v44 }
 0x1a2   :  { %v3377_v17 = vpop.f32.mrf.mxu0  ;;  %v3481_v62 = vpop.f32.mrf.mxu1 }
 0x1a3   :  { %2911 = vst [vmem:[%s4889_s3] sm:$0xff] %v2910_v0   ;;  %v2058_v22 = vmax.f32 %v5000_v32, %v2009_v56  ;;  %v2162_v3 = vmax.f32 %v2113_v63, 0.0  ;;  %v5002_v56 = vmax.f32 %v4074_v23, %v4076_v24 }
 0x1a4   :  { %v1295_v20 = vpop.f32.mrf.mxu0  ;;  %v1775_v27 = vpop.f32.mrf.mxu1 }
 0x1a5   :  { %v2114_v6 = vadd.f32 %v4616_v15, %v2058_v22  ;;  %v2010_v7 = vmax.f32 %v1295_v20, %v1775_v27  ;;  %v5003_v20 = vmax.f32 %v4086_v30, %v4088_v31 }
 0x1a6   :  { %v3380_v34 = vpop.f32.mrf.mxu0  ;;  %v3484_v39 = vpop.f32.mrf.mxu1 }
 0x1a7   :  { %v2163_v17 = vmax.f32 %v2114_v6, 0.0  ;;  %v2059_v58 = vmax.f32 %v5001_v57, %v2010_v7 }
 0x1a8   :  { %v1298_v45 = vpop.f32.mrf.mxu0  ;;  %v1778_v51 = vpop.f32.mrf.mxu1 }
 0x1a9   :  { %v2915_v8 = vpack.c.bf16 %v2163_v17, %v2162_v3  ;;  %v2011_v37 = vmax.f32 %v1298_v45, %v1778_v51  ;;  %v2115_v12 = vadd.f32 %v4616_v15, %v2059_v58  ;;  %v5004_v17 = vmax.f32 %v4098_v35, %v4100_v36 }
 0x1aa   :  { %v3381_v44 = vpop.f32.mrf.mxu0  ;;  %v3485_v11 = vpop.f32.mrf.mxu1 }
 0x1ab   :  { %3027 = vst [vmem:[%s4889_s3 + $0x8] sm:$0xff] %v2915_v8   ;;  %v2060_v33 = vmax.f32 %v5002_v56, %v2011_v37  ;;  %v2164_v32 = vmax.f32 %v2115_v12, 0.0  ;;  %v5005_v11 = vmax.f32 %v4110_v42, %v4112_v43 }
 0x1ac   :  { %v1303_v59 = vpop.f32.mrf.mxu0  ;;  %v1783_v0 = vpop.f32.mrf.mxu1 }
 0x1ad   :  { %v2116_v18 = vadd.f32 %v4616_v15, %v2060_v33  ;;  %v2012_v19 = vmax.f32 %v1303_v59, %v1783_v0 }
 0x1ae   :  { %v3384_v62 = vpop.f32.mrf.mxu0  ;;  %v3488_v63 = vpop.f32.mrf.mxu1 }
 0x1af   :  { %v2165_v22 = vmax.f32 %v2116_v18, 0.0  ;;  %v2061_v27 = vmax.f32 %v5003_v20, %v2012_v19  ;;  %v5006_v19 = vmax.f32 %v4122_v47, %v4124_v48 }
 0x1b0   :  { %v1306_v6 = vpop.f32.mrf.mxu0  ;;  %v1786_v7 = vpop.f32.mrf.mxu1 }
 0x1b1   :  { %v2920_v34 = vpack.c.bf16 %v2165_v22, %v2164_v32  ;;  %v2013_v39 = vmax.f32 %v1306_v6, %v1786_v7  ;;  %v2117_v24 = vadd.f32 %v4616_v15, %v2061_v27  ;;  %v5007_v7 = vmax.f32 %v4134_v54, %v4136_v55 }
 0x1b2   :  { %v3385_v3 = vpop.f32.mrf.mxu0  ;;  %v3489_v23 = vpop.f32.mrf.mxu1 }
 0x1b3   :  { %3028 = vst [vmem:[%s4889_s3 + $0x10] sm:$0xff] %v2920_v34   ;;  %v2062_v57 = vmax.f32 %v5004_v17, %v2013_v39  ;;  %v2166_v37 = vmax.f32 %v2117_v24, 0.0 }
 0x1b4   :  { %v1311_v58 = vpop.f32.mrf.mxu0  ;;  %v1791_v45 = vpop.f32.mrf.mxu1 }
 0x1b5   :  { %v2118_v30 = vadd.f32 %v4616_v15, %v2062_v57  ;;  %v2014_v31 = vmax.f32 %v1311_v58, %v1791_v45  ;;  %v5008_v57 = vmax.f32 %v4146_v1, %v4148_v2 }
 0x1b6   :  { %v3388_v51 = vpop.f32.mrf.mxu0  ;;  %v3492_v8 = vpop.f32.mrf.mxu1 }
 0x1b7   :  { %v2167_v44 = vmax.f32 %v2118_v30, 0.0  ;;  %v2063_v12 = vmax.f32 %v5005_v11, %v2014_v31 }
 0x1b8   :  { %v1314_v56 = vpop.f32.mrf.mxu0  ;;  %v1794_v33 = vpop.f32.mrf.mxu1 }
 0x1b9   :  { %v2925_v59 = vpack.c.bf16 %v2167_v44, %v2166_v37  ;;  %v2015_v0 = vmax.f32 %v1314_v56, %v1794_v33  ;;  %v2119_v36 = vadd.f32 %v4616_v15, %v2063_v12  ;;  %v5009_v44 = vmax.f32 %v4158_v14, %v4160_v16 }
 0x1ba   :  { %v3389_v18 = vpop.f32.mrf.mxu0  ;;  %v3493_v35 = vpop.f32.mrf.mxu1 }
 0x1bb   :  { %3029 = vst [vmem:[%s4889_s3 + $0x18] sm:$0xff] %v2925_v59   ;;  %v2064_v62 = vmax.f32 %v5006_v19, %v2015_v0  ;;  %v2168_v27 = vmax.f32 %v2119_v36, 0.0  ;;  %v5010_v18 = vmax.f32 %v4170_v25, %v4172_v26 }
 0x1bc   :  { %v1319_v63 = vpop.f32.mrf.mxu0  ;;  %v1799_v32 = vpop.f32.mrf.mxu1 }
 0x1bd   :  { %v2120_v42 = vadd.f32 %v4616_v15, %v2064_v62  ;;  %v2016_v43 = vmax.f32 %v1319_v63, %v1799_v32 }
 0x1be   :  { %v3392_v22 = vpop.f32.mrf.mxu0  ;;  %v3496_v20 = vpop.f32.mrf.mxu1 }
 0x1bf   :  { %v2169_v6 = vmax.f32 %v2120_v42, 0.0  ;;  %v2065_v34 = vmax.f32 %v5007_v7, %v2016_v43  ;;  %v5011_v43 = vmax.f32 %v4182_v38, %v4184_v40 }
 0x1c0   :  { %v1322_v39 = vpop.f32.mrf.mxu0  ;;  %v1802_v3 = vpop.f32.mrf.mxu1 }
 0x1c1   :  { %v2930_v23 = vpack.c.bf16 %v2169_v6, %v2168_v27  ;;  %v2017_v24 = vmax.f32 %v1322_v39, %v1802_v3  ;;  %v2121_v48 = vadd.f32 %v4616_v15, %v2065_v34  ;;  %v5012_v39 = vmax.f32 %v4194_v49, %v4196_v50 }
 0x1c2   :  { %v3393_v17 = vpop.f32.mrf.mxu0  ;;  %v3497_v47 = vpop.f32.mrf.mxu1 }
 0x1c3   :  { %3030 = vst [vmem:[%s4889_s3 + $0x20] sm:$0xff] %v2930_v23   ;;  %v2066_v58 = vmax.f32 %v5008_v57, %v2017_v24  ;;  %v2170_v8 = vmax.f32 %v2121_v48, 0.0 }
 0x1c4   :  { %v1327_v45 = vpop.f32.mrf.mxu0  ;;  %v1807_v30 = vpop.f32.mrf.mxu1 }
 0x1c5   :  { %v2122_v54 = vadd.f32 %v4616_v15, %v2066_v58  ;;  %v2018_v55 = vmax.f32 %v1327_v45, %v1807_v30  ;;  %v5013_v58 = vmax.f32 %v4206_v5, %v4208_v10 }
 0x1c6   :  { %v3396_v31 = vpop.f32.mrf.mxu0  ;;  %v3500_v51 = vpop.f32.mrf.mxu1 }
 0x1c7   :  { %v2171_v37 = vmax.f32 %v2122_v54, 0.0  ;;  %v2067_v11 = vmax.f32 %v5009_v44, %v2018_v55 }
 0x1c8   :  { %v1330_v12 = vpop.f32.mrf.mxu0  ;;  %v1810_v56 = vpop.f32.mrf.mxu1 }
 0x1c9   :  { %v2935_v33 = vpack.c.bf16 %v2171_v37, %v2170_v8  ;;  %v2019_v59 = vmax.f32 %v1330_v12, %v1810_v56  ;;  %v2123_v2 = vadd.f32 %v4616_v15, %v2067_v11  ;;  %v5014_v8 = vmax.f32 %v4218_v28, %v4220_v29 }
 0x1ca   :  { %v3397_v0 = vpop.f32.mrf.mxu0  ;;  %v3501_v1 = vpop.f32.mrf.mxu1 }
 0x1cb   :  { %3031 = vst [vmem:[%s4889_s3 + $0x28] sm:$0xff] %v2935_v33   ;;  %v2068_v35 = vmax.f32 %v5010_v18, %v2019_v59  ;;  %v2172_v32 = vmax.f32 %v2123_v2, 0.0  ;;  %v5015_v0 = vmax.f32 %v4230_v53, %v4232_v61 }
 0x1cc   :  { %v1335_v36 = vpop.f32.mrf.mxu0  ;;  %v1815_v19 = vpop.f32.mrf.mxu1 }
 0x1cd   :  { %v2124_v14 = vadd.f32 %v4616_v15, %v2068_v35  ;;  %v2020_v16 = vmax.f32 %v1335_v36, %v1815_v19 }
 0x1ce   :  { %v3400_v62 = vpop.f32.mrf.mxu0  ;;  %v3504_v63 = vpop.f32.mrf.mxu1 }
 0x1cf   :  { %v2173_v42 = vmax.f32 %v2124_v14, 0.0  ;;  %v2069_v22 = vmax.f32 %v5011_v43, %v2020_v16  ;;  %v5016_v14 = vmax.f32 %v4242_v46, %v4244_v52 }
 0x1d0   :  { %v1338_v20 = vpop.f32.mrf.mxu0  ;;  %v1818_v27 = vpop.f32.mrf.mxu1 }
 0x1d1   :  { %v2940_v6 = vpack.c.bf16 %v2173_v42, %v2172_v32  ;;  %v2021_v7 = vmax.f32 %v1338_v20, %v1818_v27  ;;  %v2125_v26 = vadd.f32 %v4616_v15, %v2069_v22  ;;  %v5017_v20 = vmax.f32 %v4254_v60, %v4256_v21 }
 0x1d2   :  { %v3401_v34 = vpop.f32.mrf.mxu0  ;;  %v3505_v25 = vpop.f32.mrf.mxu1 }
 0x1d3   :  { %3032 = vst [vmem:[%s4889_s3 + $0x30] sm:$0xff] %v2940_v6   ;;  %v2070_v3 = vmax.f32 %v5012_v39, %v2021_v7  ;;  %v2174_v48 = vmax.f32 %v2125_v26, 0.0  ;;  %v5018_v39 = vmax.f32 %v4266_v13, %v4268_v41 }
 0x1d4   :  { %v1343_v23 = vpop.f32.mrf.mxu0  ;;  %v1823_v24 = vpop.f32.mrf.mxu1 }
 0x1d5   :  { %v2126_v38 = vadd.f32 %v4616_v15, %v2070_v3  ;;  %v2022_v40 = vmax.f32 %v1343_v23, %v1823_v24 }
 0x1d6   :  { %v3404_v17 = vpop.f32.mrf.mxu0  ;;  %v3508_v47 = vpop.f32.mrf.mxu1 }
 0x1d7   :  { %v2175_v57 = vmax.f32 %v2126_v38, 0.0  ;;  %v2071_v45 = vmax.f32 %v5013_v58, %v2022_v40 }
 0x1d8   :  { %v1346_v30 = vpop.f32.mrf.mxu0  ;;  %v1826_v54 = vpop.f32.mrf.mxu1 }
 0x1d9   :  { %v2945_v55 = vpack.c.bf16 %v2175_v57, %v2174_v48  ;;  %v2023_v31 = vmax.f32 %v1346_v30, %v1826_v54  ;;  %v2127_v50 = vadd.f32 %v4616_v15, %v2071_v45  ;;  %v5019_v48 = vmax.f32 %v4278_v9, %v4280_v4 }
 0x1da   :  { %v3405_v51 = vpop.f32.mrf.mxu0  ;;  %v3509_v49 = vpop.f32.mrf.mxu1 }
 0x1db   :  { %3033 = vst [vmem:[%s4889_s3 + $0x38] sm:$0xff] %v2945_v55   ;;  %v2072_v37 = vmax.f32 %v5014_v8, %v2023_v31  ;;  %v2176_v33 = vmax.f32 %v2127_v50, 0.0  ;;  %v5020_v31 = vld [vmem:[#allocation2_spill] sm:$0xff]  ;;  %v5021_v51 = vld [vmem:[#allocation3_spill] sm:$0xff] }
 0x1dc   :  { %v1351_v44 = vpop.f32.mrf.mxu0  ;;  %v1831_v11 = vpop.f32.mrf.mxu1  ;;  %v5022_v49 = vmax.f32 %v5020_v31, %v5021_v51 }
 0x1dd   :  { %v2128_v5 = vadd.f32 %v4616_v15, %v2072_v37  ;;  %v2024_v10 = vmax.f32 %v1351_v44, %v1831_v11 }
 0x1de   :  { %v3408_v12 = vpop.f32.mrf.mxu0  ;;  %v3512_v56 = vpop.f32.mrf.mxu1 }
 0x1df   :  { %v2177_v59 = vmax.f32 %v2128_v5, 0.0  ;;  %v2073_v1 = vmax.f32 %v5015_v0, %v2024_v10  ;;  %v5023_v12 = vld [vmem:[#allocation4_spill] sm:$0xff]  ;;  %v5024_v56 = vld [vmem:[#allocation5_spill] sm:$0xff] }
 0x1e0   :  { %v1354_v2 = vpop.f32.mrf.mxu0  ;;  %v1834_v18 = vpop.f32.mrf.mxu1 }
 0x1e1   :  { %v2950_v35 = vpack.c.bf16 %v2177_v59, %v2176_v33  ;;  %v2025_v36 = vmax.f32 %v1354_v2, %v1834_v18  ;;  %v2129_v29 = vadd.f32 %v4616_v15, %v2073_v1  ;;  %v5025_v33 = vmax.f32 %v5023_v12, %v5024_v56 }
 0x1e2   :  { %v3409_v19 = vpop.f32.mrf.mxu0  ;;  %v3513_v28 = vpop.f32.mrf.mxu1 }
 0x1e3   :  { %3034 = vst [vmem:[%s4889_s3 + $0x40] sm:$0xff] %v2950_v35   ;;  %v2074_v16 = vmax.f32 %v5016_v14, %v2025_v36  ;;  %v2178_v43 = vmax.f32 %v2129_v29, 0.0  ;;  %v5026_v28 = vld [vmem:[#allocation6_spill] sm:$0xff]  ;;  %v5027_v29 = vld [vmem:[#allocation7_spill] sm:$0xff] }
 0x1e4   :  { %v1359_v62 = vpop.f32.mrf.mxu0  ;;  %v1839_v63 = vpop.f32.mrf.mxu1  ;;  %v5028_v14 = vmax.f32 %v5026_v28, %v5027_v29 }
 0x1e5   :  { %v2130_v53 = vadd.f32 %v4616_v15, %v2074_v16  ;;  %v2026_v61 = vmax.f32 %v1359_v62, %v1839_v63 }
 0x1e6   :  { %v3412_v32 = vpop.f32.mrf.mxu0  ;;  %v3516_v42 = vpop.f32.mrf.mxu1 }
 0x1e7   :  { %v2179_v22 = vmax.f32 %v2130_v53, 0.0  ;;  %v2075_v27 = vmax.f32 %v5017_v20, %v2026_v61  ;;  %v5029_v20 = vld [vmem:[#allocation8_spill] sm:$0xff] }
 0x1e8   :  { %v1362_v6 = vpop.f32.mrf.mxu0  ;;  %v1842_v7 = vpop.f32.mrf.mxu1 }
 0x1e9   :  { %v2955_v34 = vpack.c.bf16 %v2179_v22, %v2178_v43  ;;  %v2027_v25 = vmax.f32 %v1362_v6, %v1842_v7  ;;  %v2131_v52 = vadd.f32 %v4616_v15, %v2075_v27  ;;  %v5030_v27 = vld [vmem:[#allocation9_spill] sm:$0xff] }
 0x1ea   :  { %v3413_v26 = vpop.f32.mrf.mxu0  ;;  %v3517_v46 = vpop.f32.mrf.mxu1  ;;  %v5031_v6 = vmax.f32 %v5029_v20, %v5030_v27 }
 0x1eb   :  { %3035 = vst [vmem:[%s4889_s3 + $0x48] sm:$0xff] %v2955_v34   ;;  %v2076_v3 = vmax.f32 %v5018_v39, %v2027_v25  ;;  %v2180_v17 = vmax.f32 %v2131_v52, 0.0 }
 0x1ec   :  { %v1367_v23 = vpop.f32.mrf.mxu0  ;;  %v1847_v24 = vpop.f32.mrf.mxu1 }
 0x1ed   :  { %v2132_v60 = vadd.f32 %v4616_v15, %v2076_v3  ;;  %v2028_v21 = vmax.f32 %v1367_v23, %v1847_v24  ;;  %v5032_v23 = vld [vmem:[#allocation10_spill] sm:$0xff]  ;;  %v5033_v24 = vld [vmem:[#allocation11_spill] sm:$0xff] }
 0x1ee   :  { %v3416_v38 = vpop.f32.mrf.mxu0  ;;  %v3520_v40 = vpop.f32.mrf.mxu1 }
 0x1ef   :  { %v2181_v47 = vmax.f32 %v2132_v60, 0.0  ;;  %v2077_v57 = vmax.f32 %v5019_v48, %v2028_v21  ;;  %v5034_v60 = vmax.f32 %v5032_v23, %v5033_v24 }
 0x1f0   :  { %v1370_v58 = vpop.f32.mrf.mxu0  ;;  %v1850_v45 = vpop.f32.mrf.mxu1 }
 0x1f1   :  { %v2960_v30 = vpack.c.bf16 %v2181_v47, %v2180_v17  ;;  %v2029_v54 = vmax.f32 %v1370_v58, %v1850_v45  ;;  %v2133_v13 = vadd.f32 %v4616_v15, %v2077_v57 }
 0x1f2   :  { %v3417_v55 = vpop.f32.mrf.mxu0  ;;  %v3521_v41 = vpop.f32.mrf.mxu1 }
 0x1f3   :  { %3036 = vst [vmem:[%s4889_s3 + $0x50] sm:$0xff] %v2960_v30   ;;  %v2078_v50 = vmax.f32 %v5022_v49, %v2029_v54  ;;  %v2182_v5 = vmax.f32 %v2133_v13, 0.0  ;;  %v5035_v30 = vld [vmem:[#allocation12_spill] sm:$0xff]  ;;  %v5036_v54 = vld [vmem:[#allocation13_spill] sm:$0xff] }
 0x1f4   :  { %v1375_v8 = vpop.f32.mrf.mxu0  ;;  %v1855_v37 = vpop.f32.mrf.mxu1  ;;  %v5037_v55 = vmax.f32 %v5035_v30, %v5036_v54 }
 0x1f5   :  { %v2134_v9 = vadd.f32 %v4616_v15, %v2078_v50  ;;  %v2030_v4 = vmax.f32 %v1375_v8, %v1855_v37 }
 0x1f6   :  { %v3420_v44 = vpop.f32.mrf.mxu0  ;;  %v3524_v11 = vpop.f32.mrf.mxu1 }
 0x1f7   :  { %v2183_v10 = vmax.f32 %v2134_v9, 0.0  ;;  %v2079_v59 = vmax.f32 %v5025_v33, %v2030_v4  ;;  %v5038_v9 = vld [vmem:[#allocation14_spill] sm:$0xff]  ;;  %v5039_v4 = vld [vmem:[#allocation15_spill] sm:$0xff] }
 0x1f8   :  { %v1378_v0 = vpop.f32.mrf.mxu0  ;;  %v1858_v1 = vpop.f32.mrf.mxu1  ;;  %v5040_v44 = vmax.f32 %v5038_v9, %v5039_v4 }
 0x1f9   :  { %v2965_v2 = vpack.c.bf16 %v2183_v10, %v2182_v5  ;;  %v2031_v18 = vmax.f32 %v1378_v0, %v1858_v1  ;;  %v2135_v19 = vadd.f32 %v4616_v15, %v2079_v59 }
 0x1fa   :  { %v3421_v35 = vpop.f32.mrf.mxu0  ;;  %v3525_v36 = vpop.f32.mrf.mxu1 }
 0x1fb   :  { %3037 = vst [vmem:[%s4889_s3 + $0x58] sm:$0xff] %v2965_v2   ;;  %v2080_v16 = vmax.f32 %v5028_v14, %v2031_v18  ;;  %v2184_v43 = vmax.f32 %v2135_v19, 0.0  ;;  %v5041_v2 = vld [vmem:[#allocation16_spill] sm:$0xff]  ;;  %v5042_v18 = vld [vmem:[#allocation17_spill] sm:$0xff] }
 0x1fc   :  { %v1383_v62 = vpop.f32.mrf.mxu0  ;;  %v1863_v63 = vpop.f32.mrf.mxu1  ;;  %v5043_v35 = vmax.f32 %v5041_v2, %v5042_v18 }
 0x1fd   :  { %v2136_v53 = vadd.f32 %v4616_v15, %v2080_v16  ;;  %v2032_v61 = vmax.f32 %v1383_v62, %v1863_v63 }
 0x1fe   :  { %v3424_v32 = vpop.f32.mrf.mxu0  ;;  %v3528_v42 = vpop.f32.mrf.mxu1 }
 0x1ff   :  { %v2185_v22 = vmax.f32 %v2136_v53, 0.0  ;;  %v2081_v7 = vmax.f32 %v5031_v6, %v2032_v61  ;;  %v5044_v53 = vld [vmem:[#allocation18_spill] sm:$0xff]  ;;  %v5045_v61 = vld [vmem:[#allocation19_spill] sm:$0xff] }
 0x200   :  { %v1386_v34 = vpop.f32.mrf.mxu0  ;;  %v1866_v25 = vpop.f32.mrf.mxu1  ;;  %v5046_v32 = vmax.f32 %v5044_v53, %v5045_v61 }
 0x201   :  { %v2970_v26 = vpack.c.bf16 %v2185_v22, %v2184_v43  ;;  %v2033_v46 = vmax.f32 %v1386_v34, %v1866_v25  ;;  %v2137_v3 = vadd.f32 %v4616_v15, %v2081_v7 }
 0x202   :  { %v3425_v52 = vpop.f32.mrf.mxu0  ;;  %v3529_v39 = vpop.f32.mrf.mxu1 }
 0x203   :  { %3038 = vst [vmem:[%s4889_s3 + $0x60] sm:$0xff] %v2970_v26   ;;  %v2082_v21 = vmax.f32 %v5034_v60, %v2033_v46  ;;  %v2186_v58 = vmax.f32 %v2137_v3, 0.0  ;;  %v5047_v26 = vld [vmem:[#allocation20_spill] sm:$0xff]  ;;  %v5048_v46 = vld [vmem:[#allocation21_spill] sm:$0xff] }
 0x204   :  { %v1391_v38 = vpop.f32.mrf.mxu0  ;;  %v1871_v40 = vpop.f32.mrf.mxu1  ;;  %v5049_v52 = vmax.f32 %v5047_v26, %v5048_v46 }
 0x205   :  { %v2138_v17 = vadd.f32 %v4616_v15, %v2082_v21  ;;  %v2034_v47 = vmax.f32 %v1391_v38, %v1871_v40 }
 0x206   :  { %v3428_v48 = vpop.f32.mrf.mxu0  ;;  %v3532_v57 = vpop.f32.mrf.mxu1 }
 0x207   :  { %v2187_v45 = vmax.f32 %v2138_v17, 0.0  ;;  %v2083_v41 = vmax.f32 %v5037_v55, %v2034_v47  ;;  %v5050_v17 = vld [vmem:[#allocation22_spill] sm:$0xff]  ;;  %v5051_v47 = vld [vmem:[#allocation23_spill] sm:$0xff] }
 0x208   :  { %v1394_v13 = vpop.f32.mrf.mxu0  ;;  %v1874_v31 = vpop.f32.mrf.mxu1  ;;  %v5052_v48 = vmax.f32 %v5050_v17, %v5051_v47 }
 0x209   :  { %v2975_v51 = vpack.c.bf16 %v2187_v45, %v2186_v58  ;;  %v2035_v49 = vmax.f32 %v1394_v13, %v1874_v31  ;;  %v2139_v37 = vadd.f32 %v4616_v15, %v2083_v41 }
 0x20a   :  { %v3429_v50 = vpop.f32.mrf.mxu0  ;;  %v3533_v8 = vpop.f32.mrf.mxu1 }
 0x20b   :  { %3039 = vst [vmem:[%s4889_s3 + $0x68] sm:$0xff] %v2975_v51   ;;  %v2084_v11 = vmax.f32 %v5040_v44, %v2035_v49  ;;  %v2188_v0 = vmax.f32 %v2139_v37, 0.0  ;;  %v5053_v51 = vld [vmem:[#allocation24_spill] sm:$0xff]  ;;  %v5054_v49 = vld [vmem:[#allocation25_spill] sm:$0xff] }
 0x20c   :  { %v1399_v5 = vpop.f32.mrf.mxu0  ;;  %v1879_v10 = vpop.f32.mrf.mxu1  ;;  %v5055_v50 = vmax.f32 %v5053_v51, %v5054_v49 }
 0x20d   :  { %v2140_v12 = vadd.f32 %v4616_v15, %v2084_v11  ;;  %v2036_v56 = vmax.f32 %v1399_v5, %v1879_v10 }
 0x20e   :  { %v3432_v33 = vpop.f32.mrf.mxu0  ;;  %v3536_v59 = vpop.f32.mrf.mxu1 }
 0x20f   :  { %v2189_v1 = vmax.f32 %v2140_v12, 0.0  ;;  %v2085_v36 = vmax.f32 %v5043_v35, %v2036_v56  ;;  %v5056_v12 = vld [vmem:[#allocation26_spill] sm:$0xff]  ;;  %v5057_v56 = vld [vmem:[#allocation27_spill] sm:$0xff] }
 0x210   :  { %v1402_v19 = vpop.f32.mrf.mxu0  ;;  %v1882_v28 = vpop.f32.mrf.mxu1  ;;  %v5058_v33 = vmax.f32 %v5056_v12, %v5057_v56 }
 0x211   :  { %v2980_v29 = vpack.c.bf16 %v2189_v1, %v2188_v0  ;;  %v2037_v14 = vmax.f32 %v1402_v19, %v1882_v28  ;;  %v2141_v63 = vadd.f32 %v4616_v15, %v2085_v36 }
 0x212   :  { %v3433_v16 = vpop.f32.mrf.mxu0  ;;  %v3537_v62 = vpop.f32.mrf.mxu1 }
 0x213   :  { %3040 = vst [vmem:[%s4889_s3 + $0x70] sm:$0xff] %v2980_v29   ;;  %v2086_v42 = vmax.f32 %v5046_v32, %v2037_v14  ;;  %v2190_v34 = vmax.f32 %v2141_v63, 0.0  ;;  %v5059_v29 = vld [vmem:[#allocation28_spill] sm:$0xff]  ;;  %v5060_v14 = vld [vmem:[#allocation29_spill] sm:$0xff] }
 0x214   :  { %v1407_v43 = vpop.f32.mrf.mxu0  ;;  %v1887_v22 = vpop.f32.mrf.mxu1  ;;  %v5061_v16 = vmax.f32 %v5059_v29, %v5060_v14 }
 0x215   :  { %v2142_v20 = vadd.f32 %v4616_v15, %v2086_v42  ;;  %v2038_v27 = vmax.f32 %v1407_v43, %v1887_v22 }
 0x216   :  { %v3436_v6 = vpop.f32.mrf.mxu0  ;;  %v3540_v7 = vpop.f32.mrf.mxu1 }
 0x217   :  { %v2191_v25 = vmax.f32 %v2142_v20, 0.0  ;;  %v2087_v39 = vmax.f32 %v5049_v52, %v2038_v27  ;;  %v5062_v20 = vld [vmem:[#allocation30_spill] sm:$0xff]  ;;  %v5063_v27 = vld [vmem:[#allocation31_spill] sm:$0xff] }
 0x218   :  { %v1410_v3 = vpop.f32.mrf.mxu0  ;;  %v1890_v23 = vpop.f32.mrf.mxu1  ;;  %v5064_v6 = vmax.f32 %v5062_v20, %v5063_v27 }
 0x219   :  { %v2985_v24 = vpack.c.bf16 %v2191_v25, %v2190_v34  ;;  %v2039_v60 = vmax.f32 %v1410_v3, %v1890_v23  ;;  %v2143_v40 = vadd.f32 %v4616_v15, %v2087_v39 }
 0x21a   :  { %v3437_v21 = vpop.f32.mrf.mxu0  ;;  %v3541_v38 = vpop.f32.mrf.mxu1 }
 0x21b   :  { %3041 = vst [vmem:[%s4889_s3 + $0x78] sm:$0xff] %v2985_v24   ;;  %v2088_v57 = vmax.f32 %v5052_v48, %v2039_v60  ;;  %v2192_v13 = vmax.f32 %v2143_v40, 0.0  ;;  %v5065_v24 = vld [vmem:[#allocation32_spill] sm:$0xff]  ;;  %v5066_v60 = vld [vmem:[#allocation33_spill] sm:$0xff] }
 0x21c   :  { %v1415_v58 = vpop.f32.mrf.mxu0  ;;  %v1895_v45 = vpop.f32.mrf.mxu1  ;;  %v5067_v21 = vmax.f32 %v5065_v24, %v5066_v60 }
 0x21d   :  { %v2144_v30 = vadd.f32 %v4616_v15, %v2088_v57  ;;  %v2040_v54 = vmax.f32 %v1415_v58, %v1895_v45 }
 0x21e   :  { %v3440_v55 = vpop.f32.mrf.mxu0  ;;  %v3544_v41 = vpop.f32.mrf.mxu1 }
 0x21f   :  { %v2193_v31 = vmax.f32 %v2144_v30, 0.0  ;;  %v2089_v8 = vmax.f32 %v5055_v50, %v2040_v54  ;;  %v5068_v30 = vld [vmem:[#allocation34_spill] sm:$0xff]  ;;  %v5069_v54 = vld [vmem:[#allocation35_spill] sm:$0xff] }
 0x220   :  { %v1418_v37 = vpop.f32.mrf.mxu0  ;;  %v1898_v9 = vpop.f32.mrf.mxu1  ;;  %v5070_v55 = vmax.f32 %v5068_v30, %v5069_v54 }
 0x221   :  { %v2990_v4 = vpack.c.bf16 %v2193_v31, %v2192_v13  ;;  %v2041_v44 = vmax.f32 %v1418_v37, %v1898_v9  ;;  %v2145_v10 = vadd.f32 %v4616_v15, %v2089_v8 }
 0x222   :  { %v3441_v11 = vpop.f32.mrf.mxu0  ;;  %v3545_v5 = vpop.f32.mrf.mxu1 }
 0x223   :  { %3042 = vst [vmem:[%s4889_s3 + $0x80] sm:$0xff] %v2990_v4   ;;  %v2090_v59 = vmax.f32 %v5058_v33, %v2041_v44  ;;  %v2194_v19 = vmax.f32 %v2145_v10, 0.0  ;;  %v5071_v4 = vld [vmem:[#allocation36_spill] sm:$0xff]  ;;  %v5072_v44 = vld [vmem:[#allocation37_spill] sm:$0xff] }
 0x224   :  { %v1423_v0 = vpop.f32.mrf.mxu0  ;;  %v1903_v1 = vpop.f32.mrf.mxu1  ;;  %v5073_v11 = vmax.f32 %v5071_v4, %v5072_v44 }
 0x225   :  { %v2146_v2 = vadd.f32 %v4616_v15, %v2090_v59  ;;  %v2042_v18 = vmax.f32 %v1423_v0, %v1903_v1 }
 0x226   :  { %v3444_v35 = vpop.f32.mrf.mxu0  ;;  %v3548_v36 = vpop.f32.mrf.mxu1 }
 0x227   :  { %v2195_v28 = vmax.f32 %v2146_v2, 0.0  ;;  %v2091_v62 = vmax.f32 %v5061_v16, %v2042_v18  ;;  %v5074_v2 = vld [vmem:[#allocation38_spill] sm:$0xff]  ;;  %v5075_v18 = vld [vmem:[#allocation39_spill] sm:$0xff] }
 0x228   :  { %v1426_v63 = vpop.f32.mrf.mxu0  ;;  %v1906_v53 = vpop.f32.mrf.mxu1  ;;  %v5076_v35 = vmax.f32 %v5074_v2, %v5075_v18 }
 0x229   :  { %v2995_v61 = vpack.c.bf16 %v2195_v28, %v2194_v19  ;;  %v2043_v32 = vmax.f32 %v1426_v63, %v1906_v53  ;;  %v2147_v22 = vadd.f32 %v4616_v15, %v2091_v62 }
 0x22a   :  { %v3445_v42 = vpop.f32.mrf.mxu0  ;;  %v3549_v43 = vpop.f32.mrf.mxu1 }
 0x22b   :  { %3043 = vst [vmem:[%s4889_s3 + $0x88] sm:$0xff] %v2995_v61   ;;  %v2092_v7 = vmax.f32 %v5064_v6, %v2043_v32  ;;  %v2196_v3 = vmax.f32 %v2147_v22, 0.0  ;;  %v5077_v61 = vld [vmem:[#allocation40_spill] sm:$0xff]  ;;  %v5078_v32 = vld [vmem:[#allocation41_spill] sm:$0xff] }
 0x22c   :  { %v1431_v34 = vpop.f32.mrf.mxu0  ;;  %v1911_v25 = vpop.f32.mrf.mxu1  ;;  %v5079_v42 = vmax.f32 %v5077_v61, %v5078_v32 }
 0x22d   :  { %v2148_v26 = vadd.f32 %v4616_v15, %v2092_v7  ;;  %v2044_v46 = vmax.f32 %v1431_v34, %v1911_v25 }
 0x22e   :  { %v3448_v52 = vpop.f32.mrf.mxu0  ;;  %v3552_v39 = vpop.f32.mrf.mxu1 }
 0x22f   :  { %v2197_v23 = vmax.f32 %v2148_v26, 0.0  ;;  %v2093_v38 = vmax.f32 %v5067_v21, %v2044_v46  ;;  %v5080_v26 = vld [vmem:[#allocation42_spill] sm:$0xff]  ;;  %v5081_v46 = vld [vmem:[#allocation43_spill] sm:$0xff] }
 0x230   :  { %v1434_v40 = vpop.f32.mrf.mxu0  ;;  %v1914_v17 = vpop.f32.mrf.mxu1  ;;  %v5082_v52 = vmax.f32 %v5080_v26, %v5081_v46 }
 0x231   :  { %v3000_v47 = vpack.c.bf16 %v2197_v23, %v2196_v3  ;;  %v2045_v48 = vmax.f32 %v1434_v40, %v1914_v17  ;;  %v2149_v45 = vadd.f32 %v4616_v15, %v2093_v38 }
 0x232   :  { %v3449_v57 = vpop.f32.mrf.mxu0  ;;  %v3553_v58 = vpop.f32.mrf.mxu1 }
 0x233   :  { %3044 = vst [vmem:[%s4889_s3 + $0x90] sm:$0xff] %v3000_v47   ;;  %v2094_v41 = vmax.f32 %v5070_v55, %v2045_v48  ;;  %v2198_v37 = vmax.f32 %v2149_v45, 0.0  ;;  %v5083_v47 = vld [vmem:[#allocation44_spill] sm:$0xff]  ;;  %v5084_v48 = vld [vmem:[#allocation45_spill] sm:$0xff] }
 0x234   :  { %v1439_v13 = vpop.f32.mrf.mxu0  ;;  %v1919_v31 = vpop.f32.mrf.mxu1  ;;  %v5085_v57 = vmax.f32 %v5083_v47, %v5084_v48 }
 0x235   :  { %v2150_v51 = vadd.f32 %v4616_v15, %v2094_v41  ;;  %v2046_v49 = vmax.f32 %v1439_v13, %v1919_v31 }
 0x236   :  { %v3452_v50 = vpop.f32.mrf.mxu0  ;;  %v3556_v8 = vpop.f32.mrf.mxu1 }
 0x237   :  { %v2199_v9 = vmax.f32 %v2150_v51, 0.0  ;;  %v2095_v5 = vmax.f32 %v5073_v11, %v2046_v49  ;;  %v5086_v51 = vld [vmem:[#allocation46_spill] sm:$0xff]  ;;  %v5087_v49 = vld [vmem:[#allocation47_spill] sm:$0xff] }
 0x238   :  { %v1442_v10 = vpop.f32.mrf.mxu0  ;;  %v1922_v12 = vpop.f32.mrf.mxu1  ;;  %v5088_v50 = vmax.f32 %v5086_v51, %v5087_v49 }
 0x239   :  { %v3005_v56 = vpack.c.bf16 %v2199_v9, %v2198_v37  ;;  %v2047_v33 = vmax.f32 %v1442_v10, %v1922_v12  ;;  %v2151_v1 = vadd.f32 %v4616_v15, %v2095_v5 }
 0x23a   :  { %v3453_v59 = vpop.f32.mrf.mxu0  ;;  %v3557_v0 = vpop.f32.mrf.mxu1 }
 0x23b   :  { %3045 = vst [vmem:[%s4889_s3 + $0x98] sm:$0xff] %v3005_v56   ;;  %v2096_v36 = vmax.f32 %v5076_v35, %v2047_v33  ;;  %v2200_v63 = vmax.f32 %v2151_v1, 0.0  ;;  %v5089_v56 = vld [vmem:[#allocation48_spill] sm:$0xff]  ;;  %v5090_v33 = vld [vmem:[#allocation49_spill] sm:$0xff] }
 0x23c   :  { %v1447_v19 = vpop.f32.mrf.mxu0  ;;  %v1927_v28 = vpop.f32.mrf.mxu1  ;;  %v5091_v59 = vmax.f32 %v5089_v56, %v5090_v33 }
 0x23d   :  { %v2152_v29 = vadd.f32 %v4616_v15, %v2096_v36  ;;  %v2048_v14 = vmax.f32 %v1447_v19, %v1927_v28 }
 0x23e   :  { %v3456_v16 = vpop.f32.mrf.mxu0  ;;  %v3560_v62 = vpop.f32.mrf.mxu1 }
 0x23f   :  { %v2201_v53 = vmax.f32 %v2152_v29, 0.0  ;;  %v2097_v43 = vmax.f32 %v5079_v42, %v2048_v14  ;;  %v5092_v29 = vld [vmem:[#allocation50_spill] sm:$0xff]  ;;  %v5093_v14 = vld [vmem:[#allocation51_spill] sm:$0xff] }
 0x240   :  { %v1450_v22 = vpop.f32.mrf.mxu0  ;;  %v1930_v20 = vpop.f32.mrf.mxu1  ;;  %v5094_v16 = vmax.f32 %v5092_v29, %v5093_v14 }
 0x241   :  { %v3010_v27 = vpack.c.bf16 %v2201_v53, %v2200_v63  ;;  %v2049_v6 = vmax.f32 %v1450_v22, %v1930_v20  ;;  %v2153_v25 = vadd.f32 %v4616_v15, %v2097_v43 }
 0x242   :  { %v3457_v7 = vpop.f32.mrf.mxu0  ;;  %v3561_v34 = vpop.f32.mrf.mxu1 }
 0x243   :  { %3046 = vst [vmem:[%s4889_s3 + $0xa0] sm:$0xff] %v3010_v27   ;;  %v2098_v39 = vmax.f32 %v5082_v52, %v2049_v6  ;;  %v2202_v40 = vmax.f32 %v2153_v25, 0.0  ;;  %v5095_v27 = vld [vmem:[#allocation52_spill] sm:$0xff]  ;;  %v5096_v6 = vld [vmem:[#allocation53_spill] sm:$0xff] }
 0x244   :  { %v1455_v3 = vpop.f32.mrf.mxu0  ;;  %v1935_v23 = vpop.f32.mrf.mxu1  ;;  %v5097_v7 = vmax.f32 %v5095_v27, %v5096_v6 }
 0x245   :  { %v2154_v24 = vadd.f32 %v4616_v15, %v2098_v39  ;;  %v2050_v60 = vmax.f32 %v1455_v3, %v1935_v23 }
 0x246   :  { %v3460_v21 = vpop.f32.mrf.mxu0  ;;  %v3564_v38 = vpop.f32.mrf.mxu1 }
 0x247   :  { %v2203_v17 = vmax.f32 %v2154_v24, 0.0  ;;  %v2099_v58 = vmax.f32 %v5085_v57, %v2050_v60 }
 0x248   :  { %v1458_v45 = vpop.f32.mrf.mxu0  ;;  %v1938_v30 = vpop.f32.mrf.mxu1 }
 0x249   :  { %v3015_v54 = vpack.c.bf16 %v2203_v17, %v2202_v40  ;;  %v2051_v55 = vmax.f32 %v1458_v45, %v1938_v30  ;;  %v2155_v31 = vadd.f32 %v4616_v15, %v2099_v58 }
 0x24a   :  { %v3461_v41 = vpop.f32.mrf.mxu0  ;;  %v3565_v13 = vpop.f32.mrf.mxu1 }
 0x24b   :  { %3047 = vst [vmem:[%s4889_s3 + $0xa8] sm:$0xff] %v3015_v54   ;;  %v2100_v8 = vmax.f32 %v5088_v50, %v2051_v55  ;;  %v2204_v10 = vmax.f32 %v2155_v31, 0.0 }
 0x24c   :  { %v1463_v37 = vpop.f32.mrf.mxu0  ;;  %v1943_v9 = vpop.f32.mrf.mxu1 }
 0x24d   :  { %v2156_v4 = vadd.f32 %v4616_v15, %v2100_v8  ;;  %v2052_v44 = vmax.f32 %v1463_v37, %v1943_v9 }
 0x24e   :  { %v3464_v11 = vpop.f32.mrf.mxu0  ;;  %v3568_v5 = vpop.f32.mrf.mxu1 }
 0x24f   :  { %v2205_v12 = vmax.f32 %v2156_v4, 0.0  ;;  %v2101_v0 = vmax.f32 %v5091_v59, %v2052_v44 }
 0x250   :  { %v1466_v1 = vpop.f32.mrf.mxu0  ;;  %v1946_v2 = vpop.f32.mrf.mxu1 }
 0x251   :  { %v3020_v18 = vpack.c.bf16 %v2205_v12, %v2204_v10  ;;  %v2053_v35 = vmax.f32 %v1466_v1, %v1946_v2  ;;  %v2157_v28 = vadd.f32 %v4616_v15, %v2101_v0 }
 0x252   :  { %v3465_v36 = vpop.f32.mrf.mxu0  ;;  %v3569_v19 = vpop.f32.mrf.mxu1 }
 0x253   :  { %3048 = vst [vmem:[%s4889_s3 + $0xb0] sm:$0xff] %v3020_v18   ;;  %v2102_v62 = vmax.f32 %v5094_v16, %v2053_v35  ;;  %v2206_v22 = vmax.f32 %v2157_v28, 0.0 }
 0x254   :  { %v1471_v63 = vpop.f32.mrf.mxu0  ;;  %v1951_v53 = vpop.f32.mrf.mxu1 }
 0x255   :  { %v2158_v61 = vadd.f32 %v4616_v15, %v2102_v62  ;;  %v2054_v32 = vmax.f32 %v1471_v63, %v1951_v53 }
 0x256   :  { %v3468_v42 = vpop.f32.mrf.mxu0  ;;  %v3572_v43 = vpop.f32.mrf.mxu1 }
 0x257   :  { %v2207_v20 = vmax.f32 %v2158_v61, 0.0  ;;  %v2103_v34 = vmax.f32 %v5097_v7, %v2054_v32 }
 0x258   :  { %v1474_v25 = vpop.f32.mrf.mxu0  ;;  %v1954_v26 = vpop.f32.mrf.mxu1 }
 0x259   :  { %v3025_v46 = vpack.c.bf16 %v2207_v20, %v2206_v22  ;;  %v2159_v52 = vadd.f32 %v4616_v15, %v2103_v34 }
 0x25a   :  { %v3469_v39 = vpop.f32.mrf.mxu0  ;;  %v3573_v3 = vpop.f32.mrf.mxu1 }
 0x25b   :  { %3049 = vst [vmem:[%s4889_s3 + $0xb8] sm:$0xff] %v3025_v46   ;;  %v2208_v23 = vmax.f32 %v2159_v52, 0.0 }
 0x25d   :  { %v2906_v24 = vpack.c.bf16 %v2208_v23, %v2208_v23 }
 0x25f   :  { %2454 = vst [vmem:[%s4889_s3 + $0xc0] sm:$0xf] %v2906_v24 }

// kernel: net_forward.4
= control target key start
LH: loop header
LB: loop body
LE: loop exit
PB: predicated region body
PF: predicated region fallthrough
CT: control target
= control target key end

     0   :  { %v811_v0 = vmov 0   ;;  %vm131_vm0 = vcmask 179200   ;;  %vm144_vm1 = vcmask 1042432   ;;  %s1104_s1 = inlined_call_operand.vmem [shape: bf16[150,128], index: 1, kind: input, shape index: {}]   ;;  %s1105_s0 = inlined_call_operand.vmem [shape: bf16[4,56,150], index: 0, kind: input, shape index: {}]   ;;  %s1106_s2 = inlined_call_operand.vmem [shape: f32[1,128], index: 2, kind: input, shape index: {}]   ;;  %s1107_s3 = inlined_call_operand.vmem [shape: bf16[56,128], index: 3, kind: output, shape index: {}]  }
   0x1   :  { %148 = vmatprep.subr.bf16.mxu0 %v811_v0  ;;  %265 = vmatprep.subr.bf16.mxu1 %v811_v0  ;;  %v837_v1 = vld [vmem:[%s1104_s1 + $0x38] sm:$0xff]   ;;  %v844_v2 = vld [vmem:[%s1104_s1 + $0x30] sm:$0xff]   ;;  %v853_v3 = vld [vmem:[%s1104_s1 + $0x28] sm:$0xff]  }
   0x2   :  { %149 = vmatpush1.bf16.msra.mxu0 %v837_v1  ;;  %266 = vmatpush1.bf16.msra.mxu1 %v837_v1  ;;  %v862_v4 = vld [vmem:[%s1104_s1 + $0x20] sm:$0xff]   ;;  %v878_v7 = vld [vmem:[%s1104_s1 + $0x18] sm:$0xff]   ;;  %v888_v8 = vld [vmem:[%s1104_s1 + $0x10] sm:$0xff]  }
   0x3   :  { %150 = vmatprep.subr.bf16.mxu0 %v811_v0  ;;  %267 = vmatprep.subr.bf16.mxu1 %v811_v0  ;;  %v769_v5 = vld [vmem:[%s1105_s0 + $0x4] ss:$8 sps:$4 sm:$0xff]   ;;  %v765_v11 = vld [vmem:[%s1104_s1 + $0x48] ss:$0 sps:$4 sm:$0x77]   ;;  %v40_v24 = vld [vmem:[%s1105_s0 + $0x30] sm:$0xff] }
   0x4   :  { %663 = vmatprep.mubr.msk.bf16.mxu0 %vm131_vm0, %v769_v5  ;;  %v772_v6 = vld [vmem:[%s1105_s0 + $0x3c] ss:$8 sps:$4 sm:$0xff]   ;;  %v897_v9 = vld [vmem:[%s1104_s1 + $0x8] sm:$0xff]   ;;  %v917_v12 = vsel %vm144_vm1, %v765_v11, 0  ;;  %v770_v15 = vld [vmem:[%s1105_s0 + $0x38] ss:$8 sps:$4 sm:$0xff]   ;;  %v652_v26 = vcombine.high %v40_v24, %v40_v24  ;;  %v651_v28 = vcombine.low %v40_v24, %v40_v24 }
   0x5   :  { %682 = vmatprep.mubr.msk.bf16.mxu1 %vm131_vm0, %v772_v6  ;;  %v906_v10 = vld [vmem:[%s1104_s1] sm:$0xff]   ;;  %v773_v16 = vld [vmem:[%s1105_s0 + $0x14] ss:$8 sps:$4 sm:$0xff]   ;;  %v777_v18 = vld [vmem:[%s1105_s0 + $0x10] ss:$8 sps:$4 sm:$0xff]  }
   0x6   :  { %151 = vmatpush1.bf16.msra.mxu0 %v844_v2  ;;  %268 = vmatpush1.bf16.msra.mxu1 %v844_v2  ;;  %v924_v13 = vld [vmem:[%s1104_s1 + $0x40] sm:$0xff]   ;;  %v775_v17 = vld [vmem:[%s1105_s0 + $0x4c] ss:$8 sps:$4 sm:$0xff]   ;;  %v778_v19 = vld [vmem:[%s1105_s0 + $0x48] ss:$8 sps:$4 sm:$0xff]  }
   0x7   :  { %152 = vmatprep.subr.bf16.mxu0 %v811_v0  ;;  %269 = vmatprep.subr.bf16.mxu1 %v811_v0  ;;  %v767_v14 = vld [vmem:[%s1105_s0] ss:$8 sps:$4 sm:$0xff]   ;;  %v779_v20 = vld [vmem:[%s1105_s0 + $0x24] ss:$8 sps:$4 sm:$0xff]   ;;  %v791_v30 = vld [vmem:[%s1105_s0 + $0x74] ss:$8 sps:$4 sm:$0xff]  }
   0x8   :  { %v781_v21 = vld [vmem:[%s1105_s0 + $0x5c] ss:$8 sps:$4 sm:$0xff]   ;;  %v783_v22 = vld [vmem:[%s1105_s0 + $0x20] ss:$8 sps:$4 sm:$0xff]   ;;  %v794_v31 = vld [vmem:[%s1105_s0 + $0xac] ss:$8 sps:$4 sm:$0xff]  }
   0x9   :  { %v784_v23 = vld [vmem:[%s1105_s0 + $0x58] ss:$8 sps:$4 sm:$0xff]   ;;  %v673_v25 = vld [vmem:[%s1105_s0 + $0x68] sm:$0xff]  ;;  %v797_v35 = vld [vmem:[%s1105_s0 + $0xbc] ss:$8 sps:$4 sm:$0xff]  }
   0xa   :  { %153 = vmatpush1.bf16.msra.mxu0 %v853_v3  ;;  %270 = vmatpush1.bf16.msra.mxu1 %v853_v3  ;;  %v681_v27 = vcombine.high %v673_v25, %v673_v25  ;;  %v680_v29 = vcombine.low %v673_v25, %v673_v25  ;;  %v789_v32 = vld [vmem:[%s1105_s0 + $0x70] ss:$8 sps:$4 sm:$0xff]   ;;  %v795_v34 = vld [vmem:[%s1105_s0 + $0x84] ss:$8 sps:$4 sm:$0xff]   ;;  %v799_v36 = vld [vmem:[%s1105_s0 + $0x80] ss:$8 sps:$4 sm:$0xff]  }
   0xb   :  { %154 = vmatprep.subr.bf16.mxu0 %v811_v0  ;;  %271 = vmatprep.subr.bf16.mxu1 %v811_v0  ;;  %v792_v33 = vld [vmem:[%s1105_s0 + $0xa8] ss:$8 sps:$4 sm:$0xff]   ;;  %v800_v37 = vld [vmem:[%s1105_s0 + $0xb8] ss:$8 sps:$4 sm:$0xff]   ;;  %v801_v38 = vld [vmem:[%s1105_s0 + $0x94] ss:$8 sps:$4 sm:$0xff]  }
   0xc   :  { %v803_v39 = vld [vmem:[%s1105_s0 + $0xcc] ss:$8 sps:$4 sm:$0xff]   ;;  %v692_v40 = vld [vmem:[%s1105_s0 + $0xa0] sm:$0xff]  ;;  %v711_v41 = vld [vmem:[%s1105_s0 + $0xd8] sm:$0xff] }
   0xd   :  { %v805_v42 = vld [vmem:[%s1105_s0 + $0x90] ss:$8 sps:$4 sm:$0xff]   ;;  %v700_v44 = vcombine.high %v692_v40, %v692_v40  ;;  %v719_v45 = vcombine.high %v711_v41, %v711_v41  ;;  %v699_v46 = vcombine.low %v692_v40, %v692_v40  ;;  %v718_v47 = vcombine.low %v711_v41, %v711_v41 }
   0xe   :  { %155 = vmatpush1.bf16.msra.mxu0 %v862_v4  ;;  %272 = vmatpush1.bf16.msra.mxu1 %v862_v4  ;;  %v806_v43 = vld [vmem:[%s1105_s0 + $0xc8] ss:$8 sps:$4 sm:$0xff]  }
   0xf   :  { %156 = vmatprep.subr.bf16.mxu0 %v811_v0  ;;  %273 = vmatprep.subr.bf16.mxu1 %v811_v0 }
  0x12   :  { %157 = vmatpush1.bf16.msra.mxu0 %v878_v7  ;;  %274 = vmatpush1.bf16.msra.mxu1 %v878_v7 }
  0x13   :  { %158 = vmatprep.subr.bf16.mxu0 %v811_v0  ;;  %275 = vmatprep.subr.bf16.mxu1 %v811_v0 }
  0x16   :  { %159 = vmatpush1.bf16.msra.mxu0 %v888_v8  ;;  %276 = vmatpush1.bf16.msra.mxu1 %v888_v8 }
  0x17   :  { %160 = vmatprep.subr.bf16.mxu0 %v811_v0  ;;  %277 = vmatprep.subr.bf16.mxu1 %v811_v0 }
  0x1a   :  { %161 = vmatpush1.bf16.msra.mxu0 %v897_v9  ;;  %278 = vmatpush1.bf16.msra.mxu1 %v897_v9 }
  0x1b   :  { %162 = vmatprep.subr.bf16.mxu0 %v811_v0  ;;  %279 = vmatprep.subr.bf16.mxu1 %v811_v0 }
  0x1e   :  { %163 = vmatpush1.bf16.msra.mxu0 %v906_v10  ;;  %280 = vmatpush1.bf16.msra.mxu1 %v906_v10 }
  0x1f   :  { %176 = vmatprep.subr.bf16.mxu0 %v811_v0  ;;  %293 = vmatprep.subr.bf16.mxu1 %v811_v0 }
  0x22   :  { %177 = vmatpush2.bf16.msra.mxu0 %v917_v12  ;;  %294 = vmatpush2.bf16.msra.mxu1 %v917_v12 }
  0x23   :  { %178 = vmatprep.subr.bf16.mxu0 %v811_v0  ;;  %295 = vmatprep.subr.bf16.mxu1 %v811_v0 }
  0x26   :  { %179 = vmatpush2.bf16.msra.mxu0 %v924_v13  ;;  %296 = vmatpush2.bf16.msra.mxu1 %v924_v13 }
  0x27   :  { %382 = vmatprep.subr.bf16.mxu0 %v811_v0  ;;  %499 = vmatprep.subr.bf16.mxu1 %v811_v0 }
  0x29   :  { %181 = vmatmul.mubr.bf16.vlgmr.msra.gmra.mxu0 %v767_v14  ;;  %298 = vmatmul.mubr.bf16.vlgmr.msra.gmra.mxu1 %v770_v15 }
  0x2a   :  { %383 = vmatpush1.bf16.msra.mxu0 %v837_v1  ;;  %500 = vmatpush1.bf16.msra.mxu1 %v837_v1 }
  0x2b   :  { %384 = vmatprep.subr.bf16.mxu0 %v811_v0  ;;  %501 = vmatprep.subr.bf16.mxu1 %v811_v0 }
  0x2c   :  { %664 = vmatprep.mubr.msk.bf16.mxu0 %vm131_vm0, %v773_v16  ;;  %683 = vmatprep.mubr.msk.bf16.mxu1 %vm131_vm0, %v775_v17 }
  0x2e   :  { %385 = vmatpush1.bf16.msra.mxu0 %v844_v2  ;;  %502 = vmatpush1.bf16.msra.mxu1 %v844_v2 }
  0x2f   :  { %386 = vmatprep.subr.bf16.mxu0 %v811_v0  ;;  %503 = vmatprep.subr.bf16.mxu1 %v811_v0 }
  0x31   :  { %189 = vmatmul.mubr.bf16.gmra.mxu0 %v777_v18  ;;  %306 = vmatmul.mubr.bf16.gmra.mxu1 %v778_v19 }
  0x32   :  { %387 = vmatpush1.bf16.msra.mxu0 %v853_v3  ;;  %504 = vmatpush1.bf16.msra.mxu1 %v853_v3 }
  0x33   :  { %388 = vmatprep.subr.bf16.mxu0 %v811_v0  ;;  %505 = vmatprep.subr.bf16.mxu1 %v811_v0 }
  0x34   :  { %665 = vmatprep.mubr.msk.bf16.mxu0 %vm131_vm0, %v779_v20  ;;  %684 = vmatprep.mubr.msk.bf16.mxu1 %vm131_vm0, %v781_v21 }
  0x36   :  { %389 = vmatpush1.bf16.msra.mxu0 %v862_v4  ;;  %506 = vmatpush1.bf16.msra.mxu1 %v862_v4 }
  0x37   :  { %390 = vmatprep.subr.bf16.mxu0 %v811_v0  ;;  %507 = vmatprep.subr.bf16.mxu1 %v811_v0 }
  0x39   :  { %197 = vmatmul.mubr.bf16.gmra.mxu0 %v783_v22  ;;  %314 = vmatmul.mubr.bf16.gmra.mxu1 %v784_v23  ;;  %v1077_v23 = vld [vmem:[%s1106_s2] ss:$0 sm:$0xff] }
  0x3a   :  { %391 = vmatpush1.bf16.msra.mxu0 %v878_v7  ;;  %508 = vmatpush1.bf16.msra.mxu1 %v878_v7 }
  0x3b   :  { %392 = vmatprep.subr.bf16.mxu0 %v811_v0  ;;  %509 = vmatprep.subr.bf16.mxu1 %v811_v0 }
  0x3c   :  { %666 = vmatprep.mubr.msk.bf16.mxu0 %vm131_vm0, %v652_v26  ;;  %685 = vmatprep.mubr.msk.bf16.mxu1 %vm131_vm0, %v681_v27 }
  0x3e   :  { %393 = vmatpush1.bf16.msra.mxu0 %v888_v8  ;;  %510 = vmatpush1.bf16.msra.mxu1 %v888_v8 }
  0x3f   :  { %394 = vmatprep.subr.bf16.mxu0 %v811_v0  ;;  %511 = vmatprep.subr.bf16.mxu1 %v811_v0 }
  0x41   :  { %205 = vmatmul.mubr.bf16.gmra.mxu0 %v651_v28  ;;  %322 = vmatmul.mubr.bf16.gmra.mxu1 %v680_v29 }
  0x42   :  { %395 = vmatpush1.bf16.msra.mxu0 %v897_v9  ;;  %512 = vmatpush1.bf16.msra.mxu1 %v897_v9 }
  0x43   :  { %396 = vmatprep.subr.bf16.mxu0 %v811_v0  ;;  %513 = vmatprep.subr.bf16.mxu1 %v811_v0 }
  0x44   :  { %701 = vmatprep.mubr.msk.bf16.mxu0 %vm131_vm0, %v791_v30  ;;  %720 = vmatprep.mubr.msk.bf16.mxu1 %vm131_vm0, %v794_v31 }
  0x46   :  { %397 = vmatpush1.bf16.msra.mxu0 %v906_v10  ;;  %514 = vmatpush1.bf16.msra.mxu1 %v906_v10 }
  0x47   :  { %410 = vmatprep.subr.bf16.mxu0 %v811_v0  ;;  %527 = vmatprep.subr.bf16.mxu1 %v811_v0 }
  0x4a   :  { %411 = vmatpush2.bf16.msra.mxu0 %v917_v12  ;;  %528 = vmatpush2.bf16.msra.mxu1 %v917_v12 }
  0x4b   :  { %412 = vmatprep.subr.bf16.mxu0 %v811_v0  ;;  %529 = vmatprep.subr.bf16.mxu1 %v811_v0 }
  0x4e   :  { %413 = vmatpush2.bf16.msra.mxu0 %v924_v13  ;;  %530 = vmatpush2.bf16.msra.mxu1 %v924_v13 }
  0x51   :  { %415 = vmatmul.mubr.bf16.vlgmr.msra.gmra.mxu0 %v789_v32  ;;  %532 = vmatmul.mubr.bf16.vlgmr.msra.gmra.mxu1 %v792_v33 }
  0x52   :  { %702 = vmatprep.mubr.msk.bf16.mxu0 %vm131_vm0, %v795_v34  ;;  %721 = vmatprep.mubr.msk.bf16.mxu1 %vm131_vm0, %v797_v35 }
  0x59   :  { %423 = vmatmul.mubr.bf16.gmra.mxu0 %v799_v36  ;;  %540 = vmatmul.mubr.bf16.gmra.mxu1 %v800_v37 }
  0x5a   :  { %703 = vmatprep.mubr.msk.bf16.mxu0 %vm131_vm0, %v801_v38  ;;  %722 = vmatprep.mubr.msk.bf16.mxu1 %vm131_vm0, %v803_v39 }
  0x61   :  { %431 = vmatmul.mubr.bf16.gmra.mxu0 %v805_v42  ;;  %548 = vmatmul.mubr.bf16.gmra.mxu1 %v806_v43 }
  0x62   :  { %704 = vmatprep.mubr.msk.bf16.mxu0 %vm131_vm0, %v700_v44  ;;  %723 = vmatprep.mubr.msk.bf16.mxu1 %vm131_vm0, %v719_v45 }
  0x69   :  { %439 = vmatmul.mubr.bf16.gmra.mxu0 %v699_v46  ;;  %556 = vmatmul.mubr.bf16.gmra.mxu1 %v718_v47 }
  0xe9   :  { %v182_v48 = vpop.f32.mrf.mxu0  ;;  %v299_v49 = vpop.f32.mrf.mxu1 }
  0xea   :  { %v563_v18 = vmax.f32 %v182_v48, %v299_v49 }
  0xeb   :  { %v184_v50 = vpop.f32.mrf.mxu0  ;;  %v301_v51 = vpop.f32.mrf.mxu1 }
  0xed   :  { %v185_v52 = vpop.f32.mrf.mxu0  ;;  %v302_v53 = vpop.f32.mrf.mxu1 }
  0xee   :  { %v564_v26 = vmax.f32 %v185_v52, %v302_v53 }
  0xef   :  { %v187_v54 = vpop.f32.mrf.mxu0  ;;  %v304_v55 = vpop.f32.mrf.mxu1 }
  0xf1   :  { %v190_v56 = vpop.f32.mrf.mxu0  ;;  %v307_v57 = vpop.f32.mrf.mxu1 }
  0xf2   :  { %v565_v34 = vmax.f32 %v190_v56, %v307_v57 }
  0xf3   :  { %v192_v58 = vpop.f32.mrf.mxu0  ;;  %v309_v59 = vpop.f32.mrf.mxu1 }
  0xf5   :  { %v193_v60 = vpop.f32.mrf.mxu0  ;;  %v310_v61 = vpop.f32.mrf.mxu1 }
  0xf6   :  { %v566_v44 = vmax.f32 %v193_v60, %v310_v61 }
  0xf7   :  { %v195_v62 = vpop.f32.mrf.mxu0  ;;  %v312_v63 = vpop.f32.mrf.mxu1 }
  0xf9   :  { %v1062_v0 = vpop.f32.mrf.mxu0  ;;  %v1064_v1 = vpop.f32.mrf.mxu1 }
  0xfa   :  { %v567_v53 = vmax.f32 %v1062_v0, %v1064_v1 }
  0xfb   :  { %v200_v2 = vpop.f32.mrf.mxu0  ;;  %v317_v3 = vpop.f32.mrf.mxu1 }
  0xfd   :  { %v1066_v4 = vpop.f32.mrf.mxu0  ;;  %v1068_v5 = vpop.f32.mrf.mxu1 }
  0xfe   :  { %v568_v63 = vmax.f32 %v1066_v4, %v1068_v5 }
  0xff   :  { %v203_v6 = vpop.f32.mrf.mxu0  ;;  %v320_v7 = vpop.f32.mrf.mxu1 }
 0x101   :  { %v1070_v8 = vpop.f32.mrf.mxu0  ;;  %v1072_v9 = vpop.f32.mrf.mxu1 }
 0x103   :  { %v208_v10 = vpop.f32.mrf.mxu0  ;;  %v325_v11 = vpop.f32.mrf.mxu1 }
 0x105   :  { %v209_v12 = vpop.f32.mrf.mxu0  ;;  %v326_v13 = vpop.f32.mrf.mxu1 }
 0x106   :  { %v569_v12 = vmax.f32 %v1070_v8, %v1072_v9 }
 0x107   :  { %v210_v14 = vpop.f32.mrf.mxu0  ;;  %v327_v15 = vpop.f32.mrf.mxu1 }
 0x111   :  { %v416_v16 = vpop.f32.mrf.mxu0  ;;  %v533_v17 = vpop.f32.mrf.mxu1 }
 0x112   :  { %v570_v19 = vmax.f32 %v416_v16, %v533_v17 }
 0x113   :  { %v418_v20 = vpop.f32.mrf.mxu0  ;;  %v535_v21 = vpop.f32.mrf.mxu1 }
 0x114   :  { %v577_v22 = vmax.f32 %v563_v18, %v570_v19 }
 0x115   :  { %v419_v24 = vpop.f32.mrf.mxu0  ;;  %v536_v25 = vpop.f32.mrf.mxu1 }
 0x116   :  { %v571_v27 = vmax.f32 %v419_v24, %v536_v25  ;;  %v591_v30 = vadd.f32 %v1077_v23, %v577_v22 }
 0x117   :  { %v421_v28 = vpop.f32.mrf.mxu0  ;;  %v538_v29 = vpop.f32.mrf.mxu1 }
 0x118   :  { %v578_v31 = vmax.f32 %v564_v26, %v571_v27  ;;  %v598_v39 = vmax.f32 %v591_v30, 0.0 }
 0x119   :  { %v424_v32 = vpop.f32.mrf.mxu0  ;;  %v541_v33 = vpop.f32.mrf.mxu1 }
 0x11a   :  { %v592_v35 = vadd.f32 %v1077_v23, %v578_v31  ;;  %v572_v36 = vmax.f32 %v424_v32, %v541_v33 }
 0x11b   :  { %v426_v37 = vpop.f32.mrf.mxu0  ;;  %v543_v38 = vpop.f32.mrf.mxu1 }
 0x11c   :  { %v599_v40 = vmax.f32 %v592_v35, 0.0  ;;  %v579_v41 = vmax.f32 %v565_v34, %v572_v36 }
 0x11d   :  { %v427_v42 = vpop.f32.mrf.mxu0  ;;  %v544_v43 = vpop.f32.mrf.mxu1 }
 0x11e   :  { %v742_v45 = vpack.c.bf16 %v599_v40, %v598_v39  ;;  %v573_v46 = vmax.f32 %v427_v42, %v544_v43  ;;  %v593_v49 = vadd.f32 %v1077_v23, %v579_v41 }
 0x11f   :  { %v429_v47 = vpop.f32.mrf.mxu0  ;;  %v546_v48 = vpop.f32.mrf.mxu1 }
 0x120   :  { %743 = vst [vmem:[%s1107_s3] sm:$0xff] %v742_v45   ;;  %v580_v50 = vmax.f32 %v566_v44, %v573_v46  ;;  %v600_v58 = vmax.f32 %v593_v49, 0.0 }
 0x121   :  { %v432_v51 = vpop.f32.mrf.mxu0  ;;  %v549_v52 = vpop.f32.mrf.mxu1 }
 0x122   :  { %v594_v54 = vadd.f32 %v1077_v23, %v580_v50  ;;  %v574_v55 = vmax.f32 %v432_v51, %v549_v52 }
 0x123   :  { %v434_v56 = vpop.f32.mrf.mxu0  ;;  %v551_v57 = vpop.f32.mrf.mxu1 }
 0x124   :  { %v601_v59 = vmax.f32 %v594_v54, 0.0  ;;  %v581_v60 = vmax.f32 %v567_v53, %v574_v55 }
 0x125   :  { %v435_v61 = vpop.f32.mrf.mxu0  ;;  %v552_v62 = vpop.f32.mrf.mxu1 }
 0x126   :  { %v747_v2 = vpack.c.bf16 %v601_v59, %v600_v58  ;;  %v575_v3 = vmax.f32 %v435_v61, %v552_v62  ;;  %v595_v0 = vadd.f32 %v1077_v23, %v581_v60 }
 0x127   :  { %v437_v6 = vpop.f32.mrf.mxu0  ;;  %v554_v7 = vpop.f32.mrf.mxu1 }
 0x128   :  { %754 = vst [vmem:[%s1107_s3 + $0x8] sm:$0xff] %v747_v2   ;;  %v582_v1 = vmax.f32 %v568_v63, %v575_v3  ;;  %v602_v15 = vmax.f32 %v595_v0, 0.0 }
 0x129   :  { %v440_v10 = vpop.f32.mrf.mxu0  ;;  %v557_v11 = vpop.f32.mrf.mxu1 }
 0x12a   :  { %v596_v13 = vadd.f32 %v1077_v23, %v582_v1  ;;  %v576_v14 = vmax.f32 %v440_v10, %v557_v11 }
 0x12b   :  { %v442_v4 = vpop.f32.mrf.mxu0  ;;  %v559_v5 = vpop.f32.mrf.mxu1 }
 0x12c   :  { %v603_v16 = vmax.f32 %v596_v13, 0.0  ;;  %v583_v17 = vmax.f32 %v569_v12, %v576_v14 }
 0x12d   :  { %v443_v18 = vpop.f32.mrf.mxu0  ;;  %v560_v19 = vpop.f32.mrf.mxu1 }
 0x12e   :  { %v752_v20 = vpack.c.bf16 %v603_v16, %v602_v15  ;;  %v597_v21 = vadd.f32 %v1077_v23, %v583_v17 }
 0x12f   :  { %v444_v22 = vpop.f32.mrf.mxu0  ;;  %v561_v24 = vpop.f32.mrf.mxu1 }
 0x130   :  { %755 = vst [vmem:[%s1107_s3 + $0x10] sm:$0xff] %v752_v20   ;;  %v604_v8 = vmax.f32 %v597_v21, 0.0 }
 0x132   :  { %v738_v9 = vpack.c.bf16 %v604_v8, %v604_v8 }
 0x134   :  { %640 = vst [vmem:[%s1107_s3 + $0x18] sm:$0xf] %v738_v9 }

// kernel: net_forward.5
= control target key start
LH: loop header
LB: loop body
LE: loop exit
PB: predicated region body
PF: predicated region fallthrough
CT: control target
= control target key end

     0   :  { %v2324_v0 = vmov 0   ;;  %vm113_vm0 = vcmask 130048   ;;  %v2325_v18 = vmov 0.0   ;;  %vm2326_vm1 = vmmov 0   ;;  %s3019_s1 = inlined_call_operand.vmem [shape: bf16[144,128], index: 1, kind: input, shape index: {}]   ;;  %s3020_s0 = inlined_call_operand.vmem [shape: bf16[9,8,144], index: 0, kind: input, shape index: {}]   ;;  %s3021_s3 = inlined_call_operand.vmem [shape: bf16[9,128,128], index: 3, kind: input, shape index: {}]   ;;  %s3022_s2 = inlined_call_operand.vmem [shape: f32[1,128], index: 2, kind: input, shape index: {}]   ;;  %s3023_s5 = inlined_call_operand.vmem [shape: bf16[128,128], index: 5, kind: input, shape index: {}]   ;;  %s3024_s4 = inlined_call_operand.vmem [shape: f32[1,128], index: 4, kind: input, shape index: {}]   ;;  %s3025_s6 = inlined_call_operand.vmem [shape: f32[1,128], index: 6, kind: input, shape index: {}]   ;;  %s3026_s7 = inlined_call_operand.vmem [shape: f32[8,128], index: 7, kind: output, shape index: {}]  }
   0x1   :  { %117 = vmatprep.subr.bf16.mxu0 %v2324_v0  ;;  %186 = vmatprep.subr.bf16.mxu1 %v2324_v0  ;;  %v2372_v1 = vld [vmem:[%s3019_s1 + $0x38] sm:$0xff]   ;;  %v2379_v2 = vld [vmem:[%s3019_s1 + $0x30] sm:$0xff]   ;;  %v2388_v3 = vld [vmem:[%s3019_s1 + $0x28] sm:$0xff]  }
   0x2   :  { %118 = vmatpush1.bf16.msra.mxu0 %v2372_v1  ;;  %187 = vmatpush1.bf16.msra.mxu1 %v2372_v1  ;;  %v27_v4 = vld [vmem:[%s3020_s0] sm:$0xff]  ;;  %v1673_v5 = vld [vmem:[%s3020_s0 + $0x8] sm:$0xff]  ;;  %v2414_v9 = vld [vmem:[%s3019_s1 + $0x18] sm:$0xff]  }
   0x3   :  { %119 = vmatprep.subr.bf16.mxu0 %v2324_v0  ;;  %188 = vmatprep.subr.bf16.mxu1 %v2324_v0  ;;  %v2403_v6 = vld [vmem:[%s3019_s1 + $0x20] sm:$0xff]   ;;  %v1662_v7 = vcombine.high %v27_v4, %v27_v4  ;;  %v1675_v8 = vcombine.high %v1673_v5, %v1673_v5  ;;  %v2423_v10 = vld [vmem:[%s3019_s1 + $0x10] sm:$0xff]   ;;  %v2432_v11 = vld [vmem:[%s3019_s1 + $0x8] sm:$0xff]   ;;  %v1661_v16 = vcombine.low %v27_v4, %v27_v4 }
   0x4   :  { %v2439_v12 = vld [vmem:[%s3019_s1] sm:$0xff]   ;;  %v2221_v14 = vld [vmem:[%s3021_s3 + $0x78] sm:$0xff]   ;;  %v1674_v17 = vcombine.low %v1673_v5, %v1673_v5  ;;  %v2223_v19 = vld [vmem:[%s3021_s3 + $0x70] sm:$0xff]  }
   0x5   :  { %1672 = vmatprep.mubr.msk.bf16.mxu0 %vm113_vm0, %v1662_v7  ;;  %1676 = vmatprep.mubr.msk.bf16.mxu1 %vm113_vm0, %v1675_v8  ;;  %v2448_v13 = vld [vmem:[%s3019_s1 + $0x40] sm:$0xff]   ;;  %v2222_v15 = vld [vmem:[%s3021_s3 + $0x38] sm:$0xff]   ;;  %v2224_v20 = vld [vmem:[%s3021_s3 + $0x30] sm:$0xff]  }
   0x6   :  { %120 = vmatpush1.bf16.msra.mxu0 %v2379_v2  ;;  %189 = vmatpush1.bf16.msra.mxu1 %v2379_v2  ;;  %v2225_v21 = vld [vmem:[%s3021_s3 + $0x68] sm:$0xff]   ;;  %v2227_v23 = vld [vmem:[%s3021_s3 + $0x60] sm:$0xff]   ;;  %v2229_v25 = vld [vmem:[%s3021_s3 + $0x58] sm:$0xff]  }
   0x7   :  { %121 = vmatprep.subr.bf16.mxu0 %v2324_v0  ;;  %190 = vmatprep.subr.bf16.mxu1 %v2324_v0  ;;  %v2226_v22 = vld [vmem:[%s3021_s3 + $0x28] sm:$0xff]   ;;  %v2228_v24 = vld [vmem:[%s3021_s3 + $0x20] sm:$0xff]   ;;  %v2230_v26 = vld [vmem:[%s3021_s3 + $0x18] sm:$0xff]  }
   0x8   :  { %v2231_v27 = vld [vmem:[%s3021_s3 + $0x50] sm:$0xff]   ;;  %v2233_v29 = vld [vmem:[%s3021_s3 + $0x48] sm:$0xff]   ;;  %v2235_v31 = vld [vmem:[%s3021_s3 + $0x40] sm:$0xff]  }
   0x9   :  { %v2232_v28 = vld [vmem:[%s3021_s3 + $0x10] sm:$0xff]   ;;  %v2234_v30 = vld [vmem:[%s3021_s3 + $0x8] sm:$0xff]   ;;  %v2236_v32 = vld [vmem:[%s3021_s3] sm:$0xff]  }
   0xa   :  { %122 = vmatpush1.bf16.msra.mxu0 %v2388_v3  ;;  %191 = vmatpush1.bf16.msra.mxu1 %v2388_v3  ;;  %v2529_v33 = vld [vmem:[%s3022_s2] ss:$0 sm:$0xff]  ;;  %v1709_v38 = vld [vmem:[%s3020_s0 + $0x10] sm:$0xff]  ;;  %v2239_v51 = vld [vmem:[%s3021_s3 + $0xb8] sm:$0xff]  }
   0xb   :  { %123 = vmatprep.subr.bf16.mxu0 %v2324_v0  ;;  %192 = vmatprep.subr.bf16.mxu1 %v2324_v0  ;;  %v1711_v44 = vcombine.high %v1709_v38, %v1709_v38  ;;  %v1710_v50 = vcombine.low %v1709_v38, %v1709_v38  ;;  %v2240_v52 = vld [vmem:[%s3021_s3 + $0xb0] sm:$0xff]   ;;  %v2241_v53 = vld [vmem:[%s3021_s3 + $0xa8] sm:$0xff]   ;;  %v2242_v54 = vld [vmem:[%s3021_s3 + $0xa0] sm:$0xff]  }
   0xc   :  { %v2243_v55 = vld [vmem:[%s3021_s3 + $0x98] sm:$0xff]   ;;  %v2244_v56 = vld [vmem:[%s3021_s3 + $0x90] sm:$0xff]   ;;  %v2245_v57 = vld [vmem:[%s3021_s3 + $0x88] sm:$0xff]  }
   0xd   :  { %v2246_v58 = vld [vmem:[%s3021_s3 + $0x80] sm:$0xff]  }
   0xe   :  { %124 = vmatpush1.bf16.msra.mxu0 %v2403_v6  ;;  %193 = vmatpush1.bf16.msra.mxu1 %v2403_v6 }
   0xf   :  { %125 = vmatprep.subr.bf16.mxu0 %v2324_v0  ;;  %194 = vmatprep.subr.bf16.mxu1 %v2324_v0 }
  0x12   :  { %126 = vmatpush1.bf16.msra.mxu0 %v2414_v9  ;;  %195 = vmatpush1.bf16.msra.mxu1 %v2414_v9 }
  0x13   :  { %127 = vmatprep.subr.bf16.mxu0 %v2324_v0  ;;  %196 = vmatprep.subr.bf16.mxu1 %v2324_v0 }
  0x16   :  { %128 = vmatpush1.bf16.msra.mxu0 %v2423_v10  ;;  %197 = vmatpush1.bf16.msra.mxu1 %v2423_v10 }
  0x17   :  { %129 = vmatprep.subr.bf16.mxu0 %v2324_v0  ;;  %198 = vmatprep.subr.bf16.mxu1 %v2324_v0 }
  0x1a   :  { %130 = vmatpush1.bf16.msra.mxu0 %v2432_v11  ;;  %199 = vmatpush1.bf16.msra.mxu1 %v2432_v11 }
  0x1b   :  { %131 = vmatprep.subr.bf16.mxu0 %v2324_v0  ;;  %200 = vmatprep.subr.bf16.mxu1 %v2324_v0 }
  0x1e   :  { %132 = vmatpush1.bf16.msra.mxu0 %v2439_v12  ;;  %201 = vmatpush1.bf16.msra.mxu1 %v2439_v12 }
  0x1f   :  { %147 = vmatprep.subr.bf16.mxu0 %v2324_v0  ;;  %216 = vmatprep.subr.bf16.mxu1 %v2324_v0 }
  0x22   :  { %148 = vmatpush2.bf16.msra.mxu0 %v2448_v13  ;;  %217 = vmatpush2.bf16.msra.mxu1 %v2448_v13 }
  0x23   :  { %2005 = vmatprep.subr.bf16.mxu0 %v2325_v18  ;;  %2025 = vmatprep.subr.bf16.mxu1 %v2325_v18 }
  0x25   :  { %150 = vmatmul.mubr.bf16.vlgmr.msra.gmra.mxu0 %v1661_v16  ;;  %219 = vmatmul.mubr.bf16.vlgmr.msra.gmra.mxu1 %v1674_v17  ;;  %v1737_v16 = vld [vmem:[%s3020_s0 + $0x18] sm:$0xff] }
  0x26   :  { %2006 = vmatpush3.bf16.msra.mxu0 %v2221_v14  ;;  %2026 = vmatpush3.bf16.msra.mxu1 %v2222_v15 }
  0x27   :  { %2007 = vmatprep.subr.bf16.mxu0 %v2325_v18  ;;  %2027 = vmatprep.subr.bf16.mxu1 %v2325_v18 }
  0x28   :  { %2021 = vmatprep.mubr.msk.bf16.mxu0 %vm2326_vm1, %v2325_v18  ;;  %2041 = vmatprep.mubr.msk.bf16.mxu1 %vm2326_vm1, %v2325_v18 }
  0x2a   :  { %2008 = vmatpush3.bf16.msra.mxu0 %v2223_v19  ;;  %2028 = vmatpush3.bf16.msra.mxu1 %v2224_v20 }
  0x2b   :  { %2009 = vmatprep.subr.bf16.mxu0 %v2325_v18  ;;  %2029 = vmatprep.subr.bf16.mxu1 %v2325_v18 }
  0x2e   :  { %2010 = vmatpush3.bf16.msra.mxu0 %v2225_v21  ;;  %2030 = vmatpush3.bf16.msra.mxu1 %v2226_v22  ;;  %v1739_v21 = vcombine.high %v1737_v16, %v1737_v16 }
  0x2f   :  { %2011 = vmatprep.subr.bf16.mxu0 %v2325_v18  ;;  %2031 = vmatprep.subr.bf16.mxu1 %v2325_v18 }
  0x32   :  { %2012 = vmatpush3.bf16.msra.mxu0 %v2227_v23  ;;  %2032 = vmatpush3.bf16.msra.mxu1 %v2228_v24  ;;  %v1738_v24 = vcombine.low %v1737_v16, %v1737_v16 }
  0x33   :  { %2013 = vmatprep.subr.bf16.mxu0 %v2325_v18  ;;  %2033 = vmatprep.subr.bf16.mxu1 %v2325_v18 }
  0x36   :  { %2014 = vmatpush3.bf16.msra.mxu0 %v2229_v25  ;;  %2034 = vmatpush3.bf16.msra.mxu1 %v2230_v26  ;;  %v2249_v25 = vld [vmem:[%s3021_s3 + $0xf8] sm:$0xff]   ;;  %v2250_v26 = vld [vmem:[%s3021_s3 + $0xf0] sm:$0xff]  }
  0x37   :  { %2015 = vmatprep.subr.bf16.mxu0 %v2325_v18  ;;  %2035 = vmatprep.subr.bf16.mxu1 %v2325_v18 }
  0x3a   :  { %2016 = vmatpush3.bf16.msra.mxu0 %v2231_v27  ;;  %2036 = vmatpush3.bf16.msra.mxu1 %v2232_v28  ;;  %v2251_v27 = vld [vmem:[%s3021_s3 + $0xe8] sm:$0xff]   ;;  %v2252_v28 = vld [vmem:[%s3021_s3 + $0xe0] sm:$0xff]  }
  0x3b   :  { %2017 = vmatprep.subr.bf16.mxu0 %v2325_v18  ;;  %2037 = vmatprep.subr.bf16.mxu1 %v2325_v18 }
  0x3e   :  { %2018 = vmatpush3.bf16.msra.mxu0 %v2233_v29  ;;  %2038 = vmatpush3.bf16.msra.mxu1 %v2234_v30  ;;  %v2253_v29 = vld [vmem:[%s3021_s3 + $0xd8] sm:$0xff]   ;;  %v2254_v30 = vld [vmem:[%s3021_s3 + $0xd0] sm:$0xff]  }
  0x3f   :  { %2019 = vmatprep.subr.bf16.mxu0 %v2325_v18  ;;  %2039 = vmatprep.subr.bf16.mxu1 %v2325_v18 }
  0x42   :  { %2020 = vmatpush3.bf16.msra.mxu0 %v2235_v31  ;;  %2040 = vmatpush3.bf16.msra.mxu1 %v2236_v32  ;;  %v2255_v31 = vld [vmem:[%s3021_s3 + $0xc8] sm:$0xff]   ;;  %v2256_v32 = vld [vmem:[%s3021_s3 + $0xc0] sm:$0xff]  }
  0x43   :  { %432 = vmatprep.subr.bf16.mxu0 %v2324_v0  ;;  %2045 = vmatprep.subr.bf16.mxu1 %v2325_v18 }
  0xe5   :  { %v151_v34 = vpop.f32.mrf.mxu0  ;;  %v220_v35 = vpop.f32.mrf.mxu1 }
  0xe6   :  { %v152_v36 = vadd.f32 %v2529_v33, %v151_v34  ;;  %v221_v37 = vadd.f32 %v2529_v33, %v220_v35 }
  0xe7   :  { %v222_v39 = vpop.f32.mrf.mxu1  ;;  %v153_v40 = vpop.f32.mrf.mxu0 }
  0xe8   :  { %v157_v41 = vmax.f32 %v152_v36, 0.0  ;;  %v226_v42 = vmax.f32 %v221_v37, 0.0 }
  0xe9   :  { %v223_v43 = vpop.f32.mrf.mxu1  ;;  %v154_v45 = vpop.f32.mrf.mxu0 }
  0xea   :  { %v158_v46 = vpack.c.bf16 %v157_v41, %v157_v41  ;;  %v227_v47 = vpack.c.bf16 %v226_v42, %v226_v42  ;;  %v1765_v41 = vld [vmem:[%s3020_s0 + $0x20] sm:$0xff] }
  0xeb   :  { %v224_v48 = vpop.f32.mrf.mxu1  ;;  %v155_v49 = vpop.f32.mrf.mxu0  ;;  %v1767_v45 = vcombine.high %v1765_v41, %v1765_v41 }
  0xec   :  { %2022 = vmatmul.mubr.bf16.vlgmr.msra.gmra.mxu0 %v227_v47  ;;  %2042 = vmatmul.mubr.bf16.vlgmr.msra.gmra.mxu1 %v158_v46  ;;  %v1766_v48 = vcombine.low %v1765_v41, %v1765_v41  ;;  %v2259_v49 = vld [vmem:[%s3021_s3 + $0x138] sm:$0xff]   ;;  %v2789_v41 = vld [vmem:[%s3019_s1 + $0x28] sm:$0xff]  }
  0xed   :  { %433 = vmatpush1.bf16.msra.mxu0 %v2372_v1  ;;  %1712 = vmatprep.mubr.msk.bf16.mxu0 %vm113_vm0, %v1711_v44 }
  0xee   :  { %434 = vmatprep.subr.bf16.mxu0 %v2324_v0  ;;  %2061 = vmatprep.mubr.msk.bf16.mxu1 %vm2326_vm1, %v2325_v18 }
  0xef   :  { %2046 = vmatpush3.bf16.msra.mxu1 %v2239_v51  ;;  %v2261_v51 = vld [vmem:[%s3021_s3 + $0x128] sm:$0xff]  }
  0xf0   :  { %2047 = vmatprep.subr.bf16.mxu1 %v2325_v18 }
  0xf1   :  { %435 = vmatpush1.bf16.msra.mxu0 %v2379_v2 }
  0xf2   :  { %436 = vmatprep.subr.bf16.mxu0 %v2324_v0 }
  0xf3   :  { %2048 = vmatpush3.bf16.msra.mxu1 %v2240_v52  ;;  %v2262_v52 = vld [vmem:[%s3021_s3 + $0x120] sm:$0xff]  }
  0xf4   :  { %2049 = vmatprep.subr.bf16.mxu1 %v2325_v18 }
  0xf5   :  { %437 = vmatpush1.bf16.msra.mxu0 %v2388_v3 }
  0xf6   :  { %438 = vmatprep.subr.bf16.mxu0 %v2324_v0 }
  0xf7   :  { %2050 = vmatpush3.bf16.msra.mxu1 %v2241_v53  ;;  %v2263_v53 = vld [vmem:[%s3021_s3 + $0x118] sm:$0xff]  }
  0xf8   :  { %2051 = vmatprep.subr.bf16.mxu1 %v2325_v18 }
  0xf9   :  { %439 = vmatpush1.bf16.msra.mxu0 %v2403_v6 }
  0xfa   :  { %440 = vmatprep.subr.bf16.mxu0 %v2324_v0 }
  0xfb   :  { %2052 = vmatpush3.bf16.msra.mxu1 %v2242_v54  ;;  %v2264_v54 = vld [vmem:[%s3021_s3 + $0x110] sm:$0xff]  }
  0xfc   :  { %2053 = vmatprep.subr.bf16.mxu1 %v2325_v18 }
  0xfd   :  { %441 = vmatpush1.bf16.msra.mxu0 %v2414_v9 }
  0xfe   :  { %442 = vmatprep.subr.bf16.mxu0 %v2324_v0 }
  0xff   :  { %2054 = vmatpush3.bf16.msra.mxu1 %v2243_v55  ;;  %v2265_v55 = vld [vmem:[%s3021_s3 + $0x108] sm:$0xff]  }
 0x100   :  { %2055 = vmatprep.subr.bf16.mxu1 %v2325_v18 }
 0x101   :  { %443 = vmatpush1.bf16.msra.mxu0 %v2423_v10 }
 0x102   :  { %444 = vmatprep.subr.bf16.mxu0 %v2324_v0 }
 0x103   :  { %2056 = vmatpush3.bf16.msra.mxu1 %v2244_v56  ;;  %v2266_v56 = vld [vmem:[%s3021_s3 + $0x100] sm:$0xff]  }
 0x104   :  { %2057 = vmatprep.subr.bf16.mxu1 %v2325_v18 }
 0x105   :  { %445 = vmatpush1.bf16.msra.mxu0 %v2432_v11 }
 0x106   :  { %446 = vmatprep.subr.bf16.mxu0 %v2324_v0 }
 0x107   :  { %2058 = vmatpush3.bf16.msra.mxu1 %v2245_v57 }
 0x108   :  { %2059 = vmatprep.subr.bf16.mxu1 %v2325_v18 }
 0x109   :  { %447 = vmatpush1.bf16.msra.mxu0 %v2439_v12 }
 0x10a   :  { %462 = vmatprep.subr.bf16.mxu0 %v2324_v0 }
 0x10b   :  { %2060 = vmatpush3.bf16.msra.mxu1 %v2246_v58 }
 0x10c   :  { %591 = vmatprep.subr.bf16.mxu1 %v2324_v0 }
 0x10d   :  { %463 = vmatpush2.bf16.msra.mxu0 %v2448_v13 }
 0x10e   :  { %2065 = vmatprep.subr.bf16.mxu0 %v2325_v18 }
 0x110   :  { %465 = vmatmul.mubr.bf16.vlgmr.msra.gmra.mxu0 %v1710_v50  ;;  %v2260_v50 = vld [vmem:[%s3021_s3 + $0x130] sm:$0xff]  }
 0x111   :  { %2081 = vmatprep.mubr.msk.bf16.mxu0 %vm2326_vm1, %v2325_v18  ;;  %2066 = vmatpush3.bf16.msra.mxu0 %v2249_v25 }
 0x112   :  { %2067 = vmatprep.subr.bf16.mxu0 %v2325_v18 }
 0x115   :  { %2068 = vmatpush3.bf16.msra.mxu0 %v2250_v26 }
 0x116   :  { %2069 = vmatprep.subr.bf16.mxu0 %v2325_v18 }
 0x119   :  { %2070 = vmatpush3.bf16.msra.mxu0 %v2251_v27 }
 0x11a   :  { %2071 = vmatprep.subr.bf16.mxu0 %v2325_v18 }
 0x11d   :  { %2072 = vmatpush3.bf16.msra.mxu0 %v2252_v28 }
 0x11e   :  { %2073 = vmatprep.subr.bf16.mxu0 %v2325_v18 }
 0x121   :  { %2074 = vmatpush3.bf16.msra.mxu0 %v2253_v29 }
 0x122   :  { %2075 = vmatprep.subr.bf16.mxu0 %v2325_v18 }
 0x125   :  { %2076 = vmatpush3.bf16.msra.mxu0 %v2254_v30 }
 0x126   :  { %2077 = vmatprep.subr.bf16.mxu0 %v2325_v18 }
 0x129   :  { %2078 = vmatpush3.bf16.msra.mxu0 %v2255_v31  ;;  %v1821_v31 = vld [vmem:[%s3020_s0 + $0x30] sm:$0xff] }
 0x12a   :  { %2079 = vmatprep.subr.bf16.mxu0 %v2325_v18 }
 0x12d   :  { %2080 = vmatpush3.bf16.msra.mxu0 %v2256_v32 }
 0x12e   :  { %750 = vmatprep.subr.bf16.mxu0 %v2324_v0 }
 0x1ac   :  { %v327_v59 = vpop.f32.mrf.mxu0  ;;  %v415_v60 = vpop.f32.mrf.mxu1 }
 0x1ad   :  { %v2591_v61 = vadd.f32 %v415_v60, %v327_v59 }
 0x1ae   :  { %v2023_v62 = vpop.f32.mrf.mxu0  ;;  %v2043_v63 = vpop.f32.mrf.mxu1 }
 0x1b0   :  { %v330_v4 = vpop.f32.mrf.mxu0  ;;  %v418_v5 = vpop.f32.mrf.mxu1 }
 0x1b1   :  { %v1793_v4 = vld [vmem:[%s3020_s0 + $0x28] sm:$0xff] }
 0x1b2   :  { %v2024_v7 = vpop.f32.mrf.mxu0  ;;  %v2044_v8 = vpop.f32.mrf.mxu1 }
 0x1d0   :  { %v466_v14 = vpop.f32.mrf.mxu0 }
 0x1d1   :  { %v467_v15 = vadd.f32 %v2529_v33, %v466_v14  ;;  %v1795_v14 = vcombine.high %v1793_v4, %v1793_v4 }
 0x1d2   :  { %v468_v17 = vpop.f32.mrf.mxu0 }
 0x1d3   :  { %v472_v19 = vmax.f32 %v467_v15, 0.0  ;;  %v2271_v17 = vld [vmem:[%s3021_s3 + $0x168] sm:$0xff]  }
 0x1d4   :  { %v469_v20 = vpop.f32.mrf.mxu0 }
 0x1d5   :  { %v473_v22 = vpack.c.bf16 %v472_v19, %v472_v19  ;;  %v2272_v19 = vld [vmem:[%s3021_s3 + $0x160] sm:$0xff]   ;;  %v2273_v20 = vld [vmem:[%s3021_s3 + $0x158] sm:$0xff]  }
 0x1d6   :  { %v470_v23 = vpop.f32.mrf.mxu0 }
 0x1d7   :  { %2062 = vmatmul.mubr.bf16.vlgmr.msra.gmra.mxu1 %v473_v22  ;;  %v2275_v22 = vld [vmem:[%s3021_s3 + $0x148] sm:$0xff]   ;;  %v2276_v23 = vld [vmem:[%s3021_s3 + $0x140] sm:$0xff]  }
 0x1d8   :  { %592 = vmatpush1.bf16.msra.mxu1 %v2372_v1  ;;  %1740 = vmatprep.mubr.msk.bf16.mxu1 %vm113_vm0, %v1739_v21  ;;  %v2274_v21 = vld [vmem:[%s3021_s3 + $0x150] sm:$0xff]  }
 0x1d9   :  { %593 = vmatprep.subr.bf16.mxu1 %v2324_v0 }
 0x1dc   :  { %594 = vmatpush1.bf16.msra.mxu1 %v2379_v2 }
 0x1dd   :  { %595 = vmatprep.subr.bf16.mxu1 %v2324_v0 }
 0x1e0   :  { %596 = vmatpush1.bf16.msra.mxu1 %v2388_v3 }
 0x1e1   :  { %597 = vmatprep.subr.bf16.mxu1 %v2324_v0 }
 0x1e4   :  { %598 = vmatpush1.bf16.msra.mxu1 %v2403_v6 }
 0x1e5   :  { %599 = vmatprep.subr.bf16.mxu1 %v2324_v0 }
 0x1e8   :  { %600 = vmatpush1.bf16.msra.mxu1 %v2414_v9 }
 0x1e9   :  { %601 = vmatprep.subr.bf16.mxu1 %v2324_v0 }
 0x1ec   :  { %602 = vmatpush1.bf16.msra.mxu1 %v2423_v10 }
 0x1ed   :  { %603 = vmatprep.subr.bf16.mxu1 %v2324_v0 }
 0x1f0   :  { %604 = vmatpush1.bf16.msra.mxu1 %v2432_v11 }
 0x1f1   :  { %605 = vmatprep.subr.bf16.mxu1 %v2324_v0 }
 0x1f4   :  { %606 = vmatpush1.bf16.msra.mxu1 %v2439_v12 }
 0x1f5   :  { %621 = vmatprep.subr.bf16.mxu1 %v2324_v0 }
 0x1f8   :  { %622 = vmatpush2.bf16.msra.mxu1 %v2448_v13 }
 0x1f9   :  { %2085 = vmatprep.subr.bf16.mxu1 %v2325_v18 }
 0x1fb   :  { %624 = vmatmul.mubr.bf16.vlgmr.msra.gmra.mxu1 %v1738_v24 }
 0x1fc   :  { %2101 = vmatprep.mubr.msk.bf16.mxu1 %vm2326_vm1, %v2325_v18  ;;  %2086 = vmatpush3.bf16.msra.mxu1 %v2259_v49 }
 0x1fd   :  { %2087 = vmatprep.subr.bf16.mxu1 %v2325_v18 }
 0x200   :  { %2088 = vmatpush3.bf16.msra.mxu1 %v2260_v50 }
 0x201   :  { %2089 = vmatprep.subr.bf16.mxu1 %v2325_v18 }
 0x204   :  { %2090 = vmatpush3.bf16.msra.mxu1 %v2261_v51 }
 0x205   :  { %2091 = vmatprep.subr.bf16.mxu1 %v2325_v18 }
 0x208   :  { %2092 = vmatpush3.bf16.msra.mxu1 %v2262_v52  ;;  %v1849_v52 = vld [vmem:[%s3020_s0 + $0x38] sm:$0xff] }
 0x209   :  { %2093 = vmatprep.subr.bf16.mxu1 %v2325_v18 }
 0x20c   :  { %2094 = vmatpush3.bf16.msra.mxu1 %v2263_v53 }
 0x20d   :  { %2095 = vmatprep.subr.bf16.mxu1 %v2325_v18 }
 0x210   :  { %2096 = vmatpush3.bf16.msra.mxu1 %v2264_v54 }
 0x211   :  { %2097 = vmatprep.subr.bf16.mxu1 %v2325_v18 }
 0x214   :  { %2098 = vmatpush3.bf16.msra.mxu1 %v2265_v55 }
 0x215   :  { %2099 = vmatprep.subr.bf16.mxu1 %v2325_v18 }
 0x218   :  { %2100 = vmatpush3.bf16.msra.mxu1 %v2266_v56  ;;  %v1851_v56 = vcombine.high %v1849_v52, %v1849_v52 }
 0x219   :  { %909 = vmatprep.subr.bf16.mxu1 %v2324_v0 }
 0x297   :  { %v573_v34 = vpop.f32.mrf.mxu1 }
 0x298   :  { %v579_v35 = vadd.f32 %v573_v34, %v2591_v61 }
 0x299   :  { %v2063_v36 = vpop.f32.mrf.mxu1 }
 0x29a   :  { %v1823_v36 = vcombine.high %v1821_v31, %v1821_v31 }
 0x29b   :  { %v576_v37 = vpop.f32.mrf.mxu1 }
 0x29d   :  { %v2064_v38 = vpop.f32.mrf.mxu1 }
 0x2bb   :  { %v625_v39 = vpop.f32.mrf.mxu1 }
 0x2bc   :  { %v626_v40 = vadd.f32 %v2529_v33, %v625_v39  ;;  %v2774_v39 = vld [vmem:[%s3019_s1 + $0x38] sm:$0xff]  }
 0x2bd   :  { %v627_v42 = vpop.f32.mrf.mxu1 }
 0x2be   :  { %v631_v43 = vmax.f32 %v626_v40, 0.0  ;;  %v2782_v40 = vld [vmem:[%s3019_s1 + $0x30] sm:$0xff]   ;;  %v1822_v42 = vcombine.low %v1821_v31, %v1821_v31 }
 0x2bf   :  { %v628_v44 = vpop.f32.mrf.mxu1 }
 0x2c0   :  { %v632_v46 = vpack.c.bf16 %v631_v43, %v631_v43  ;;  %v2285_v43 = vld [vmem:[%s3021_s3 + $0x188] sm:$0xff]   ;;  %v2286_v44 = vld [vmem:[%s3021_s3 + $0x180] sm:$0xff]  }
 0x2c1   :  { %v629_v47 = vpop.f32.mrf.mxu1 }
 0x2c2   :  { %2082 = vmatmul.mubr.bf16.vlgmr.msra.gmra.mxu0 %v632_v46 }
 0x2c3   :  { %751 = vmatpush1.bf16.msra.mxu0 %v2372_v1  ;;  %1768 = vmatprep.mubr.msk.bf16.mxu0 %vm113_vm0, %v1767_v45 }
 0x2c4   :  { %752 = vmatprep.subr.bf16.mxu0 %v2324_v0 }
 0x2c7   :  { %753 = vmatpush1.bf16.msra.mxu0 %v2379_v2 }
 0x2c8   :  { %754 = vmatprep.subr.bf16.mxu0 %v2324_v0 }
 0x2cb   :  { %755 = vmatpush1.bf16.msra.mxu0 %v2388_v3 }
 0x2cc   :  { %756 = vmatprep.subr.bf16.mxu0 %v2324_v0 }
 0x2cf   :  { %757 = vmatpush1.bf16.msra.mxu0 %v2403_v6 }
 0x2d0   :  { %758 = vmatprep.subr.bf16.mxu0 %v2324_v0 }
 0x2d3   :  { %759 = vmatpush1.bf16.msra.mxu0 %v2414_v9 }
 0x2d4   :  { %760 = vmatprep.subr.bf16.mxu0 %v2324_v0 }
 0x2d7   :  { %761 = vmatpush1.bf16.msra.mxu0 %v2423_v10 }
 0x2d8   :  { %762 = vmatprep.subr.bf16.mxu0 %v2324_v0 }
 0x2db   :  { %763 = vmatpush1.bf16.msra.mxu0 %v2432_v11 }
 0x2dc   :  { %764 = vmatprep.subr.bf16.mxu0 %v2324_v0 }
 0x2df   :  { %765 = vmatpush1.bf16.msra.mxu0 %v2439_v12 }
 0x2e0   :  { %780 = vmatprep.subr.bf16.mxu0 %v2324_v0 }
 0x2e3   :  { %781 = vmatpush2.bf16.msra.mxu0 %v2448_v13 }
 0x2e4   :  { %2105 = vmatprep.subr.bf16.mxu0 %v2325_v18 }
 0x2e6   :  { %783 = vmatmul.mubr.bf16.vlgmr.msra.gmra.mxu0 %v1766_v48 }
 0x2e7   :  { %2121 = vmatprep.mubr.msk.bf16.mxu0 %vm2326_vm1, %v2325_v18 }
 0x382   :  { %v732_v57 = vpop.f32.mrf.mxu0 }
 0x383   :  { %v738_v58 = vadd.f32 %v732_v57, %v579_v35 }
 0x384   :  { %v2083_v59 = vpop.f32.mrf.mxu0 }
 0x385   :  { %v2856_v59 = vld [vmem:[%s3019_s1 + $0x20] sm:$0xff]  }
 0x386   :  { %v735_v60 = vpop.f32.mrf.mxu0 }
 0x387   :  { %v2863_v60 = vld [vmem:[%s3019_s1 + $0x18] sm:$0xff]  }
 0x388   :  { %v2084_v61 = vpop.f32.mrf.mxu0 }
 0x389   :  { %v2870_v61 = vld [vmem:[%s3019_s1 + $0x10] sm:$0xff]  }
 0x3a6   :  { %v784_v62 = vpop.f32.mrf.mxu0 }
 0x3a7   :  { %v785_v63 = vadd.f32 %v2529_v33, %v784_v62  ;;  %v2877_v62 = vld [vmem:[%s3019_s1 + $0x8] sm:$0xff]  }
 0x3a8   :  { %v786_v5 = vpop.f32.mrf.mxu0 }
 0x3a9   :  { %v790_v7 = vmax.f32 %v785_v63, 0.0  ;;  %v2322_v63 = vld [vmem:[%s3019_s1] sm:$0xff]  }
 0x3aa   :  { %v787_v8 = vpop.f32.mrf.mxu0  ;;  %v2323_v5 = vld [vmem:[%s3019_s1 + $0x40] sm:$0xff]  }
 0x3ab   :  { %v791_v15 = vpack.c.bf16 %v790_v7, %v790_v7  ;;  %v2289_v7 = vld [vmem:[%s3021_s3 + $0x1f8] sm:$0xff]   ;;  %v2290_v8 = vld [vmem:[%s3021_s3 + $0x1f0] sm:$0xff]  }
 0x3ac   :  { %v788_v16 = vpop.f32.mrf.mxu0 }
 0x3ad   :  { %2102 = vmatmul.mubr.bf16.vlgmr.msra.gmra.mxu1 %v791_v15  ;;  %v2292_v15 = vld [vmem:[%s3021_s3 + $0x1e0] sm:$0xff]   ;;  %v2293_v16 = vld [vmem:[%s3021_s3 + $0x1d8] sm:$0xff]  }
 0x3ae   :  { %910 = vmatpush1.bf16.msra.mxu1 %v2372_v1  ;;  %1796 = vmatprep.mubr.msk.bf16.mxu1 %vm113_vm0, %v1795_v14  ;;  %v1794_v1 = vcombine.low %v1793_v4, %v1793_v4  ;;  %v1850_v4 = vcombine.low %v1849_v52, %v1849_v52  ;;  %v2291_v14 = vld [vmem:[%s3021_s3 + $0x1e8] sm:$0xff]  }
 0x3af   :  { %911 = vmatprep.subr.bf16.mxu1 %v2324_v0  ;;  %v2313_v52 = vld [vmem:[%s3023_s5 + $0x8] sm:$0xff]  }
 0x3b2   :  { %912 = vmatpush1.bf16.msra.mxu1 %v2379_v2  ;;  %v2269_v2 = vld [vmem:[%s3021_s3 + $0x178] sm:$0xff]  }
 0x3b3   :  { %913 = vmatprep.subr.bf16.mxu1 %v2324_v0  ;;  %2106 = vmatpush3.bf16.msra.mxu0 %v2269_v2  ;;  %v2295_v2 = vld [vmem:[%s3021_s3 + $0x1c8] sm:$0xff]  }
 0x3b4   :  { %2107 = vmatprep.subr.bf16.mxu0 %v2325_v18 }
 0x3b6   :  { %914 = vmatpush1.bf16.msra.mxu1 %v2388_v3  ;;  %v2270_v3 = vld [vmem:[%s3021_s3 + $0x170] sm:$0xff]  }
 0x3b7   :  { %915 = vmatprep.subr.bf16.mxu1 %v2324_v0  ;;  %2108 = vmatpush3.bf16.msra.mxu0 %v2270_v3  ;;  %v2296_v3 = vld [vmem:[%s3021_s3 + $0x1c0] sm:$0xff]  }
 0x3b8   :  { %2109 = vmatprep.subr.bf16.mxu0 %v2325_v18 }
 0x3ba   :  { %916 = vmatpush1.bf16.msra.mxu1 %v2403_v6 }
 0x3bb   :  { %917 = vmatprep.subr.bf16.mxu1 %v2324_v0  ;;  %2110 = vmatpush3.bf16.msra.mxu0 %v2271_v17 }
 0x3bc   :  { %2111 = vmatprep.subr.bf16.mxu0 %v2325_v18 }
 0x3be   :  { %918 = vmatpush1.bf16.msra.mxu1 %v2414_v9 }
 0x3bf   :  { %919 = vmatprep.subr.bf16.mxu1 %v2324_v0  ;;  %2112 = vmatpush3.bf16.msra.mxu0 %v2272_v19 }
 0x3c0   :  { %2113 = vmatprep.subr.bf16.mxu0 %v2325_v18 }
 0x3c2   :  { %920 = vmatpush1.bf16.msra.mxu1 %v2423_v10 }
 0x3c3   :  { %921 = vmatprep.subr.bf16.mxu1 %v2324_v0  ;;  %2114 = vmatpush3.bf16.msra.mxu0 %v2273_v20 }
 0x3c4   :  { %2115 = vmatprep.subr.bf16.mxu0 %v2325_v18 }
 0x3c6   :  { %922 = vmatpush1.bf16.msra.mxu1 %v2432_v11 }
 0x3c7   :  { %923 = vmatprep.subr.bf16.mxu1 %v2324_v0  ;;  %2116 = vmatpush3.bf16.msra.mxu0 %v2274_v21 }
 0x3c8   :  { %2117 = vmatprep.subr.bf16.mxu0 %v2325_v18 }
 0x3ca   :  { %924 = vmatpush1.bf16.msra.mxu1 %v2439_v12 }
 0x3cb   :  { %939 = vmatprep.subr.bf16.mxu1 %v2324_v0  ;;  %2118 = vmatpush3.bf16.msra.mxu0 %v2275_v22 }
 0x3cc   :  { %2119 = vmatprep.subr.bf16.mxu0 %v2325_v18 }
 0x3ce   :  { %940 = vmatpush2.bf16.msra.mxu1 %v2448_v13 }
 0x3cf   :  { %2125 = vmatprep.subr.bf16.mxu1 %v2325_v18  ;;  %2120 = vmatpush3.bf16.msra.mxu0 %v2276_v23 }
 0x3d0   :  { %1068 = vmatprep.subr.bf16.mxu0 %v2324_v0 }
 0x3d1   :  { %942 = vmatmul.mubr.bf16.vlgmr.msra.gmra.mxu1 %v1794_v1  ;;  %v2294_v1 = vld [vmem:[%s3021_s3 + $0x1d0] sm:$0xff]  }
 0x3d2   :  { %2141 = vmatprep.mubr.msk.bf16.mxu1 %vm2326_vm1, %v2325_v18 }
 0x46d   :  { %v891_v24 = vpop.f32.mrf.mxu1 }
 0x46e   :  { %v2765_v25 = vadd.f32 %v891_v24, %v738_v58 }
 0x46f   :  { %v2103_v26 = vpop.f32.mrf.mxu1 }
 0x471   :  { %v894_v27 = vpop.f32.mrf.mxu1 }
 0x473   :  { %v2104_v28 = vpop.f32.mrf.mxu1 }
 0x491   :  { %v943_v29 = vpop.f32.mrf.mxu1 }
 0x492   :  { %v944_v30 = vadd.f32 %v2529_v33, %v943_v29 }
 0x493   :  { %v945_v32 = vpop.f32.mrf.mxu1 }
 0x494   :  { %v949_v34 = vmax.f32 %v944_v30, 0.0 }
 0x495   :  { %v946_v35 = vpop.f32.mrf.mxu1 }
 0x496   :  { %v950_v37 = vpack.c.bf16 %v949_v34, %v949_v34  ;;  %v2299_v34 = vld [vmem:[%s3021_s3 + $0x238] sm:$0xff]   ;;  %v2300_v35 = vld [vmem:[%s3021_s3 + $0x230] sm:$0xff]  }
 0x497   :  { %v947_v38 = vpop.f32.mrf.mxu1 }
 0x498   :  { %2122 = vmatmul.mubr.bf16.vlgmr.msra.gmra.mxu0 %v950_v37  ;;  %v2303_v37 = vld [vmem:[%s3021_s3 + $0x218] sm:$0xff]   ;;  %v2304_v38 = vld [vmem:[%s3021_s3 + $0x210] sm:$0xff]  }
 0x499   :  { %1069 = vmatpush1.bf16.msra.mxu0 %v2774_v39  ;;  %1824 = vmatprep.mubr.msk.bf16.mxu0 %vm113_vm0, %v1823_v36  ;;  %v2301_v36 = vld [vmem:[%s3021_s3 + $0x228] sm:$0xff]  }
 0x49a   :  { %1070 = vmatprep.subr.bf16.mxu0 %v2324_v0 }
 0x49d   :  { %1071 = vmatpush1.bf16.msra.mxu0 %v2782_v40 }
 0x49e   :  { %1072 = vmatprep.subr.bf16.mxu0 %v2324_v0 }
 0x4a1   :  { %1073 = vmatpush1.bf16.msra.mxu0 %v2789_v41 }
 0x4a2   :  { %1074 = vmatprep.subr.bf16.mxu0 %v2324_v0 }
 0x4a5   :  { %1075 = vmatpush1.bf16.msra.mxu0 %v2403_v6  ;;  %v2279_v6 = vld [vmem:[%s3021_s3 + $0x1b8] sm:$0xff]  }
 0x4a6   :  { %1076 = vmatprep.subr.bf16.mxu0 %v2324_v0  ;;  %2126 = vmatpush3.bf16.msra.mxu1 %v2279_v6 }
 0x4a7   :  { %2127 = vmatprep.subr.bf16.mxu1 %v2325_v18 }
 0x4a9   :  { %1077 = vmatpush1.bf16.msra.mxu0 %v2414_v9  ;;  %v2280_v9 = vld [vmem:[%s3021_s3 + $0x1b0] sm:$0xff]  }
 0x4aa   :  { %1078 = vmatprep.subr.bf16.mxu0 %v2324_v0  ;;  %2128 = vmatpush3.bf16.msra.mxu1 %v2280_v9 }
 0x4ab   :  { %2129 = vmatprep.subr.bf16.mxu1 %v2325_v18 }
 0x4ad   :  { %1079 = vmatpush1.bf16.msra.mxu0 %v2423_v10  ;;  %v2281_v10 = vld [vmem:[%s3021_s3 + $0x1a8] sm:$0xff]  }
 0x4ae   :  { %1080 = vmatprep.subr.bf16.mxu0 %v2324_v0  ;;  %2130 = vmatpush3.bf16.msra.mxu1 %v2281_v10 }
 0x4af   :  { %2131 = vmatprep.subr.bf16.mxu1 %v2325_v18 }
 0x4b1   :  { %1081 = vmatpush1.bf16.msra.mxu0 %v2432_v11  ;;  %v2282_v11 = vld [vmem:[%s3021_s3 + $0x1a0] sm:$0xff]  }
 0x4b2   :  { %1082 = vmatprep.subr.bf16.mxu0 %v2324_v0  ;;  %2132 = vmatpush3.bf16.msra.mxu1 %v2282_v11 }
 0x4b3   :  { %2133 = vmatprep.subr.bf16.mxu1 %v2325_v18 }
 0x4b5   :  { %1083 = vmatpush1.bf16.msra.mxu0 %v2439_v12  ;;  %v2283_v12 = vld [vmem:[%s3021_s3 + $0x198] sm:$0xff]  }
 0x4b6   :  { %1098 = vmatprep.subr.bf16.mxu0 %v2324_v0  ;;  %2134 = vmatpush3.bf16.msra.mxu1 %v2283_v12 }
 0x4b7   :  { %2135 = vmatprep.subr.bf16.mxu1 %v2325_v18 }
 0x4b9   :  { %1099 = vmatpush2.bf16.msra.mxu0 %v2448_v13  ;;  %v2284_v13 = vld [vmem:[%s3021_s3 + $0x190] sm:$0xff]  }
 0x4ba   :  { %2145 = vmatprep.subr.bf16.mxu0 %v2325_v18  ;;  %2136 = vmatpush3.bf16.msra.mxu1 %v2284_v13 }
 0x4bb   :  { %2137 = vmatprep.subr.bf16.mxu1 %v2325_v18 }
 0x4bc   :  { %1101 = vmatmul.mubr.bf16.vlgmr.msra.gmra.mxu0 %v1822_v42 }
 0x4bd   :  { %2161 = vmatprep.mubr.msk.bf16.mxu0 %vm2326_vm1, %v2325_v18  ;;  %2146 = vmatpush3.bf16.msra.mxu0 %v2289_v7 }
 0x4be   :  { %2138 = vmatpush3.bf16.msra.mxu1 %v2285_v43  ;;  %2147 = vmatprep.subr.bf16.mxu0 %v2325_v18 }
 0x4bf   :  { %2139 = vmatprep.subr.bf16.mxu1 %v2325_v18 }
 0x4c1   :  { %2148 = vmatpush3.bf16.msra.mxu0 %v2290_v8 }
 0x4c2   :  { %2140 = vmatpush3.bf16.msra.mxu1 %v2286_v44  ;;  %2149 = vmatprep.subr.bf16.mxu0 %v2325_v18 }
 0x4c3   :  { %1227 = vmatprep.subr.bf16.mxu1 %v2324_v0 }
 0x4c5   :  { %2150 = vmatpush3.bf16.msra.mxu0 %v2291_v14 }
 0x4c6   :  { %2151 = vmatprep.subr.bf16.mxu0 %v2325_v18 }
 0x4c9   :  { %2152 = vmatpush3.bf16.msra.mxu0 %v2292_v15 }
 0x4ca   :  { %2153 = vmatprep.subr.bf16.mxu0 %v2325_v18 }
 0x4cd   :  { %2154 = vmatpush3.bf16.msra.mxu0 %v2293_v16 }
 0x4ce   :  { %2155 = vmatprep.subr.bf16.mxu0 %v2325_v18 }
 0x4d1   :  { %2156 = vmatpush3.bf16.msra.mxu0 %v2294_v1 }
 0x4d2   :  { %2157 = vmatprep.subr.bf16.mxu0 %v2325_v18 }
 0x4d5   :  { %2158 = vmatpush3.bf16.msra.mxu0 %v2295_v2 }
 0x4d6   :  { %2159 = vmatprep.subr.bf16.mxu0 %v2325_v18 }
 0x4d9   :  { %2160 = vmatpush3.bf16.msra.mxu0 %v2296_v3 }
 0x4da   :  { %1386 = vmatprep.subr.bf16.mxu0 %v2324_v0 }
 0x558   :  { %v1050_v45 = vpop.f32.mrf.mxu0 }
 0x559   :  { %v2840_v46 = vadd.f32 %v1050_v45, %v2765_v25  ;;  %v1877_v25 = vld [vmem:[%s3020_s0 + $0x40] sm:$0xff]  ;;  %v2307_v45 = vld [vmem:[%s3023_s5 + $0x38] sm:$0xff]  }
 0x55a   :  { %v2123_v47 = vpop.f32.mrf.mxu0  ;;  %v1879_v29 = vcombine.high %v1877_v25, %v1877_v25  ;;  %v1878_v32 = vcombine.low %v1877_v25, %v1877_v25 }
 0x55c   :  { %v1053_v48 = vpop.f32.mrf.mxu0 }
 0x55d   :  { %v2308_v48 = vld [vmem:[%s3023_s5 + $0x30] sm:$0xff]  }
 0x55e   :  { %v2124_v49 = vpop.f32.mrf.mxu0 }
 0x55f   :  { %v2310_v49 = vld [vmem:[%s3023_s5 + $0x20] sm:$0xff]  }
 0x57c   :  { %v1102_v50 = vpop.f32.mrf.mxu0 }
 0x57d   :  { %v1103_v51 = vadd.f32 %v2529_v33, %v1102_v50  ;;  %v2311_v50 = vld [vmem:[%s3023_s5 + $0x18] sm:$0xff]  }
 0x57e   :  { %v1104_v53 = vpop.f32.mrf.mxu0 }
 0x57f   :  { %v1108_v54 = vmax.f32 %v1103_v51, 0.0  ;;  %v2312_v51 = vld [vmem:[%s3023_s5 + $0x10] sm:$0xff]   ;;  %v2314_v53 = vld [vmem:[%s3023_s5] sm:$0xff]  }
 0x580   :  { %v1105_v55 = vpop.f32.mrf.mxu0 }
 0x581   :  { %v1109_v57 = vpack.c.bf16 %v1108_v54, %v1108_v54  ;;  %v1905_v55 = vld [vmem:[%s3024_s4] ss:$0 sm:$0xff] }
 0x582   :  { %v1106_v58 = vpop.f32.mrf.mxu0 }
 0x583   :  { %2142 = vmatmul.mubr.bf16.vlgmr.msra.gmra.mxu1 %v1109_v57 }
 0x584   :  { %1228 = vmatpush1.bf16.msra.mxu1 %v2774_v39  ;;  %1852 = vmatprep.mubr.msk.bf16.mxu1 %vm113_vm0, %v1851_v56 }
 0x585   :  { %1229 = vmatprep.subr.bf16.mxu1 %v2324_v0 }
 0x588   :  { %1230 = vmatpush1.bf16.msra.mxu1 %v2782_v40 }
 0x589   :  { %1231 = vmatprep.subr.bf16.mxu1 %v2324_v0 }
 0x58c   :  { %1232 = vmatpush1.bf16.msra.mxu1 %v2789_v41 }
 0x58d   :  { %1233 = vmatprep.subr.bf16.mxu1 %v2324_v0 }
 0x590   :  { %1234 = vmatpush1.bf16.msra.mxu1 %v2856_v59 }
 0x591   :  { %1235 = vmatprep.subr.bf16.mxu1 %v2324_v0 }
 0x594   :  { %1236 = vmatpush1.bf16.msra.mxu1 %v2863_v60 }
 0x595   :  { %1237 = vmatprep.subr.bf16.mxu1 %v2324_v0 }
 0x598   :  { %1238 = vmatpush1.bf16.msra.mxu1 %v2870_v61 }
 0x599   :  { %1239 = vmatprep.subr.bf16.mxu1 %v2324_v0 }
 0x59c   :  { %1240 = vmatpush1.bf16.msra.mxu1 %v2877_v62 }
 0x59d   :  { %1241 = vmatprep.subr.bf16.mxu1 %v2324_v0 }
 0x5a0   :  { %1242 = vmatpush1.bf16.msra.mxu1 %v2322_v63 }
 0x5a1   :  { %1257 = vmatprep.subr.bf16.mxu1 %v2324_v0 }
 0x5a4   :  { %1258 = vmatpush2.bf16.msra.mxu1 %v2323_v5 }
 0x5a5   :  { %2165 = vmatprep.subr.bf16.mxu1 %v2325_v18 }
 0x5a7   :  { %1260 = vmatmul.mubr.bf16.vlgmr.msra.gmra.mxu1 %v1850_v4 }
 0x5a8   :  { %2181 = vmatprep.mubr.msk.bf16.mxu1 %vm2326_vm1, %v2325_v18  ;;  %2166 = vmatpush3.bf16.msra.mxu1 %v2299_v34 }
 0x5a9   :  { %2167 = vmatprep.subr.bf16.mxu1 %v2325_v18 }
 0x5ac   :  { %2168 = vmatpush3.bf16.msra.mxu1 %v2300_v35 }
 0x5ad   :  { %2169 = vmatprep.subr.bf16.mxu1 %v2325_v18 }
 0x5b0   :  { %2170 = vmatpush3.bf16.msra.mxu1 %v2301_v36 }
 0x5b1   :  { %2171 = vmatprep.subr.bf16.mxu1 %v2325_v18 }
 0x643   :  { %v1209_v17 = vpop.f32.mrf.mxu1 }
 0x644   :  { %v1215_v19 = vadd.f32 %v1209_v17, %v2840_v46 }
 0x645   :  { %v2143_v20 = vpop.f32.mrf.mxu1 }
 0x647   :  { %v1212_v21 = vpop.f32.mrf.mxu1 }
 0x649   :  { %v2144_v22 = vpop.f32.mrf.mxu1 }
 0x667   :  { %v1261_v23 = vpop.f32.mrf.mxu1 }
 0x668   :  { %v1262_v24 = vadd.f32 %v2529_v33, %v1261_v23 }
 0x669   :  { %v1263_v26 = vpop.f32.mrf.mxu1 }
 0x66a   :  { %v1267_v27 = vmax.f32 %v1262_v24, 0.0 }
 0x66b   :  { %v1264_v28 = vpop.f32.mrf.mxu1 }
 0x66c   :  { %v1268_v30 = vpack.c.bf16 %v1267_v27, %v1267_v27 }
 0x66d   :  { %v1265_v31 = vpop.f32.mrf.mxu1 }
 0x66e   :  { %2162 = vmatmul.mubr.bf16.vlgmr.msra.gmra.mxu0 %v1268_v30 }
 0x66f   :  { %1387 = vmatpush1.bf16.msra.mxu0 %v2774_v39  ;;  %1880 = vmatprep.mubr.msk.bf16.mxu0 %vm113_vm0, %v1879_v29  ;;  %v2305_v39 = vld [vmem:[%s3021_s3 + $0x208] sm:$0xff]  }
 0x670   :  { %1388 = vmatprep.subr.bf16.mxu0 %v2324_v0 }
 0x673   :  { %1389 = vmatpush1.bf16.msra.mxu0 %v2782_v40  ;;  %v2306_v40 = vld [vmem:[%s3021_s3 + $0x200] sm:$0xff]  }
 0x674   :  { %1390 = vmatprep.subr.bf16.mxu0 %v2324_v0 }
 0x677   :  { %1391 = vmatpush1.bf16.msra.mxu0 %v2789_v41 }
 0x678   :  { %1392 = vmatprep.subr.bf16.mxu0 %v2324_v0 }
 0x67b   :  { %1393 = vmatpush1.bf16.msra.mxu0 %v2856_v59 }
 0x67c   :  { %1394 = vmatprep.subr.bf16.mxu0 %v2324_v0 }
 0x67f   :  { %1395 = vmatpush1.bf16.msra.mxu0 %v2863_v60 }
 0x680   :  { %1396 = vmatprep.subr.bf16.mxu0 %v2324_v0 }
 0x683   :  { %1397 = vmatpush1.bf16.msra.mxu0 %v2870_v61 }
 0x684   :  { %1398 = vmatprep.subr.bf16.mxu0 %v2324_v0 }
 0x687   :  { %1399 = vmatpush1.bf16.msra.mxu0 %v2877_v62 }
 0x688   :  { %1400 = vmatprep.subr.bf16.mxu0 %v2324_v0 }
 0x68b   :  { %1401 = vmatpush1.bf16.msra.mxu0 %v2322_v63 }
 0x68c   :  { %1416 = vmatprep.subr.bf16.mxu0 %v2324_v0  ;;  %v2302_v0 = vld [vmem:[%s3021_s3 + $0x220] sm:$0xff]  }
 0x68d   :  { %2172 = vmatpush3.bf16.msra.mxu1 %v2302_v0 }
 0x68e   :  { %2173 = vmatprep.subr.bf16.mxu1 %v2325_v18 }
 0x68f   :  { %1417 = vmatpush2.bf16.msra.mxu0 %v2323_v5 }
 0x691   :  { %2174 = vmatpush3.bf16.msra.mxu1 %v2303_v37 }
 0x692   :  { %1419 = vmatmul.mubr.bf16.vlgmr.msra.gmra.mxu0 %v1878_v32  ;;  %2175 = vmatprep.subr.bf16.mxu1 %v2325_v18 }
 0x695   :  { %2176 = vmatpush3.bf16.msra.mxu1 %v2304_v38 }
 0x696   :  { %2177 = vmatprep.subr.bf16.mxu1 %v2325_v18 }
 0x699   :  { %2178 = vmatpush3.bf16.msra.mxu1 %v2305_v39 }
 0x69a   :  { %2179 = vmatprep.subr.bf16.mxu1 %v2325_v18 }
 0x69d   :  { %2180 = vmatpush3.bf16.msra.mxu1 %v2306_v40 }
 0x69e   :  { %2185 = vmatprep.subr.bf16.mxu1 %v2325_v18 }
 0x72e   :  { %v1368_v41 = vpop.f32.mrf.mxu0 }
 0x72f   :  { %v1374_v42 = vadd.f32 %v1368_v41, %v1215_v19 }
 0x730   :  { %v2163_v6 = vpop.f32.mrf.mxu0 }
 0x732   :  { %v1371_v9 = vpop.f32.mrf.mxu0 }
 0x734   :  { %v2164_v10 = vpop.f32.mrf.mxu0 }
 0x752   :  { %v1420_v11 = vpop.f32.mrf.mxu0 }
 0x753   :  { %v1421_v12 = vadd.f32 %v2529_v33, %v1420_v11  ;;  %v2309_v33 = vld [vmem:[%s3023_s5 + $0x28] sm:$0xff]  }
 0x754   :  { %v1422_v13 = vpop.f32.mrf.mxu0 }
 0x755   :  { %v1426_v43 = vmax.f32 %v1421_v12, 0.0 }
 0x756   :  { %v1423_v44 = vpop.f32.mrf.mxu0 }
 0x757   :  { %v1427_v46 = vpack.c.bf16 %v1426_v43, %v1426_v43 }
 0x758   :  { %v1424_v47 = vpop.f32.mrf.mxu0 }
 0x759   :  { %2182 = vmatmul.mubr.bf16.vlgmr.msra.gmra.mxu1 %v1427_v46 }
 0x75a   :  { %2186 = vmatpush3.bf16.msra.mxu1 %v2307_v45  ;;  %2201 = vmatprep.mubr.msk.bf16.mxu1 %vm2326_vm1, %v2325_v18 }
 0x75b   :  { %2187 = vmatprep.subr.bf16.mxu1 %v2325_v18 }
 0x75e   :  { %2188 = vmatpush3.bf16.msra.mxu1 %v2308_v48 }
 0x75f   :  { %2189 = vmatprep.subr.bf16.mxu1 %v2325_v18 }
 0x762   :  { %2190 = vmatpush3.bf16.msra.mxu1 %v2309_v33 }
 0x763   :  { %2191 = vmatprep.subr.bf16.mxu1 %v2325_v18 }
 0x766   :  { %2192 = vmatpush3.bf16.msra.mxu1 %v2310_v49 }
 0x767   :  { %2193 = vmatprep.subr.bf16.mxu1 %v2325_v18 }
 0x76a   :  { %2194 = vmatpush3.bf16.msra.mxu1 %v2311_v50 }
 0x76b   :  { %2195 = vmatprep.subr.bf16.mxu1 %v2325_v18 }
 0x76e   :  { %2196 = vmatpush3.bf16.msra.mxu1 %v2312_v51 }
 0x76f   :  { %2197 = vmatprep.subr.bf16.mxu1 %v2325_v18 }
 0x772   :  { %2198 = vmatpush3.bf16.msra.mxu1 %v2313_v52 }
 0x773   :  { %2199 = vmatprep.subr.bf16.mxu1 %v2325_v18  ;;  %v1906_v18 = vld [vmem:[%s3025_s6] ss:$0 sm:$0xff] }
 0x776   :  { %2200 = vmatpush3.bf16.msra.mxu1 %v2314_v53 }
 0x819   :  { %v1527_v54 = vpop.f32.mrf.mxu1 }
 0x81a   :  { %v1533_v56 = vadd.f32 %v1527_v54, %v1374_v42 }
 0x81b   :  { %v2183_v57 = vpop.f32.mrf.mxu1 }
 0x81c   :  { %v1541_v58 = vadd.f32 %v1905_v55, %v1533_v56 }
 0x81d   :  { %v1530_v59 = vpop.f32.mrf.mxu1 }
 0x81e   :  { %v1542_v60 = vmax.f32 %v1541_v58, 0.0 }
 0x81f   :  { %v2184_v61 = vpop.f32.mrf.mxu1 }
 0x820   :  { %v1543_v62 = vpack.c.bf16 %v1542_v60, %v1542_v60 }
 0x822   :  { %2202 = vmatmul.mubr.bf16.vlgmr.msra.gmra.mxu1 %v1543_v62 }
 0x8e2   :  { %v1649_v63 = vpop.f32.mrf.mxu1 }
 0x8e3   :  { %v1650_v4 = vadd.f32 %v1906_v18, %v1649_v63 }
 0x8e4   :  { %v2203_v5 = vpop.f32.mrf.mxu1 }
 0x8e5   :  { %1655 = vst [vmem:[%s3026_s7] sm:$0xff] %v1650_v4 }
 0x8e6   :  { %v1652_v7 = vpop.f32.mrf.mxu1 }
 0x8e8   :  { %v2204_v8 = vpop.f32.mrf.mxu1 }

</bundles_post_ra>
